<compile_context>
chip_gen: v7x
topology: tpu7x:2x2x1
jax: 0.10.0
libtpu: 0.0.40
codegen_flags: <defaults>
</compile_context>

<pallas_src>
import functools

import numpy as np

import jax
import jax.numpy as jnp
from jax.experimental import pallas as pl
from jax.experimental.pallas import tpu as pltpu


_CPARAMS = pltpu.CompilerParams(
    dimension_semantics=("parallel",),
    vmem_limit_bytes=32 * 1024 * 1024,
)


# ---------------------------- Pallas kernels ----------------------------

def _fpn_level_kernel(W, x_ref, up_ref, wc_ref, bc_ref, w3_ref, b3_ref,
                      last_ref, res_ref):
    """Fused FPN level: (backbone o lateral) 1x1 conv + top-down add + 3x3 conv.

    x:   (1, 3,  M) bf16   pooled image, M = H*W lane-dense
    up:  (1, C,  M) bf16   nearest-2x upsampled previous `last` (zeros at top level)
    wc:  (C, 3)     bf16   composed 1x1 weight, bc: (C, 1) f32 composed bias
    w3:  (C, 9*C)   bf16   3x3 weight, tap-major (k = ky*3+kx), b3: (C, 1) f32
    out: last (1, C, M) bf16, res (1, C, M) bf16
    """
    aux = last_ref.shape[1]
    M = last_ref.shape[2]

    # lateral 1x1 (MXU) + bias + top-down add, f32 accumulation
    lat = jnp.dot(wc_ref[...], x_ref[0], preferred_element_type=jnp.float32)
    last = lat + bc_ref[...] + up_ref[0].astype(jnp.float32)
    last_b = last.astype(jnp.bfloat16)
    last_ref[0] = last_b

    # 3x3 "same" conv: build 9 shifted taps in-kernel (zero-fill lane shifts +
    # column-edge masks), concat along the contraction axis, one K=9*C matmul.
    col = jax.lax.broadcasted_iota(jnp.int32, (1, M), 1) % W
    zero = jnp.zeros_like(last_b)
    taps = []
    for dy in (-1, 0, 1):
        for dx in (-1, 0, 1):
            s = dy * W + dx                       # flattened-M source offset
            if s > 0:
                t = jnp.concatenate(
                    [last_b[:, s:], jnp.zeros((aux, s), last_b.dtype)], axis=1)
            elif s < 0:
                t = jnp.concatenate(
                    [jnp.zeros((aux, -s), last_b.dtype), last_b[:, :s]], axis=1)
            else:
                t = last_b
            if dx == -1:                          # left edge invalid
                t = jnp.where(col >= 1, t, zero)
            elif dx == 1:                         # right edge invalid
                t = jnp.where(col <= W - 2, t, zero)
            taps.append(t)
    big = jnp.concatenate(taps, axis=0)           # (9*C, M)
    res = jnp.dot(w3_ref[...], big, preferred_element_type=jnp.float32) + b3_ref[...]
    res_ref[0] = res.astype(res_ref.dtype)


def _upscale_kernel(x_ref, w_ref, b_ref, o_ref, y_scr):
    """Fused neck step: ConvTranspose2d(k=2, s=2) + InstanceNorm2d + ReLU.

    Because stride == kernel there is no overlap: tap k = dh*2+dw of output is a
    pointwise matmul of the input.  All 4 taps are one (4*Cout, Cin)@(Cin, M) dot.
    x: (1, Cin, M) bf16; w: (4*Cout, Cin) bf16; b: (4*Cout, 1) f32
    o: (1, Cout, 4*M) bf16, tap k stored at lanes [k*M, (k+1)*M) ("internal" order)
    y_scr: (4*Cout, M) f32 VMEM scratch holding unnormalized taps.
    InstanceNorm stats are taken over all 4*M pixels per channel (the full
    2H x 2W output), with a numerically safe two-pass (center-then-square) variance.
    """
    cout = o_ref.shape[1]
    M = x_ref.shape[2]
    inv_n = 1.0 / (4.0 * M)

    y_scr[...] = jnp.dot(w_ref[...], x_ref[0],
                         preferred_element_type=jnp.float32) + b_ref[...]

    # pass 1: mean per channel (sum taps' per-row lane reductions)
    s = jnp.zeros((cout, 1), jnp.float32)
    for k in range(4):
        s = s + jnp.sum(y_scr[k * cout:(k + 1) * cout, :], axis=1, keepdims=True)
    mean = s * inv_n

    # pass 2: center in the scratch, accumulate E[(y-mean)^2]  (biased variance)
    var = jnp.zeros((cout, 1), jnp.float32)
    for k in range(4):
        c = y_scr[k * cout:(k + 1) * cout, :] - mean
        y_scr[k * cout:(k + 1) * cout, :] = c
        var = var + jnp.sum(c * c, axis=1, keepdims=True)
    inv_std = jax.lax.rsqrt(var * inv_n + 1e-5)

    # pass 3: normalize + ReLU, contiguous lane-dense store per tap
    for k in range(4):
        o_ref[0, :, k * M:(k + 1) * M] = jnp.maximum(
            y_scr[k * cout:(k + 1) * cout, :] * inv_std, 0.0).astype(o_ref.dtype)


# ---------------------------- Pallas wrappers ----------------------------

def _fpn_level(pooled, up, wc, bc, w3, b3, W):
    """One fused FPN level.  pooled/up: (N, C, M); returns (last, result)."""
    N, _, M = pooled.shape
    aux = wc.shape[0]
    kern = functools.partial(_fpn_level_kernel, W)
    return pl.pallas_call(
        kern,
        out_shape=(jax.ShapeDtypeStruct((N, aux, M), jnp.bfloat16),
                   jax.ShapeDtypeStruct((N, aux, M), jnp.bfloat16)),
        grid=(N,),
        in_specs=[pl.BlockSpec((1, 3, M), lambda n: (n, 0, 0)),
                  pl.BlockSpec((1, aux, M), lambda n: (n, 0, 0)),
                  pl.BlockSpec((aux, 3), lambda n: (0, 0)),
                  pl.BlockSpec((aux, 1), lambda n: (0, 0)),
                  pl.BlockSpec((aux, 9 * aux), lambda n: (0, 0)),
                  pl.BlockSpec((aux, 1), lambda n: (0, 0))],
        out_specs=(pl.BlockSpec((1, aux, M), lambda n: (n, 0, 0)),
                   pl.BlockSpec((1, aux, M), lambda n: (n, 0, 0))),
        compiler_params=_CPARAMS,
    )(pooled, up, wc, bc, w3, b3)


def _upscale_step(x, w_all, b_all):
    """One fused neck step.  x: (N, Cin, M) -> (N, Cout, 4*M) in tap-major order."""
    N, cin, M = x.shape
    cout4 = w_all.shape[0]
    cout = cout4 // 4
    return pl.pallas_call(
        _upscale_kernel,
        out_shape=jax.ShapeDtypeStruct((N, cout, 4 * M), jnp.bfloat16),
        grid=(N,),
        in_specs=[pl.BlockSpec((1, cin, M), lambda n: (n, 0, 0)),
                  pl.BlockSpec((cout4, cin), lambda n: (0, 0)),
                  pl.BlockSpec((cout4, 1), lambda n: (0, 0))],
        out_specs=pl.BlockSpec((1, cout, 4 * M), lambda n: (n, 0, 0)),
        scratch_shapes=[pltpu.VMEM((cout4, M), jnp.float32)],
        compiler_params=_CPARAMS,
    )(x, w_all, b_all)


# ---------------------------- ordering helpers (host, tiny) ----------------------------

def _upscale_pos(pos):
    """Track the tap-major internal ordering: pos[y, x] = storage index of (y, x)."""
    h, w = pos.shape
    m = h * w
    out = np.empty((2 * h, 2 * w), dtype=pos.dtype)
    for dh in range(2):
        for dw in range(2):
            out[dh::2, dw::2] = (dh * 2 + dw) * m + pos
    return out


# ---------------------------- parameters ----------------------------

_BB_CHANNELS = (16, 24, 40, 56)   # stand-in for mobilenet_v3_large layers [3, 6, 9, 14]


def _uniform(key, shape, fan_in):
    bound = 1.0 / float(fan_in) ** 0.5
    return jax.random.uniform(key, shape, jnp.float32, -bound, bound)


def init_params(key, hidden_size=32):
    aux = hidden_size // 4
    keys = iter(jax.random.split(key, 64))
    params = {"backbone": [], "fpn_lateral": [], "fpn_output": [], "neck": []}
    for c in _BB_CHANNELS:                                   # stand-in backbone 1x1 convs
        params["backbone"].append((_uniform(next(keys), (3, c), 3),
                                   _uniform(next(keys), (c,), 3)))
    for c in _BB_CHANNELS:                                   # FPN lateral (1x1) + output (3x3)
        params["fpn_lateral"].append((_uniform(next(keys), (c, aux), c),
                                      _uniform(next(keys), (aux,), c)))
        params["fpn_output"].append((_uniform(next(keys), (3, 3, aux, aux), 9 * aux),
                                     _uniform(next(keys), (aux,), 9 * aux)))
    for idx in range(4):                                     # UpscaleConcat transposed convs
        ch = aux * (idx + 1)
        params["neck"].append((_uniform(next(keys), (ch, ch, 2, 2), 4 * ch),
                               _uniform(next(keys), (ch,), 4 * ch)))
    return params


# ---------------------------- forward ----------------------------

def model_forward(images_nchw, params):
    x = images_nchw.astype(jnp.float32)
    N, C, H, W = x.shape
    aux = params["fpn_lateral"][0][0].shape[1]

    # --- backbone (stand-in) ---
    # TODO(synk): mobilenet_v3_large backbone cannot be rebuilt in-script; a
    # deterministic strided avg-pool feeds the folded 1x1 stand-in convs.
    strides = (4, 8, 16, 32)
    pooled, dims = [], []
    for s in strides:
        h, w = H // s, W // s
        p = x.reshape(N, C, h, s, w, s).mean(axis=(3, 5))
        pooled.append(p.reshape(N, C, h * w).astype(jnp.bfloat16))
        dims.append((h, w))

    # --- FPN (torchvision FeaturePyramidNetwork semantics), one fused kernel per level ---
    results = [None] * 4
    last = None
    for i in range(3, -1, -1):
        h, w = dims[i]
        m = h * w
        wb, bb = params["backbone"][i]
        wl, bl = params["fpn_lateral"][i]
        wc = (wl.T @ wb.T).astype(jnp.bfloat16)               # composed 1x1: (aux, 3)
        bc = (wl.T @ bb + bl).reshape(aux, 1)                 # f32
        w3, b3 = params["fpn_output"][i]
        w3k = jnp.transpose(w3, (3, 0, 1, 2)).reshape(aux, 9 * aux).astype(jnp.bfloat16)
        b3k = b3.reshape(aux, 1)
        if last is None:                                      # topmost level: no top-down
            up = jnp.zeros((N, aux, m), jnp.bfloat16)
        else:                                                 # nearest 2x upsample (tiny glue)
            ph, pw = dims[i + 1]
            up = jnp.repeat(jnp.repeat(last.reshape(N, aux, ph, pw), 2, axis=2),
                            2, axis=3).reshape(N, aux, m)
        last, results[i] = _fpn_level(pooled[i], up, wc, bc, w3k, b3k, w)

    # --- neck: UpscaleConcat(aux, 4), one fused kernel per step ---
    output, pos = None, None
    for count in range(4):
        feat = results[3 - count]
        wn, bn = params["neck"][count]
        cout = wn.shape[1]
        w_all = jnp.transpose(wn, (2, 3, 1, 0)).reshape(
            4 * cout, wn.shape[0]).astype(jnp.bfloat16)       # (4*Cout, Cin), tap-major rows
        b_all = jnp.tile(bn, 4).reshape(4 * cout, 1)          # f32
        if output is None:
            x_step = feat
            pos = np.arange(feat.shape[2], dtype=np.int32).reshape(dims[3])
        else:
            # permute the (small) FPN feature into the neck's internal ordering
            inv = np.argsort(pos.ravel()).astype(np.int32)
            x_step = jnp.concatenate([output, jnp.take(feat, inv, axis=2)], axis=1)
        output = _upscale_step(x_step, w_all, b_all)
        pos = _upscale_pos(pos)

    # single unscramble of the internal tap-major ordering back to row-major spatial
    hf, wf = pos.shape
    out = jnp.take(output, pos.ravel().astype(np.int32), axis=2)
    out = out.reshape(N, -1, hf, wf).astype(jnp.float32)      # NCHW, like the module

    # --- head ---
    # TODO(synk): BgThreshTextNoise head class not provided; returning neck features.
    return out


# ---------------------------- main ----------------------------

if __name__ == "__main__":
    image_size, hidden_size = 64, 32
    key = jax.random.PRNGKey(0)
    pkey, xkey = jax.random.split(key)
    params = init_params(pkey, hidden_size)
    images = jax.random.normal(xkey, (2, 3, image_size, image_size), jnp.float32)

    fwd = jax.jit(model_forward)
    out = fwd(images, params)
    jax.block_until_ready(out)
    assert out.shape == (2, hidden_size, image_size // 2, image_size // 2), out.shape
    assert bool(jnp.all(out >= 0.0))          # final stage ends in ReLU
    print("KERNEL_OK")
</pallas_src>

<mosaic_0001>
module attributes {stable_mosaic.version = 11 : i64} {
  func.func @_fpn_level_kernel(%arg0: i32, %arg1: memref<1x3x4xbf16, #tpu.memory_space<vmem>>, %arg2: memref<1x8x4xbf16, #tpu.memory_space<vmem>>, %arg3: memref<8x3xbf16, #tpu.memory_space<vmem>>, %arg4: memref<8x1xf32, #tpu.memory_space<vmem>>, %arg5: memref<8x72xbf16, #tpu.memory_space<vmem>>, %arg6: memref<8x1xf32, #tpu.memory_space<vmem>>, %arg7: memref<1x8x4xbf16, #tpu.memory_space<vmem>>, %arg8: memref<1x8x4xbf16, #tpu.memory_space<vmem>>) attributes {dimension_semantics = [#tpu.dimension_semantics<parallel>], iteration_bounds = array<i64: 2>, scalar_prefetch = 0 : i64, scratch_operands = 0 : i64, tpu.core_type = #tpu.core_type<tc>, window_params = [{transform_indices = @transform_0, window_bounds = array<i64: 1, 3, 4>}, {transform_indices = @transform_1, window_bounds = array<i64: 1, 8, 4>}, {pipeline_mode = #tpu.pipeline_mode<synchronous>, transform_indices = @transform_2, window_bounds = array<i64: 8, 3>}, {pipeline_mode = #tpu.pipeline_mode<synchronous>, transform_indices = @transform_3, window_bounds = array<i64: 8, 1>}, {pipeline_mode = #tpu.pipeline_mode<synchronous>, transform_indices = @transform_4, window_bounds = array<i64: 8, 72>}, {pipeline_mode = #tpu.pipeline_mode<synchronous>, transform_indices = @transform_5, window_bounds = array<i64: 8, 1>}, {transform_indices = @transform_6, window_bounds = array<i64: 1, 8, 4>}, {transform_indices = @transform_7, window_bounds = array<i64: 1, 8, 4>}]} {
    %c0 = arith.constant 0 : index
    %c0_0 = arith.constant 0 : index
    %0 = vector.load %arg3[%c0, %c0_0] : memref<8x3xbf16, #tpu.memory_space<vmem>>, vector<8x3xbf16>
    %c0_1 = arith.constant 0 : index
    %c0_2 = arith.constant 0 : index
    %c0_3 = arith.constant 0 : index
    %1 = vector.load %arg1[%c0_1, %c0_2, %c0_3] : memref<1x3x4xbf16, #tpu.memory_space<vmem>>, vector<1x3x4xbf16>
    %2 = vector.shape_cast %1 : vector<1x3x4xbf16> to vector<3x4xbf16>
    %cst = arith.constant dense<0.000000e+00> : vector<8x4xf32>
    %3 = tpu.matmul %0, %2, %cst {dimension_numbers = #tpu.dot_dimension_numbers<[1], [0], [0], [1], [0, 0, 1, 1], [], []>} : vector<8x3xbf16>, vector<3x4xbf16>, vector<8x4xf32> -> vector<8x4xf32>
    %c0_4 = arith.constant 0 : index
    %c0_5 = arith.constant 0 : index
    %4 = vector.load %arg4[%c0_4, %c0_5] : memref<8x1xf32, #tpu.memory_space<vmem>>, vector<8x1xf32>
    %5 = vector.broadcast %4 : vector<8x1xf32> to vector<8x4xf32>
    %6 = arith.addf %3, %5 : vector<8x4xf32>
    %c0_6 = arith.constant 0 : index
    %c0_7 = arith.constant 0 : index
    %c0_8 = arith.constant 0 : index
    %7 = vector.load %arg2[%c0_6, %c0_7, %c0_8] : memref<1x8x4xbf16, #tpu.memory_space<vmem>>, vector<1x8x4xbf16>
    %8 = vector.shape_cast %7 : vector<1x8x4xbf16> to vector<8x4xbf16>
    %9 = arith.extf %8 : vector<8x4xbf16> to vector<8x4xf32>
    %10 = arith.addf %6, %9 : vector<8x4xf32>
    %11 = arith.truncf %10 : vector<8x4xf32> to vector<8x4xbf16>
    %c0_9 = arith.constant 0 : index
    %c0_10 = arith.constant 0 : index
    %c0_11 = arith.constant 0 : index
    %12 = vector.load %arg7[%c0_9, %c0_10, %c0_11] : memref<1x8x4xbf16, #tpu.memory_space<vmem>>, vector<1x8x4xbf16>
    %13 = vector.shape_cast %12 : vector<1x8x4xbf16> to vector<8x4xbf16>
    %14 = vector.shape_cast %11 : vector<8x4xbf16> to vector<1x8x4xbf16>
    tpu.vector_store %arg7[%c0_9, %c0_10, %c0_11], %14 {strides = array<i32>} : memref<1x8x4xbf16, #tpu.memory_space<vmem>>, vector<1x8x4xbf16>,
    %15 = tpu.iota {dimensions = array<i32: 1>} : vector<1x4xi32>
    %c2_i32 = arith.constant 2 : i32
    %c0_i32 = arith.constant 0 : i32
    %16 = arith.cmpi eq, %c2_i32, %c0_i32 : i32
    %c1_i32 = arith.constant 1 : i32
    %17 = arith.select %16, %c1_i32, %c2_i32 : i32
    %18 = vector.broadcast %17 : i32 to vector<1x4xi32>
    %19 = arith.remsi %15, %18 : vector<1x4xi32>
    %c0_i32_12 = arith.constant 0 : i32
    %20 = vector.broadcast %c0_i32_12 : i32 to vector<1x4xi32>
    %21 = arith.cmpi ne, %19, %20 : vector<1x4xi32>
    %c0_i32_13 = arith.constant 0 : i32
    %22 = vector.broadcast %c0_i32_13 : i32 to vector<1x4xi32>
    %23 = arith.cmpi slt, %19, %22 : vector<1x4xi32>
    %c0_i32_14 = arith.constant 0 : i32
    %24 = arith.cmpi slt, %17, %c0_i32_14 : i32
    %25 = vector.broadcast %24 : i1 to vector<1x4xi1>
    %26 = vector.broadcast %25 : vector<1x4xi1> to vector<1x4xi1>
    %27 = arith.xori %23, %26 : vector<1x4xi1>
    %28 = arith.andi %27, %21 : vector<1x4xi1>
    %29 = vector.broadcast %17 : i32 to vector<1x4xi32>
    %30 = arith.addi %19, %29 : vector<1x4xi32>
    %31 = arith.select %28, %30, %19 : vector<1x4xi1>, vector<1x4xi32>
    %cst_15 = arith.constant 0.000000e+00 : bf16
    %32 = vector.broadcast %cst_15 : bf16 to vector<8x4xbf16>
    %cst_16 = arith.constant 0.000000e+00 : bf16
    %33 = vector.broadcast %cst_16 : bf16 to vector<8x3xbf16>
    %34 = vector.extract_strided_slice %11 {offsets = [0, 0], sizes = [8, 1], strides = [1, 1]} : vector<8x4xbf16> to vector<8x1xbf16>
    %35 = tpu.concatenate %33, %34 in 1 : vector<8x3xbf16>, vector<8x1xbf16> -> vector<8x4xbf16>
    %c1_i32_17 = arith.constant 1 : i32
    %36 = vector.broadcast %c1_i32_17 : i32 to vector<1x4xi32>
    %37 = arith.cmpi sge, %31, %36 : vector<1x4xi32>
    %38 = vector.shape_cast %37 : vector<1x4xi1> to vector<1x4xi1>
    %39 = vector.broadcast %38 : vector<1x4xi1> to vector<8x4xi1>
    %40 = arith.select %39, %35, %32 : vector<8x4xi1>, vector<8x4xbf16>
    %cst_18 = arith.constant 0.000000e+00 : bf16
    %41 = vector.broadcast %cst_18 : bf16 to vector<8x2xbf16>
    %42 = vector.extract_strided_slice %11 {offsets = [0, 0], sizes = [8, 2], strides = [1, 1]} : vector<8x4xbf16> to vector<8x2xbf16>
    %43 = tpu.concatenate %41, %42 in 1 : vector<8x2xbf16>, vector<8x2xbf16> -> vector<8x4xbf16>
    %cst_19 = arith.constant 0.000000e+00 : bf16
    %44 = vector.broadcast %cst_19 : bf16 to vector<8x1xbf16>
    %45 = vector.extract_strided_slice %11 {offsets = [0, 0], sizes = [8, 3], strides = [1, 1]} : vector<8x4xbf16> to vector<8x3xbf16>
    %46 = tpu.concatenate %44, %45 in 1 : vector<8x1xbf16>, vector<8x3xbf16> -> vector<8x4xbf16>
    %c0_i32_20 = arith.constant 0 : i32
    %47 = vector.broadcast %c0_i32_20 : i32 to vector<1x4xi32>
    %48 = arith.cmpi sle, %31, %47 : vector<1x4xi32>
    %49 = vector.shape_cast %48 : vector<1x4xi1> to vector<1x4xi1>
    %50 = vector.broadcast %49 : vector<1x4xi1> to vector<8x4xi1>
    %51 = arith.select %50, %46, %32 : vector<8x4xi1>, vector<8x4xbf16>
    %cst_21 = arith.constant 0.000000e+00 : bf16
    %52 = vector.broadcast %cst_21 : bf16 to vector<8x1xbf16>
    %53 = vector.extract_strided_slice %11 {offsets = [0, 0], sizes = [8, 3], strides = [1, 1]} : vector<8x4xbf16> to vector<8x3xbf16>
    %54 = tpu.concatenate %52, %53 in 1 : vector<8x1xbf16>, vector<8x3xbf16> -> vector<8x4xbf16>
    %c1_i32_22 = arith.constant 1 : i32
    %55 = vector.broadcast %c1_i32_22 : i32 to vector<1x4xi32>
    %56 = arith.cmpi sge, %31, %55 : vector<1x4xi32>
    %57 = vector.shape_cast %56 : vector<1x4xi1> to vector<1x4xi1>
    %58 = vector.broadcast %57 : vector<1x4xi1> to vector<8x4xi1>
    %59 = arith.select %58, %54, %32 : vector<8x4xi1>, vector<8x4xbf16>
    %60 = vector.extract_strided_slice %11 {offsets = [0, 1], sizes = [8, 3], strides = [1, 1]} : vector<8x4xbf16> to vector<8x3xbf16>
    %cst_23 = arith.constant 0.000000e+00 : bf16
    %61 = vector.broadcast %cst_23 : bf16 to vector<8x1xbf16>
    %62 = tpu.concatenate %60, %61 in 1 : vector<8x3xbf16>, vector<8x1xbf16> -> vector<8x4xbf16>
    %c0_i32_24 = arith.constant 0 : i32
    %63 = vector.broadcast %c0_i32_24 : i32 to vector<1x4xi32>
    %64 = arith.cmpi sle, %31, %63 : vector<1x4xi32>
    %65 = vector.shape_cast %64 : vector<1x4xi1> to vector<1x4xi1>
    %66 = vector.broadcast %65 : vector<1x4xi1> to vector<8x4xi1>
    %67 = arith.select %66, %62, %32 : vector<8x4xi1>, vector<8x4xbf16>
    %68 = vector.extract_strided_slice %11 {offsets = [0, 1], sizes = [8, 3], strides = [1, 1]} : vector<8x4xbf16> to vector<8x3xbf16>
    %cst_25 = arith.constant 0.000000e+00 : bf16
    %69 = vector.broadcast %cst_25 : bf16 to vector<8x1xbf16>
    %70 = tpu.concatenate %68, %69 in 1 : vector<8x3xbf16>, vector<8x1xbf16> -> vector<8x4xbf16>
    %c1_i32_26 = arith.constant 1 : i32
    %71 = vector.broadcast %c1_i32_26 : i32 to vector<1x4xi32>
    %72 = arith.cmpi sge, %31, %71 : vector<1x4xi32>
    %73 = vector.shape_cast %72 : vector<1x4xi1> to vector<1x4xi1>
    %74 = vector.broadcast %73 : vector<1x4xi1> to vector<8x4xi1>
    %75 = arith.select %74, %70, %32 : vector<8x4xi1>, vector<8x4xbf16>
    %76 = vector.extract_strided_slice %11 {offsets = [0, 2], sizes = [8, 2], strides = [1, 1]} : vector<8x4xbf16> to vector<8x2xbf16>
    %cst_27 = arith.constant 0.000000e+00 : bf16
    %77 = vector.broadcast %cst_27 : bf16 to vector<8x2xbf16>
    %78 = tpu.concatenate %76, %77 in 1 : vector<8x2xbf16>, vector<8x2xbf16> -> vector<8x4xbf16>
    %79 = vector.extract_strided_slice %11 {offsets = [0, 3], sizes = [8, 1], strides = [1, 1]} : vector<8x4xbf16> to vector<8x1xbf16>
    %cst_28 = arith.constant 0.000000e+00 : bf16
    %80 = vector.broadcast %cst_28 : bf16 to vector<8x3xbf16>
    %81 = tpu.concatenate %79, %80 in 1 : vector<8x1xbf16>, vector<8x3xbf16> -> vector<8x4xbf16>
    %c0_i32_29 = arith.constant 0 : i32
    %82 = vector.broadcast %c0_i32_29 : i32 to vector<1x4xi32>
    %83 = arith.cmpi sle, %31, %82 : vector<1x4xi32>
    %84 = vector.shape_cast %83 : vector<1x4xi1> to vector<1x4xi1>
    %85 = vector.broadcast %84 : vector<1x4xi1> to vector<8x4xi1>
    %86 = arith.select %85, %81, %32 : vector<8x4xi1>, vector<8x4xbf16>
    %87 = tpu.concatenate %40, %43, %51, %59, %11, %67, %75, %78, %86 in 0 : vector<8x4xbf16>, vector<8x4xbf16>, vector<8x4xbf16>, vector<8x4xbf16>, vector<8x4xbf16>, vector<8x4xbf16>, vector<8x4xbf16>, vector<8x4xbf16>, vector<8x4xbf16> -> vector<72x4xbf16>
    %c0_30 = arith.constant 0 : index
    %c0_31 = arith.constant 0 : index
    %88 = vector.load %arg5[%c0_30, %c0_31] : memref<8x72xbf16, #tpu.memory_space<vmem>>, vector<8x72xbf16>
    %cst_32 = arith.constant dense<0.000000e+00> : vector<8x4xf32>
    %89 = tpu.matmul %88, %87, %cst_32 {dimension_numbers = #tpu.dot_dimension_numbers<[1], [0], [0], [1], [0, 0, 1, 1], [], []>} : vector<8x72xbf16>, vector<72x4xbf16>, vector<8x4xf32> -> vector<8x4xf32>
    %c0_33 = arith.constant 0 : index
    %c0_34 = arith.constant 0 : index
    %90 = vector.load %arg6[%c0_33, %c0_34] : memref<8x1xf32, #tpu.memory_space<vmem>>, vector<8x1xf32>
    %91 = vector.broadcast %90 : vector<8x1xf32> to vector<8x4xf32>
    %92 = arith.addf %89, %91 : vector<8x4xf32>
    %93 = arith.truncf %92 : vector<8x4xf32> to vector<8x4xbf16>
    %c0_35 = arith.constant 0 : index
    %c0_36 = arith.constant 0 : index
    %c0_37 = arith.constant 0 : index
    %94 = vector.load %arg8[%c0_35, %c0_36, %c0_37] : memref<1x8x4xbf16, #tpu.memory_space<vmem>>, vector<1x8x4xbf16>
    %95 = vector.shape_cast %94 : vector<1x8x4xbf16> to vector<8x4xbf16>
    %96 = vector.shape_cast %93 : vector<8x4xbf16> to vector<1x8x4xbf16>
    tpu.vector_store %arg8[%c0_35, %c0_36, %c0_37], %96 {strides = array<i32>} : memref<1x8x4xbf16, #tpu.memory_space<vmem>>, vector<1x8x4xbf16>,
    return
  }
  func.func @transform_0(%arg0: i32) -> (i32, i32, i32) {
    %c0_i32 = arith.constant 0 : i32
    %c0_i32_0 = arith.constant 0 : i32
    %c0_i32_1 = arith.constant 0 : i32
    return %arg0, %c0_i32, %c0_i32_0 : i32, i32, i32
  }
  func.func @transform_1(%arg0: i32) -> (i32, i32, i32) {
    %c0_i32 = arith.constant 0 : i32
    %c0_i32_0 = arith.constant 0 : i32
    %c0_i32_1 = arith.constant 0 : i32
    return %arg0, %c0_i32, %c0_i32_0 : i32, i32, i32
  }
  func.func @transform_2(%arg0: i32) -> (i32, i32) {
    %c0_i32 = arith.constant 0 : i32
    %c0_i32_0 = arith.constant 0 : i32
    %c0_i32_1 = arith.constant 0 : i32
    return %c0_i32, %c0_i32_0 : i32, i32
  }
  func.func @transform_3(%arg0: i32) -> (i32, i32) {
    %c0_i32 = arith.constant 0 : i32
    %c0_i32_0 = arith.constant 0 : i32
    %c0_i32_1 = arith.constant 0 : i32
    return %c0_i32, %c0_i32_0 : i32, i32
  }
  func.func @transform_4(%arg0: i32) -> (i32, i32) {
    %c0_i32 = arith.constant 0 : i32
    %c0_i32_0 = arith.constant 0 : i32
    %c0_i32_1 = arith.constant 0 : i32
    return %c0_i32, %c0_i32_0 : i32, i32
  }
  func.func @transform_5(%arg0: i32) -> (i32, i32) {
    %c0_i32 = arith.constant 0 : i32
    %c0_i32_0 = arith.constant 0 : i32
    %c0_i32_1 = arith.constant 0 : i32
    return %c0_i32, %c0_i32_0 : i32, i32
  }
  func.func @transform_6(%arg0: i32) -> (i32, i32, i32) {
    %c0_i32 = arith.constant 0 : i32
    %c0_i32_0 = arith.constant 0 : i32
    %c0_i32_1 = arith.constant 0 : i32
    return %arg0, %c0_i32, %c0_i32_0 : i32, i32, i32
  }
  func.func @transform_7(%arg0: i32) -> (i32, i32, i32) {
    %c0_i32 = arith.constant 0 : i32
    %c0_i32_0 = arith.constant 0 : i32
    %c0_i32_1 = arith.constant 0 : i32
    return %arg0, %c0_i32, %c0_i32_0 : i32, i32, i32
  }
}

module attributes {stable_mosaic.version = 11 : i64} {
  func.func @_fpn_level_kernel(%arg0: i32, %arg1: memref<1x3x64xbf16, #tpu.memory_space<vmem>>, %arg2: memref<1x8x64xbf16, #tpu.memory_space<vmem>>, %arg3: memref<8x3xbf16, #tpu.memory_space<vmem>>, %arg4: memref<8x1xf32, #tpu.memory_space<vmem>>, %arg5: memref<8x72xbf16, #tpu.memory_space<vmem>>, %arg6: memref<8x1xf32, #tpu.memory_space<vmem>>, %arg7: memref<1x8x64xbf16, #tpu.memory_space<vmem>>, %arg8: memref<1x8x64xbf16, #tpu.memory_space<vmem>>) attributes {dimension_semantics = [#tpu.dimension_semantics<parallel>], iteration_bounds = array<i64: 2>, scalar_prefetch = 0 : i64, scratch_operands = 0 : i64, tpu.core_type = #tpu.core_type<tc>, window_params = [{transform_indices = @transform_0, window_bounds = array<i64: 1, 3, 64>}, {transform_indices = @transform_1, window_bounds = array<i64: 1, 8, 64>}, {pipeline_mode = #tpu.pipeline_mode<synchronous>, transform_indices = @transform_2, window_bounds = array<i64: 8, 3>}, {pipeline_mode = #tpu.pipeline_mode<synchronous>, transform_indices = @transform_3, window_bounds = array<i64: 8, 1>}, {pipeline_mode = #tpu.pipeline_mode<synchronous>, transform_indices = @transform_4, window_bounds = array<i64: 8, 72>}, {pipeline_mode = #tpu.pipeline_mode<synchronous>, transform_indices = @transform_5, window_bounds = array<i64: 8, 1>}, {transform_indices = @transform_6, window_bounds = array<i64: 1, 8, 64>}, {transform_indices = @transform_7, window_bounds = array<i64: 1, 8, 64>}]} {
    %c0 = arith.constant 0 : index
    %c0_0 = arith.constant 0 : index
    %0 = vector.load %arg3[%c0, %c0_0] : memref<8x3xbf16, #tpu.memory_space<vmem>>, vector<8x3xbf16>
    %c0_1 = arith.constant 0 : index
    %c0_2 = arith.constant 0 : index
    %c0_3 = arith.constant 0 : index
    %1 = vector.load %arg1[%c0_1, %c0_2, %c0_3] : memref<1x3x64xbf16, #tpu.memory_space<vmem>>, vector<1x3x64xbf16>
    %2 = vector.shape_cast %1 : vector<1x3x64xbf16> to vector<3x64xbf16>
    %cst = arith.constant dense<0.000000e+00> : vector<8x64xf32>
    %3 = tpu.matmul %0, %2, %cst {dimension_numbers = #tpu.dot_dimension_numbers<[1], [0], [0], [1], [0, 0, 1, 1], [], []>} : vector<8x3xbf16>, vector<3x64xbf16>, vector<8x64xf32> -> vector<8x64xf32>
    %c0_4 = arith.constant 0 : index
    %c0_5 = arith.constant 0 : index
    %4 = vector.load %arg4[%c0_4, %c0_5] : memref<8x1xf32, #tpu.memory_space<vmem>>, vector<8x1xf32>
    %5 = vector.broadcast %4 : vector<8x1xf32> to vector<8x64xf32>
    %6 = arith.addf %3, %5 : vector<8x64xf32>
    %c0_6 = arith.constant 0 : index
    %c0_7 = arith.constant 0 : index
    %c0_8 = arith.constant 0 : index
    %7 = vector.load %arg2[%c0_6, %c0_7, %c0_8] : memref<1x8x64xbf16, #tpu.memory_space<vmem>>, vector<1x8x64xbf16>
    %8 = vector.shape_cast %7 : vector<1x8x64xbf16> to vector<8x64xbf16>
    %9 = arith.extf %8 : vector<8x64xbf16> to vector<8x64xf32>
    %10 = arith.addf %6, %9 : vector<8x64xf32>
    %11 = arith.truncf %10 : vector<8x64xf32> to vector<8x64xbf16>
    %c0_9 = arith.constant 0 : index
    %c0_10 = arith.constant 0 : index
    %c0_11 = arith.constant 0 : index
    %12 = vector.load %arg7[%c0_9, %c0_10, %c0_11] : memref<1x8x64xbf16, #tpu.memory_space<vmem>>, vector<1x8x64xbf16>
    %13 = vector.shape_cast %12 : vector<1x8x64xbf16> to vector<8x64xbf16>
    %14 = vector.shape_cast %11 : vector<8x64xbf16> to vector<1x8x64xbf16>
    tpu.vector_store %arg7[%c0_9, %c0_10, %c0_11], %14 {strides = array<i32>} : memref<1x8x64xbf16, #tpu.memory_space<vmem>>, vector<1x8x64xbf16>,
    %15 = tpu.iota {dimensions = array<i32: 1>} : vector<1x64xi32>
    %c8_i32 = arith.constant 8 : i32
    %c0_i32 = arith.constant 0 : i32
    %16 = arith.cmpi eq, %c8_i32, %c0_i32 : i32
    %c1_i32 = arith.constant 1 : i32
    %17 = arith.select %16, %c1_i32, %c8_i32 : i32
    %18 = vector.broadcast %17 : i32 to vector<1x64xi32>
    %19 = arith.remsi %15, %18 : vector<1x64xi32>
    %c0_i32_12 = arith.constant 0 : i32
    %20 = vector.broadcast %c0_i32_12 : i32 to vector<1x64xi32>
    %21 = arith.cmpi ne, %19, %20 : vector<1x64xi32>
    %c0_i32_13 = arith.constant 0 : i32
    %22 = vector.broadcast %c0_i32_13 : i32 to vector<1x64xi32>
    %23 = arith.cmpi slt, %19, %22 : vector<1x64xi32>
    %c0_i32_14 = arith.constant 0 : i32
    %24 = arith.cmpi slt, %17, %c0_i32_14 : i32
    %25 = vector.broadcast %24 : i1 to vector<1x64xi1>
    %26 = vector.broadcast %25 : vector<1x64xi1> to vector<1x64xi1>
    %27 = arith.xori %23, %26 : vector<1x64xi1>
    %28 = arith.andi %27, %21 : vector<1x64xi1>
    %29 = vector.broadcast %17 : i32 to vector<1x64xi32>
    %30 = arith.addi %19, %29 : vector<1x64xi32>
    %31 = arith.select %28, %30, %19 : vector<1x64xi1>, vector<1x64xi32>
    %cst_15 = arith.constant 0.000000e+00 : bf16
    %32 = vector.broadcast %cst_15 : bf16 to vector<8x64xbf16>
    %cst_16 = arith.constant 0.000000e+00 : bf16
    %33 = vector.broadcast %cst_16 : bf16 to vector<8x9xbf16>
    %34 = vector.extract_strided_slice %11 {offsets = [0, 0], sizes = [8, 55], strides = [1, 1]} : vector<8x64xbf16> to vector<8x55xbf16>
    %35 = tpu.concatenate %33, %34 in 1 : vector<8x9xbf16>, vector<8x55xbf16> -> vector<8x64xbf16>
    %c1_i32_17 = arith.constant 1 : i32
    %36 = vector.broadcast %c1_i32_17 : i32 to vector<1x64xi32>
    %37 = arith.cmpi sge, %31, %36 : vector<1x64xi32>
    %38 = vector.shape_cast %37 : vector<1x64xi1> to vector<1x64xi1>
    %39 = vector.broadcast %38 : vector<1x64xi1> to vector<8x64xi1>
    %40 = arith.select %39, %35, %32 : vector<8x64xi1>, vector<8x64xbf16>
    %cst_18 = arith.constant 0.000000e+00 : bf16
    %41 = vector.broadcast %cst_18 : bf16 to vector<8x8xbf16>
    %42 = vector.extract_strided_slice %11 {offsets = [0, 0], sizes = [8, 56], strides = [1, 1]} : vector<8x64xbf16> to vector<8x56xbf16>
    %43 = tpu.concatenate %41, %42 in 1 : vector<8x8xbf16>, vector<8x56xbf16> -> vector<8x64xbf16>
    %cst_19 = arith.constant 0.000000e+00 : bf16
    %44 = vector.broadcast %cst_19 : bf16 to vector<8x7xbf16>
    %45 = vector.extract_strided_slice %11 {offsets = [0, 0], sizes = [8, 57], strides = [1, 1]} : vector<8x64xbf16> to vector<8x57xbf16>
    %46 = tpu.concatenate %44, %45 in 1 : vector<8x7xbf16>, vector<8x57xbf16> -> vector<8x64xbf16>
    %c6_i32 = arith.constant 6 : i32
    %47 = vector.broadcast %c6_i32 : i32 to vector<1x64xi32>
    %48 = arith.cmpi sle, %31, %47 : vector<1x64xi32>
    %49 = vector.shape_cast %48 : vector<1x64xi1> to vector<1x64xi1>
    %50 = vector.broadcast %49 : vector<1x64xi1> to vector<8x64xi1>
    %51 = arith.select %50, %46, %32 : vector<8x64xi1>, vector<8x64xbf16>
    %cst_20 = arith.constant 0.000000e+00 : bf16
    %52 = vector.broadcast %cst_20 : bf16 to vector<8x1xbf16>
    %53 = vector.extract_strided_slice %11 {offsets = [0, 0], sizes = [8, 63], strides = [1, 1]} : vector<8x64xbf16> to vector<8x63xbf16>
    %54 = tpu.concatenate %52, %53 in 1 : vector<8x1xbf16>, vector<8x63xbf16> -> vector<8x64xbf16>
    %c1_i32_21 = arith.constant 1 : i32
    %55 = vector.broadcast %c1_i32_21 : i32 to vector<1x64xi32>
    %56 = arith.cmpi sge, %31, %55 : vector<1x64xi32>
    %57 = vector.shape_cast %56 : vector<1x64xi1> to vector<1x64xi1>
    %58 = vector.broadcast %57 : vector<1x64xi1> to vector<8x64xi1>
    %59 = arith.select %58, %54, %32 : vector<8x64xi1>, vector<8x64xbf16>
    %60 = vector.extract_strided_slice %11 {offsets = [0, 1], sizes = [8, 63], strides = [1, 1]} : vector<8x64xbf16> to vector<8x63xbf16>
    %cst_22 = arith.constant 0.000000e+00 : bf16
    %61 = vector.broadcast %cst_22 : bf16 to vector<8x1xbf16>
    %62 = tpu.concatenate %60, %61 in 1 : vector<8x63xbf16>, vector<8x1xbf16> -> vector<8x64xbf16>
    %c6_i32_23 = arith.constant 6 : i32
    %63 = vector.broadcast %c6_i32_23 : i32 to vector<1x64xi32>
    %64 = arith.cmpi sle, %31, %63 : vector<1x64xi32>
    %65 = vector.shape_cast %64 : vector<1x64xi1> to vector<1x64xi1>
    %66 = vector.broadcast %65 : vector<1x64xi1> to vector<8x64xi1>
    %67 = arith.select %66, %62, %32 : vector<8x64xi1>, vector<8x64xbf16>
    %68 = vector.extract_strided_slice %11 {offsets = [0, 7], sizes = [8, 57], strides = [1, 1]} : vector<8x64xbf16> to vector<8x57xbf16>
    %cst_24 = arith.constant 0.000000e+00 : bf16
    %69 = vector.broadcast %cst_24 : bf16 to vector<8x7xbf16>
    %70 = tpu.concatenate %68, %69 in 1 : vector<8x57xbf16>, vector<8x7xbf16> -> vector<8x64xbf16>
    %c1_i32_25 = arith.constant 1 : i32
    %71 = vector.broadcast %c1_i32_25 : i32 to vector<1x64xi32>
    %72 = arith.cmpi sge, %31, %71 : vector<1x64xi32>
    %73 = vector.shape_cast %72 : vector<1x64xi1> to vector<1x64xi1>
    %74 = vector.broadcast %73 : vector<1x64xi1> to vector<8x64xi1>
    %75 = arith.select %74, %70, %32 : vector<8x64xi1>, vector<8x64xbf16>
    %76 = vector.extract_strided_slice %11 {offsets = [0, 8], sizes = [8, 56], strides = [1, 1]} : vector<8x64xbf16> to vector<8x56xbf16>
    %cst_26 = arith.constant 0.000000e+00 : bf16
    %77 = vector.broadcast %cst_26 : bf16 to vector<8x8xbf16>
    %78 = tpu.concatenate %76, %77 in 1 : vector<8x56xbf16>, vector<8x8xbf16> -> vector<8x64xbf16>
    %79 = vector.extract_strided_slice %11 {offsets = [0, 9], sizes = [8, 55], strides = [1, 1]} : vector<8x64xbf16> to vector<8x55xbf16>
    %cst_27 = arith.constant 0.000000e+00 : bf16
    %80 = vector.broadcast %cst_27 : bf16 to vector<8x9xbf16>
    %81 = tpu.concatenate %79, %80 in 1 : vector<8x55xbf16>, vector<8x9xbf16> -> vector<8x64xbf16>
    %c6_i32_28 = arith.constant 6 : i32
    %82 = vector.broadcast %c6_i32_28 : i32 to vector<1x64xi32>
    %83 = arith.cmpi sle, %31, %82 : vector<1x64xi32>
    %84 = vector.shape_cast %83 : vector<1x64xi1> to vector<1x64xi1>
    %85 = vector.broadcast %84 : vector<1x64xi1> to vector<8x64xi1>
    %86 = arith.select %85, %81, %32 : vector<8x64xi1>, vector<8x64xbf16>
    %87 = tpu.concatenate %40, %43, %51, %59, %11, %67, %75, %78, %86 in 0 : vector<8x64xbf16>, vector<8x64xbf16>, vector<8x64xbf16>, vector<8x64xbf16>, vector<8x64xbf16>, vector<8x64xbf16>, vector<8x64xbf16>, vector<8x64xbf16>, vector<8x64xbf16> -> vector<72x64xbf16>
    %c0_29 = arith.constant 0 : index
    %c0_30 = arith.constant 0 : index
    %88 = vector.load %arg5[%c0_29, %c0_30] : memref<8x72xbf16, #tpu.memory_space<vmem>>, vector<8x72xbf16>
    %cst_31 = arith.constant dense<0.000000e+00> : vector<8x64xf32>
    %89 = tpu.matmul %88, %87, %cst_31 {dimension_numbers = #tpu.dot_dimension_numbers<[1], [0], [0], [1], [0, 0, 1, 1], [], []>} : vector<8x72xbf16>, vector<72x64xbf16>, vector<8x64xf32> -> vector<8x64xf32>
    %c0_32 = arith.constant 0 : index
    %c0_33 = arith.constant 0 : index
    %90 = vector.load %arg6[%c0_32, %c0_33] : memref<8x1xf32, #tpu.memory_space<vmem>>, vector<8x1xf32>
    %91 = vector.broadcast %90 : vector<8x1xf32> to vector<8x64xf32>
    %92 = arith.addf %89, %91 : vector<8x64xf32>
    %93 = arith.truncf %92 : vector<8x64xf32> to vector<8x64xbf16>
    %c0_34 = arith.constant 0 : index
    %c0_35 = arith.constant 0 : index
    %c0_36 = arith.constant 0 : index
    %94 = vector.load %arg8[%c0_34, %c0_35, %c0_36] : memref<1x8x64xbf16, #tpu.memory_space<vmem>>, vector<1x8x64xbf16>
    %95 = vector.shape_cast %94 : vector<1x8x64xbf16> to vector<8x64xbf16>
    %96 = vector.shape_cast %93 : vector<8x64xbf16> to vector<1x8x64xbf16>
    tpu.vector_store %arg8[%c0_34, %c0_35, %c0_36], %96 {strides = array<i32>} : memref<1x8x64xbf16, #tpu.memory_space<vmem>>, vector<1x8x64xbf16>,
    return
  }
  func.func @transform_0(%arg0: i32) -> (i32, i32, i32) {
    %c0_i32 = arith.constant 0 : i32
    %c0_i32_0 = arith.constant 0 : i32
    %c0_i32_1 = arith.constant 0 : i32
    return %arg0, %c0_i32, %c0_i32_0 : i32, i32, i32
  }
  func.func @transform_1(%arg0: i32) -> (i32, i32, i32) {
    %c0_i32 = arith.constant 0 : i32
    %c0_i32_0 = arith.constant 0 : i32
    %c0_i32_1 = arith.constant 0 : i32
    return %arg0, %c0_i32, %c0_i32_0 : i32, i32, i32
  }
  func.func @transform_2(%arg0: i32) -> (i32, i32) {
    %c0_i32 = arith.constant 0 : i32
    %c0_i32_0 = arith.constant 0 : i32
    %c0_i32_1 = arith.constant 0 : i32
    return %c0_i32, %c0_i32_0 : i32, i32
  }
  func.func @transform_3(%arg0: i32) -> (i32, i32) {
    %c0_i32 = arith.constant 0 : i32
    %c0_i32_0 = arith.constant 0 : i32
    %c0_i32_1 = arith.constant 0 : i32
    return %c0_i32, %c0_i32_0 : i32, i32
  }
  func.func @transform_4(%arg0: i32) -> (i32, i32) {
    %c0_i32 = arith.constant 0 : i32
    %c0_i32_0 = arith.constant 0 : i32
    %c0_i32_1 = arith.constant 0 : i32
    return %c0_i32, %c0_i32_0 : i32, i32
  }
  func.func @transform_5(%arg0: i32) -> (i32, i32) {
    %c0_i32 = arith.constant 0 : i32
    %c0_i32_0 = arith.constant 0 : i32
    %c0_i32_1 = arith.constant 0 : i32
    return %c0_i32, %c0_i32_0 : i32, i32
  }
  func.func @transform_6(%arg0: i32) -> (i32, i32, i32) {
    %c0_i32 = arith.constant 0 : i32
    %c0_i32_0 = arith.constant 0 : i32
    %c0_i32_1 = arith.constant 0 : i32
    return %arg0, %c0_i32, %c0_i32_0 : i32, i32, i32
  }
  func.func @transform_7(%arg0: i32) -> (i32, i32, i32) {
    %c0_i32 = arith.constant 0 : i32
    %c0_i32_0 = arith.constant 0 : i32
    %c0_i32_1 = arith.constant 0 : i32
    return %arg0, %c0_i32, %c0_i32_0 : i32, i32, i32
  }
}

module attributes {stable_mosaic.version = 11 : i64} {
  func.func @_fpn_level_kernel(%arg0: i32, %arg1: memref<1x3x16xbf16, #tpu.memory_space<vmem>>, %arg2: memref<1x8x16xbf16, #tpu.memory_space<vmem>>, %arg3: memref<8x3xbf16, #tpu.memory_space<vmem>>, %arg4: memref<8x1xf32, #tpu.memory_space<vmem>>, %arg5: memref<8x72xbf16, #tpu.memory_space<vmem>>, %arg6: memref<8x1xf32, #tpu.memory_space<vmem>>, %arg7: memref<1x8x16xbf16, #tpu.memory_space<vmem>>, %arg8: memref<1x8x16xbf16, #tpu.memory_space<vmem>>) attributes {dimension_semantics = [#tpu.dimension_semantics<parallel>], iteration_bounds = array<i64: 2>, scalar_prefetch = 0 : i64, scratch_operands = 0 : i64, tpu.core_type = #tpu.core_type<tc>, window_params = [{transform_indices = @transform_0, window_bounds = array<i64: 1, 3, 16>}, {transform_indices = @transform_1, window_bounds = array<i64: 1, 8, 16>}, {pipeline_mode = #tpu.pipeline_mode<synchronous>, transform_indices = @transform_2, window_bounds = array<i64: 8, 3>}, {pipeline_mode = #tpu.pipeline_mode<synchronous>, transform_indices = @transform_3, window_bounds = array<i64: 8, 1>}, {pipeline_mode = #tpu.pipeline_mode<synchronous>, transform_indices = @transform_4, window_bounds = array<i64: 8, 72>}, {pipeline_mode = #tpu.pipeline_mode<synchronous>, transform_indices = @transform_5, window_bounds = array<i64: 8, 1>}, {transform_indices = @transform_6, window_bounds = array<i64: 1, 8, 16>}, {transform_indices = @transform_7, window_bounds = array<i64: 1, 8, 16>}]} {
    %c0 = arith.constant 0 : index
    %c0_0 = arith.constant 0 : index
    %0 = vector.load %arg3[%c0, %c0_0] : memref<8x3xbf16, #tpu.memory_space<vmem>>, vector<8x3xbf16>
    %c0_1 = arith.constant 0 : index
    %c0_2 = arith.constant 0 : index
    %c0_3 = arith.constant 0 : index
    %1 = vector.load %arg1[%c0_1, %c0_2, %c0_3] : memref<1x3x16xbf16, #tpu.memory_space<vmem>>, vector<1x3x16xbf16>
    %2 = vector.shape_cast %1 : vector<1x3x16xbf16> to vector<3x16xbf16>
    %cst = arith.constant dense<0.000000e+00> : vector<8x16xf32>
    %3 = tpu.matmul %0, %2, %cst {dimension_numbers = #tpu.dot_dimension_numbers<[1], [0], [0], [1], [0, 0, 1, 1], [], []>} : vector<8x3xbf16>, vector<3x16xbf16>, vector<8x16xf32> -> vector<8x16xf32>
    %c0_4 = arith.constant 0 : index
    %c0_5 = arith.constant 0 : index
    %4 = vector.load %arg4[%c0_4, %c0_5] : memref<8x1xf32, #tpu.memory_space<vmem>>, vector<8x1xf32>
    %5 = vector.broadcast %4 : vector<8x1xf32> to vector<8x16xf32>
    %6 = arith.addf %3, %5 : vector<8x16xf32>
    %c0_6 = arith.constant 0 : index
    %c0_7 = arith.constant 0 : index
    %c0_8 = arith.constant 0 : index
    %7 = vector.load %arg2[%c0_6, %c0_7, %c0_8] : memref<1x8x16xbf16, #tpu.memory_space<vmem>>, vector<1x8x16xbf16>
    %8 = vector.shape_cast %7 : vector<1x8x16xbf16> to vector<8x16xbf16>
    %9 = arith.extf %8 : vector<8x16xbf16> to vector<8x16xf32>
    %10 = arith.addf %6, %9 : vector<8x16xf32>
    %11 = arith.truncf %10 : vector<8x16xf32> to vector<8x16xbf16>
    %c0_9 = arith.constant 0 : index
    %c0_10 = arith.constant 0 : index
    %c0_11 = arith.constant 0 : index
    %12 = vector.load %arg7[%c0_9, %c0_10, %c0_11] : memref<1x8x16xbf16, #tpu.memory_space<vmem>>, vector<1x8x16xbf16>
    %13 = vector.shape_cast %12 : vector<1x8x16xbf16> to vector<8x16xbf16>
    %14 = vector.shape_cast %11 : vector<8x16xbf16> to vector<1x8x16xbf16>
    tpu.vector_store %arg7[%c0_9, %c0_10, %c0_11], %14 {strides = array<i32>} : memref<1x8x16xbf16, #tpu.memory_space<vmem>>, vector<1x8x16xbf16>,
    %15 = tpu.iota {dimensions = array<i32: 1>} : vector<1x16xi32>
    %c4_i32 = arith.constant 4 : i32
    %c0_i32 = arith.constant 0 : i32
    %16 = arith.cmpi eq, %c4_i32, %c0_i32 : i32
    %c1_i32 = arith.constant 1 : i32
    %17 = arith.select %16, %c1_i32, %c4_i32 : i32
    %18 = vector.broadcast %17 : i32 to vector<1x16xi32>
    %19 = arith.remsi %15, %18 : vector<1x16xi32>
    %c0_i32_12 = arith.constant 0 : i32
    %20 = vector.broadcast %c0_i32_12 : i32 to vector<1x16xi32>
    %21 = arith.cmpi ne, %19, %20 : vector<1x16xi32>
    %c0_i32_13 = arith.constant 0 : i32
    %22 = vector.broadcast %c0_i32_13 : i32 to vector<1x16xi32>
    %23 = arith.cmpi slt, %19, %22 : vector<1x16xi32>
    %c0_i32_14 = arith.constant 0 : i32
    %24 = arith.cmpi slt, %17, %c0_i32_14 : i32
    %25 = vector.broadcast %24 : i1 to vector<1x16xi1>
    %26 = vector.broadcast %25 : vector<1x16xi1> to vector<1x16xi1>
    %27 = arith.xori %23, %26 : vector<1x16xi1>
    %28 = arith.andi %27, %21 : vector<1x16xi1>
    %29 = vector.broadcast %17 : i32 to vector<1x16xi32>
    %30 = arith.addi %19, %29 : vector<1x16xi32>
    %31 = arith.select %28, %30, %19 : vector<1x16xi1>, vector<1x16xi32>
    %cst_15 = arith.constant 0.000000e+00 : bf16
    %32 = vector.broadcast %cst_15 : bf16 to vector<8x16xbf16>
    %cst_16 = arith.constant 0.000000e+00 : bf16
    %33 = vector.broadcast %cst_16 : bf16 to vector<8x5xbf16>
    %34 = vector.extract_strided_slice %11 {offsets = [0, 0], sizes = [8, 11], strides = [1, 1]} : vector<8x16xbf16> to vector<8x11xbf16>
    %35 = tpu.concatenate %33, %34 in 1 : vector<8x5xbf16>, vector<8x11xbf16> -> vector<8x16xbf16>
    %c1_i32_17 = arith.constant 1 : i32
    %36 = vector.broadcast %c1_i32_17 : i32 to vector<1x16xi32>
    %37 = arith.cmpi sge, %31, %36 : vector<1x16xi32>
    %38 = vector.shape_cast %37 : vector<1x16xi1> to vector<1x16xi1>
    %39 = vector.broadcast %38 : vector<1x16xi1> to vector<8x16xi1>
    %40 = arith.select %39, %35, %32 : vector<8x16xi1>, vector<8x16xbf16>
    %cst_18 = arith.constant 0.000000e+00 : bf16
    %41 = vector.broadcast %cst_18 : bf16 to vector<8x4xbf16>
    %42 = vector.extract_strided_slice %11 {offsets = [0, 0], sizes = [8, 12], strides = [1, 1]} : vector<8x16xbf16> to vector<8x12xbf16>
    %43 = tpu.concatenate %41, %42 in 1 : vector<8x4xbf16>, vector<8x12xbf16> -> vector<8x16xbf16>
    %cst_19 = arith.constant 0.000000e+00 : bf16
    %44 = vector.broadcast %cst_19 : bf16 to vector<8x3xbf16>
    %45 = vector.extract_strided_slice %11 {offsets = [0, 0], sizes = [8, 13], strides = [1, 1]} : vector<8x16xbf16> to vector<8x13xbf16>
    %46 = tpu.concatenate %44, %45 in 1 : vector<8x3xbf16>, vector<8x13xbf16> -> vector<8x16xbf16>
    %c2_i32 = arith.constant 2 : i32
    %47 = vector.broadcast %c2_i32 : i32 to vector<1x16xi32>
    %48 = arith.cmpi sle, %31, %47 : vector<1x16xi32>
    %49 = vector.shape_cast %48 : vector<1x16xi1> to vector<1x16xi1>
    %50 = vector.broadcast %49 : vector<1x16xi1> to vector<8x16xi1>
    %51 = arith.select %50, %46, %32 : vector<8x16xi1>, vector<8x16xbf16>
    %cst_20 = arith.constant 0.000000e+00 : bf16
    %52 = vector.broadcast %cst_20 : bf16 to vector<8x1xbf16>
    %53 = vector.extract_strided_slice %11 {offsets = [0, 0], sizes = [8, 15], strides = [1, 1]} : vector<8x16xbf16> to vector<8x15xbf16>
    %54 = tpu.concatenate %52, %53 in 1 : vector<8x1xbf16>, vector<8x15xbf16> -> vector<8x16xbf16>
    %c1_i32_21 = arith.constant 1 : i32
    %55 = vector.broadcast %c1_i32_21 : i32 to vector<1x16xi32>
    %56 = arith.cmpi sge, %31, %55 : vector<1x16xi32>
    %57 = vector.shape_cast %56 : vector<1x16xi1> to vector<1x16xi1>
    %58 = vector.broadcast %57 : vector<1x16xi1> to vector<8x16xi1>
    %59 = arith.select %58, %54, %32 : vector<8x16xi1>, vector<8x16xbf16>
    %60 = vector.extract_strided_slice %11 {offsets = [0, 1], sizes = [8, 15], strides = [1, 1]} : vector<8x16xbf16> to vector<8x15xbf16>
    %cst_22 = arith.constant 0.000000e+00 : bf16
    %61 = vector.broadcast %cst_22 : bf16 to vector<8x1xbf16>
    %62 = tpu.concatenate %60, %61 in 1 : vector<8x15xbf16>, vector<8x1xbf16> -> vector<8x16xbf16>
    %c2_i32_23 = arith.constant 2 : i32
    %63 = vector.broadcast %c2_i32_23 : i32 to vector<1x16xi32>
    %64 = arith.cmpi sle, %31, %63 : vector<1x16xi32>
    %65 = vector.shape_cast %64 : vector<1x16xi1> to vector<1x16xi1>
    %66 = vector.broadcast %65 : vector<1x16xi1> to vector<8x16xi1>
    %67 = arith.select %66, %62, %32 : vector<8x16xi1>, vector<8x16xbf16>
    %68 = vector.extract_strided_slice %11 {offsets = [0, 3], sizes = [8, 13], strides = [1, 1]} : vector<8x16xbf16> to vector<8x13xbf16>
    %cst_24 = arith.constant 0.000000e+00 : bf16
    %69 = vector.broadcast %cst_24 : bf16 to vector<8x3xbf16>
    %70 = tpu.concatenate %68, %69 in 1 : vector<8x13xbf16>, vector<8x3xbf16> -> vector<8x16xbf16>
    %c1_i32_25 = arith.constant 1 : i32
    %71 = vector.broadcast %c1_i32_25 : i32 to vector<1x16xi32>
    %72 = arith.cmpi sge, %31, %71 : vector<1x16xi32>
    %73 = vector.shape_cast %72 : vector<1x16xi1> to vector<1x16xi1>
    %74 = vector.broadcast %73 : vector<1x16xi1> to vector<8x16xi1>
    %75 = arith.select %74, %70, %32 : vector<8x16xi1>, vector<8x16xbf16>
    %76 = vector.extract_strided_slice %11 {offsets = [0, 4], sizes = [8, 12], strides = [1, 1]} : vector<8x16xbf16> to vector<8x12xbf16>
    %cst_26 = arith.constant 0.000000e+00 : bf16
    %77 = vector.broadcast %cst_26 : bf16 to vector<8x4xbf16>
    %78 = tpu.concatenate %76, %77 in 1 : vector<8x12xbf16>, vector<8x4xbf16> -> vector<8x16xbf16>
    %79 = vector.extract_strided_slice %11 {offsets = [0, 5], sizes = [8, 11], strides = [1, 1]} : vector<8x16xbf16> to vector<8x11xbf16>
    %cst_27 = arith.constant 0.000000e+00 : bf16
    %80 = vector.broadcast %cst_27 : bf16 to vector<8x5xbf16>
    %81 = tpu.concatenate %79, %80 in 1 : vector<8x11xbf16>, vector<8x5xbf16> -> vector<8x16xbf16>
    %c2_i32_28 = arith.constant 2 : i32
    %82 = vector.broadcast %c2_i32_28 : i32 to vector<1x16xi32>
    %83 = arith.cmpi sle, %31, %82 : vector<1x16xi32>
    %84 = vector.shape_cast %83 : vector<1x16xi1> to vector<1x16xi1>
    %85 = vector.broadcast %84 : vector<1x16xi1> to vector<8x16xi1>
    %86 = arith.select %85, %81, %32 : vector<8x16xi1>, vector<8x16xbf16>
    %87 = tpu.concatenate %40, %43, %51, %59, %11, %67, %75, %78, %86 in 0 : vector<8x16xbf16>, vector<8x16xbf16>, vector<8x16xbf16>, vector<8x16xbf16>, vector<8x16xbf16>, vector<8x16xbf16>, vector<8x16xbf16>, vector<8x16xbf16>, vector<8x16xbf16> -> vector<72x16xbf16>
    %c0_29 = arith.constant 0 : index
    %c0_30 = arith.constant 0 : index
    %88 = vector.load %arg5[%c0_29, %c0_30] : memref<8x72xbf16, #tpu.memory_space<vmem>>, vector<8x72xbf16>
    %cst_31 = arith.constant dense<0.000000e+00> : vector<8x16xf32>
    %89 = tpu.matmul %88, %87, %cst_31 {dimension_numbers = #tpu.dot_dimension_numbers<[1], [0], [0], [1], [0, 0, 1, 1], [], []>} : vector<8x72xbf16>, vector<72x16xbf16>, vector<8x16xf32> -> vector<8x16xf32>
    %c0_32 = arith.constant 0 : index
    %c0_33 = arith.constant 0 : index
    %90 = vector.load %arg6[%c0_32, %c0_33] : memref<8x1xf32, #tpu.memory_space<vmem>>, vector<8x1xf32>
    %91 = vector.broadcast %90 : vector<8x1xf32> to vector<8x16xf32>
    %92 = arith.addf %89, %91 : vector<8x16xf32>
    %93 = arith.truncf %92 : vector<8x16xf32> to vector<8x16xbf16>
    %c0_34 = arith.constant 0 : index
    %c0_35 = arith.constant 0 : index
    %c0_36 = arith.constant 0 : index
    %94 = vector.load %arg8[%c0_34, %c0_35, %c0_36] : memref<1x8x16xbf16, #tpu.memory_space<vmem>>, vector<1x8x16xbf16>
    %95 = vector.shape_cast %94 : vector<1x8x16xbf16> to vector<8x16xbf16>
    %96 = vector.shape_cast %93 : vector<8x16xbf16> to vector<1x8x16xbf16>
    tpu.vector_store %arg8[%c0_34, %c0_35, %c0_36], %96 {strides = array<i32>} : memref<1x8x16xbf16, #tpu.memory_space<vmem>>, vector<1x8x16xbf16>,
    return
  }
  func.func @transform_0(%arg0: i32) -> (i32, i32, i32) {
    %c0_i32 = arith.constant 0 : i32
    %c0_i32_0 = arith.constant 0 : i32
    %c0_i32_1 = arith.constant 0 : i32
    return %arg0, %c0_i32, %c0_i32_0 : i32, i32, i32
  }
  func.func @transform_1(%arg0: i32) -> (i32, i32, i32) {
    %c0_i32 = arith.constant 0 : i32
    %c0_i32_0 = arith.constant 0 : i32
    %c0_i32_1 = arith.constant 0 : i32
    return %arg0, %c0_i32, %c0_i32_0 : i32, i32, i32
  }
  func.func @transform_2(%arg0: i32) -> (i32, i32) {
    %c0_i32 = arith.constant 0 : i32
    %c0_i32_0 = arith.constant 0 : i32
    %c0_i32_1 = arith.constant 0 : i32
    return %c0_i32, %c0_i32_0 : i32, i32
  }
  func.func @transform_3(%arg0: i32) -> (i32, i32) {
    %c0_i32 = arith.constant 0 : i32
    %c0_i32_0 = arith.constant 0 : i32
    %c0_i32_1 = arith.constant 0 : i32
    return %c0_i32, %c0_i32_0 : i32, i32
  }
  func.func @transform_4(%arg0: i32) -> (i32, i32) {
    %c0_i32 = arith.constant 0 : i32
    %c0_i32_0 = arith.constant 0 : i32
    %c0_i32_1 = arith.constant 0 : i32
    return %c0_i32, %c0_i32_0 : i32, i32
  }
  func.func @transform_5(%arg0: i32) -> (i32, i32) {
    %c0_i32 = arith.constant 0 : i32
    %c0_i32_0 = arith.constant 0 : i32
    %c0_i32_1 = arith.constant 0 : i32
    return %c0_i32, %c0_i32_0 : i32, i32
  }
  func.func @transform_6(%arg0: i32) -> (i32, i32, i32) {
    %c0_i32 = arith.constant 0 : i32
    %c0_i32_0 = arith.constant 0 : i32
    %c0_i32_1 = arith.constant 0 : i32
    return %arg0, %c0_i32, %c0_i32_0 : i32, i32, i32
  }
  func.func @transform_7(%arg0: i32) -> (i32, i32, i32) {
    %c0_i32 = arith.constant 0 : i32
    %c0_i32_0 = arith.constant 0 : i32
    %c0_i32_1 = arith.constant 0 : i32
    return %arg0, %c0_i32, %c0_i32_0 : i32, i32, i32
  }
}

module attributes {stable_mosaic.version = 11 : i64} {
  func.func @_fpn_level_kernel(%arg0: i32, %arg1: memref<1x3x256xbf16, #tpu.memory_space<vmem>>, %arg2: memref<1x8x256xbf16, #tpu.memory_space<vmem>>, %arg3: memref<8x3xbf16, #tpu.memory_space<vmem>>, %arg4: memref<8x1xf32, #tpu.memory_space<vmem>>, %arg5: memref<8x72xbf16, #tpu.memory_space<vmem>>, %arg6: memref<8x1xf32, #tpu.memory_space<vmem>>, %arg7: memref<1x8x256xbf16, #tpu.memory_space<vmem>>, %arg8: memref<1x8x256xbf16, #tpu.memory_space<vmem>>) attributes {dimension_semantics = [#tpu.dimension_semantics<parallel>], iteration_bounds = array<i64: 2>, scalar_prefetch = 0 : i64, scratch_operands = 0 : i64, tpu.core_type = #tpu.core_type<tc>, window_params = [{transform_indices = @transform_0, window_bounds = array<i64: 1, 3, 256>}, {transform_indices = @transform_1, window_bounds = array<i64: 1, 8, 256>}, {pipeline_mode = #tpu.pipeline_mode<synchronous>, transform_indices = @transform_2, window_bounds = array<i64: 8, 3>}, {pipeline_mode = #tpu.pipeline_mode<synchronous>, transform_indices = @transform_3, window_bounds = array<i64: 8, 1>}, {pipeline_mode = #tpu.pipeline_mode<synchronous>, transform_indices = @transform_4, window_bounds = array<i64: 8, 72>}, {pipeline_mode = #tpu.pipeline_mode<synchronous>, transform_indices = @transform_5, window_bounds = array<i64: 8, 1>}, {transform_indices = @transform_6, window_bounds = array<i64: 1, 8, 256>}, {transform_indices = @transform_7, window_bounds = array<i64: 1, 8, 256>}]} {
    %c0 = arith.constant 0 : index
    %c0_0 = arith.constant 0 : index
    %0 = vector.load %arg3[%c0, %c0_0] : memref<8x3xbf16, #tpu.memory_space<vmem>>, vector<8x3xbf16>
    %c0_1 = arith.constant 0 : index
    %c0_2 = arith.constant 0 : index
    %c0_3 = arith.constant 0 : index
    %1 = vector.load %arg1[%c0_1, %c0_2, %c0_3] : memref<1x3x256xbf16, #tpu.memory_space<vmem>>, vector<1x3x256xbf16>
    %2 = vector.shape_cast %1 : vector<1x3x256xbf16> to vector<3x256xbf16>
    %cst = arith.constant dense<0.000000e+00> : vector<8x256xf32>
    %3 = tpu.matmul %0, %2, %cst {dimension_numbers = #tpu.dot_dimension_numbers<[1], [0], [0], [1], [0, 0, 1, 1], [], []>} : vector<8x3xbf16>, vector<3x256xbf16>, vector<8x256xf32> -> vector<8x256xf32>
    %c0_4 = arith.constant 0 : index
    %c0_5 = arith.constant 0 : index
    %4 = vector.load %arg4[%c0_4, %c0_5] : memref<8x1xf32, #tpu.memory_space<vmem>>, vector<8x1xf32>
    %5 = vector.broadcast %4 : vector<8x1xf32> to vector<8x256xf32>
    %6 = arith.addf %3, %5 : vector<8x256xf32>
    %c0_6 = arith.constant 0 : index
    %c0_7 = arith.constant 0 : index
    %c0_8 = arith.constant 0 : index
    %7 = vector.load %arg2[%c0_6, %c0_7, %c0_8] : memref<1x8x256xbf16, #tpu.memory_space<vmem>>, vector<1x8x256xbf16>
    %8 = vector.shape_cast %7 : vector<1x8x256xbf16> to vector<8x256xbf16>
    %9 = arith.extf %8 : vector<8x256xbf16> to vector<8x256xf32>
    %10 = arith.addf %6, %9 : vector<8x256xf32>
    %11 = arith.truncf %10 : vector<8x256xf32> to vector<8x256xbf16>
    %c0_9 = arith.constant 0 : index
    %c0_10 = arith.constant 0 : index
    %c0_11 = arith.constant 0 : index
    %12 = vector.load %arg7[%c0_9, %c0_10, %c0_11] : memref<1x8x256xbf16, #tpu.memory_space<vmem>>, vector<1x8x256xbf16>
    %13 = vector.shape_cast %12 : vector<1x8x256xbf16> to vector<8x256xbf16>
    %14 = vector.shape_cast %11 : vector<8x256xbf16> to vector<1x8x256xbf16>
    tpu.vector_store %arg7[%c0_9, %c0_10, %c0_11], %14 {strides = array<i32>} : memref<1x8x256xbf16, #tpu.memory_space<vmem>>, vector<1x8x256xbf16>,
    %15 = tpu.iota {dimensions = array<i32: 1>} : vector<1x256xi32>
    %c16_i32 = arith.constant 16 : i32
    %c0_i32 = arith.constant 0 : i32
    %16 = arith.cmpi eq, %c16_i32, %c0_i32 : i32
    %c1_i32 = arith.constant 1 : i32
    %17 = arith.select %16, %c1_i32, %c16_i32 : i32
    %18 = vector.broadcast %17 : i32 to vector<1x256xi32>
    %19 = arith.remsi %15, %18 : vector<1x256xi32>
    %c0_i32_12 = arith.constant 0 : i32
    %20 = vector.broadcast %c0_i32_12 : i32 to vector<1x256xi32>
    %21 = arith.cmpi ne, %19, %20 : vector<1x256xi32>
    %c0_i32_13 = arith.constant 0 : i32
    %22 = vector.broadcast %c0_i32_13 : i32 to vector<1x256xi32>
    %23 = arith.cmpi slt, %19, %22 : vector<1x256xi32>
    %c0_i32_14 = arith.constant 0 : i32
    %24 = arith.cmpi slt, %17, %c0_i32_14 : i32
    %25 = vector.broadcast %24 : i1 to vector<1x256xi1>
    %26 = vector.broadcast %25 : vector<1x256xi1> to vector<1x256xi1>
    %27 = arith.xori %23, %26 : vector<1x256xi1>
    %28 = arith.andi %27, %21 : vector<1x256xi1>
    %29 = vector.broadcast %17 : i32 to vector<1x256xi32>
    %30 = arith.addi %19, %29 : vector<1x256xi32>
    %31 = arith.select %28, %30, %19 : vector<1x256xi1>, vector<1x256xi32>
    %cst_15 = arith.constant 0.000000e+00 : bf16
    %32 = vector.broadcast %cst_15 : bf16 to vector<8x256xbf16>
    %cst_16 = arith.constant 0.000000e+00 : bf16
    %33 = vector.broadcast %cst_16 : bf16 to vector<8x17xbf16>
    %34 = vector.extract_strided_slice %11 {offsets = [0, 0], sizes = [8, 239], strides = [1, 1]} : vector<8x256xbf16> to vector<8x239xbf16>
    %35 = tpu.concatenate %33, %34 in 1 : vector<8x17xbf16>, vector<8x239xbf16> -> vector<8x256xbf16>
    %c1_i32_17 = arith.constant 1 : i32
    %36 = vector.broadcast %c1_i32_17 : i32 to vector<1x256xi32>
    %37 = arith.cmpi sge, %31, %36 : vector<1x256xi32>
    %38 = vector.shape_cast %37 : vector<1x256xi1> to vector<1x256xi1>
    %39 = vector.broadcast %38 : vector<1x256xi1> to vector<8x256xi1>
    %40 = arith.select %39, %35, %32 : vector<8x256xi1>, vector<8x256xbf16>
    %cst_18 = arith.constant 0.000000e+00 : bf16
    %41 = vector.broadcast %cst_18 : bf16 to vector<8x16xbf16>
    %42 = vector.extract_strided_slice %11 {offsets = [0, 0], sizes = [8, 240], strides = [1, 1]} : vector<8x256xbf16> to vector<8x240xbf16>
    %43 = tpu.concatenate %41, %42 in 1 : vector<8x16xbf16>, vector<8x240xbf16> -> vector<8x256xbf16>
    %cst_19 = arith.constant 0.000000e+00 : bf16
    %44 = vector.broadcast %cst_19 : bf16 to vector<8x15xbf16>
    %45 = vector.extract_strided_slice %11 {offsets = [0, 0], sizes = [8, 241], strides = [1, 1]} : vector<8x256xbf16> to vector<8x241xbf16>
    %46 = tpu.concatenate %44, %45 in 1 : vector<8x15xbf16>, vector<8x241xbf16> -> vector<8x256xbf16>
    %c14_i32 = arith.constant 14 : i32
    %47 = vector.broadcast %c14_i32 : i32 to vector<1x256xi32>
    %48 = arith.cmpi sle, %31, %47 : vector<1x256xi32>
    %49 = vector.shape_cast %48 : vector<1x256xi1> to vector<1x256xi1>
    %50 = vector.broadcast %49 : vector<1x256xi1> to vector<8x256xi1>
    %51 = arith.select %50, %46, %32 : vector<8x256xi1>, vector<8x256xbf16>
    %cst_20 = arith.constant 0.000000e+00 : bf16
    %52 = vector.broadcast %cst_20 : bf16 to vector<8x1xbf16>
    %53 = vector.extract_strided_slice %11 {offsets = [0, 0], sizes = [8, 255], strides = [1, 1]} : vector<8x256xbf16> to vector<8x255xbf16>
    %54 = tpu.concatenate %52, %53 in 1 : vector<8x1xbf16>, vector<8x255xbf16> -> vector<8x256xbf16>
    %c1_i32_21 = arith.constant 1 : i32
    %55 = vector.broadcast %c1_i32_21 : i32 to vector<1x256xi32>
    %56 = arith.cmpi sge, %31, %55 : vector<1x256xi32>
    %57 = vector.shape_cast %56 : vector<1x256xi1> to vector<1x256xi1>
    %58 = vector.broadcast %57 : vector<1x256xi1> to vector<8x256xi1>
    %59 = arith.select %58, %54, %32 : vector<8x256xi1>, vector<8x256xbf16>
    %60 = vector.extract_strided_slice %11 {offsets = [0, 1], sizes = [8, 255], strides = [1, 1]} : vector<8x256xbf16> to vector<8x255xbf16>
    %cst_22 = arith.constant 0.000000e+00 : bf16
    %61 = vector.broadcast %cst_22 : bf16 to vector<8x1xbf16>
    %62 = tpu.concatenate %60, %61 in 1 : vector<8x255xbf16>, vector<8x1xbf16> -> vector<8x256xbf16>
    %c14_i32_23 = arith.constant 14 : i32
    %63 = vector.broadcast %c14_i32_23 : i32 to vector<1x256xi32>
    %64 = arith.cmpi sle, %31, %63 : vector<1x256xi32>
    %65 = vector.shape_cast %64 : vector<1x256xi1> to vector<1x256xi1>
    %66 = vector.broadcast %65 : vector<1x256xi1> to vector<8x256xi1>
    %67 = arith.select %66, %62, %32 : vector<8x256xi1>, vector<8x256xbf16>
    %68 = vector.extract_strided_slice %11 {offsets = [0, 15], sizes = [8, 241], strides = [1, 1]} : vector<8x256xbf16> to vector<8x241xbf16>
    %cst_24 = arith.constant 0.000000e+00 : bf16
    %69 = vector.broadcast %cst_24 : bf16 to vector<8x15xbf16>
    %70 = tpu.concatenate %68, %69 in 1 : vector<8x241xbf16>, vector<8x15xbf16> -> vector<8x256xbf16>
    %c1_i32_25 = arith.constant 1 : i32
    %71 = vector.broadcast %c1_i32_25 : i32 to vector<1x256xi32>
    %72 = arith.cmpi sge, %31, %71 : vector<1x256xi32>
    %73 = vector.shape_cast %72 : vector<1x256xi1> to vector<1x256xi1>
    %74 = vector.broadcast %73 : vector<1x256xi1> to vector<8x256xi1>
    %75 = arith.select %74, %70, %32 : vector<8x256xi1>, vector<8x256xbf16>
    %76 = vector.extract_strided_slice %11 {offsets = [0, 16], sizes = [8, 240], strides = [1, 1]} : vector<8x256xbf16> to vector<8x240xbf16>
    %cst_26 = arith.constant 0.000000e+00 : bf16
    %77 = vector.broadcast %cst_26 : bf16 to vector<8x16xbf16>
    %78 = tpu.concatenate %76, %77 in 1 : vector<8x240xbf16>, vector<8x16xbf16> -> vector<8x256xbf16>
    %79 = vector.extract_strided_slice %11 {offsets = [0, 17], sizes = [8, 239], strides = [1, 1]} : vector<8x256xbf16> to vector<8x239xbf16>
    %cst_27 = arith.constant 0.000000e+00 : bf16
    %80 = vector.broadcast %cst_27 : bf16 to vector<8x17xbf16>
    %81 = tpu.concatenate %79, %80 in 1 : vector<8x239xbf16>, vector<8x17xbf16> -> vector<8x256xbf16>
    %c14_i32_28 = arith.constant 14 : i32
    %82 = vector.broadcast %c14_i32_28 : i32 to vector<1x256xi32>
    %83 = arith.cmpi sle, %31, %82 : vector<1x256xi32>
    %84 = vector.shape_cast %83 : vector<1x256xi1> to vector<1x256xi1>
    %85 = vector.broadcast %84 : vector<1x256xi1> to vector<8x256xi1>
    %86 = arith.select %85, %81, %32 : vector<8x256xi1>, vector<8x256xbf16>
    %87 = tpu.concatenate %40, %43, %51, %59, %11, %67, %75, %78, %86 in 0 : vector<8x256xbf16>, vector<8x256xbf16>, vector<8x256xbf16>, vector<8x256xbf16>, vector<8x256xbf16>, vector<8x256xbf16>, vector<8x256xbf16>, vector<8x256xbf16>, vector<8x256xbf16> -> vector<72x256xbf16>
    %c0_29 = arith.constant 0 : index
    %c0_30 = arith.constant 0 : index
    %88 = vector.load %arg5[%c0_29, %c0_30] : memref<8x72xbf16, #tpu.memory_space<vmem>>, vector<8x72xbf16>
    %cst_31 = arith.constant dense<0.000000e+00> : vector<8x256xf32>
    %89 = tpu.matmul %88, %87, %cst_31 {dimension_numbers = #tpu.dot_dimension_numbers<[1], [0], [0], [1], [0, 0, 1, 1], [], []>} : vector<8x72xbf16>, vector<72x256xbf16>, vector<8x256xf32> -> vector<8x256xf32>
    %c0_32 = arith.constant 0 : index
    %c0_33 = arith.constant 0 : index
    %90 = vector.load %arg6[%c0_32, %c0_33] : memref<8x1xf32, #tpu.memory_space<vmem>>, vector<8x1xf32>
    %91 = vector.broadcast %90 : vector<8x1xf32> to vector<8x256xf32>
    %92 = arith.addf %89, %91 : vector<8x256xf32>
    %93 = arith.truncf %92 : vector<8x256xf32> to vector<8x256xbf16>
    %c0_34 = arith.constant 0 : index
    %c0_35 = arith.constant 0 : index
    %c0_36 = arith.constant 0 : index
    %94 = vector.load %arg8[%c0_34, %c0_35, %c0_36] : memref<1x8x256xbf16, #tpu.memory_space<vmem>>, vector<1x8x256xbf16>
    %95 = vector.shape_cast %94 : vector<1x8x256xbf16> to vector<8x256xbf16>
    %96 = vector.shape_cast %93 : vector<8x256xbf16> to vector<1x8x256xbf16>
    tpu.vector_store %arg8[%c0_34, %c0_35, %c0_36], %96 {strides = array<i32>} : memref<1x8x256xbf16, #tpu.memory_space<vmem>>, vector<1x8x256xbf16>,
    return
  }
  func.func @transform_0(%arg0: i32) -> (i32, i32, i32) {
    %c0_i32 = arith.constant 0 : i32
    %c0_i32_0 = arith.constant 0 : i32
    %c0_i32_1 = arith.constant 0 : i32
    return %arg0, %c0_i32, %c0_i32_0 : i32, i32, i32
  }
  func.func @transform_1(%arg0: i32) -> (i32, i32, i32) {
    %c0_i32 = arith.constant 0 : i32
    %c0_i32_0 = arith.constant 0 : i32
    %c0_i32_1 = arith.constant 0 : i32
    return %arg0, %c0_i32, %c0_i32_0 : i32, i32, i32
  }
  func.func @transform_2(%arg0: i32) -> (i32, i32) {
    %c0_i32 = arith.constant 0 : i32
    %c0_i32_0 = arith.constant 0 : i32
    %c0_i32_1 = arith.constant 0 : i32
    return %c0_i32, %c0_i32_0 : i32, i32
  }
  func.func @transform_3(%arg0: i32) -> (i32, i32) {
    %c0_i32 = arith.constant 0 : i32
    %c0_i32_0 = arith.constant 0 : i32
    %c0_i32_1 = arith.constant 0 : i32
    return %c0_i32, %c0_i32_0 : i32, i32
  }
  func.func @transform_4(%arg0: i32) -> (i32, i32) {
    %c0_i32 = arith.constant 0 : i32
    %c0_i32_0 = arith.constant 0 : i32
    %c0_i32_1 = arith.constant 0 : i32
    return %c0_i32, %c0_i32_0 : i32, i32
  }
  func.func @transform_5(%arg0: i32) -> (i32, i32) {
    %c0_i32 = arith.constant 0 : i32
    %c0_i32_0 = arith.constant 0 : i32
    %c0_i32_1 = arith.constant 0 : i32
    return %c0_i32, %c0_i32_0 : i32, i32
  }
  func.func @transform_6(%arg0: i32) -> (i32, i32, i32) {
    %c0_i32 = arith.constant 0 : i32
    %c0_i32_0 = arith.constant 0 : i32
    %c0_i32_1 = arith.constant 0 : i32
    return %arg0, %c0_i32, %c0_i32_0 : i32, i32, i32
  }
  func.func @transform_7(%arg0: i32) -> (i32, i32, i32) {
    %c0_i32 = arith.constant 0 : i32
    %c0_i32_0 = arith.constant 0 : i32
    %c0_i32_1 = arith.constant 0 : i32
    return %arg0, %c0_i32, %c0_i32_0 : i32, i32, i32
  }
}

module attributes {stable_mosaic.version = 11 : i64} {
  func.func @_upscale_kernel(%arg0: i32, %arg1: memref<1x8x4xbf16, #tpu.memory_space<vmem>>, %arg2: memref<32x8xbf16, #tpu.memory_space<vmem>>, %arg3: memref<32x1xf32, #tpu.memory_space<vmem>>, %arg4: memref<1x8x16xbf16, #tpu.memory_space<vmem>>, %arg5: memref<32x4xf32, #tpu.memory_space<vmem>>) attributes {dimension_semantics = [#tpu.dimension_semantics<parallel>], iteration_bounds = array<i64: 2>, scalar_prefetch = 0 : i64, scratch_operands = 1 : i64, tpu.core_type = #tpu.core_type<tc>, window_params = [{transform_indices = @transform_0, window_bounds = array<i64: 1, 8, 4>}, {pipeline_mode = #tpu.pipeline_mode<synchronous>, transform_indices = @transform_1, window_bounds = array<i64: 32, 8>}, {pipeline_mode = #tpu.pipeline_mode<synchronous>, transform_indices = @transform_2, window_bounds = array<i64: 32, 1>}, {transform_indices = @transform_3, window_bounds = array<i64: 1, 8, 16>}]} {
    %c0 = arith.constant 0 : index
    %c0_0 = arith.constant 0 : index
    %0 = vector.load %arg2[%c0, %c0_0] : memref<32x8xbf16, #tpu.memory_space<vmem>>, vector<32x8xbf16>
    %c0_1 = arith.constant 0 : index
    %c0_2 = arith.constant 0 : index
    %c0_3 = arith.constant 0 : index
    %1 = vector.load %arg1[%c0_1, %c0_2, %c0_3] : memref<1x8x4xbf16, #tpu.memory_space<vmem>>, vector<1x8x4xbf16>
    %2 = vector.shape_cast %1 : vector<1x8x4xbf16> to vector<8x4xbf16>
    %cst = arith.constant dense<0.000000e+00> : vector<32x4xf32>
    %3 = tpu.matmul %0, %2, %cst {dimension_numbers = #tpu.dot_dimension_numbers<[1], [0], [0], [1], [0, 0, 1, 1], [], []>} : vector<32x8xbf16>, vector<8x4xbf16>, vector<32x4xf32> -> vector<32x4xf32>
    %c0_4 = arith.constant 0 : index
    %c0_5 = arith.constant 0 : index
    %4 = vector.load %arg3[%c0_4, %c0_5] : memref<32x1xf32, #tpu.memory_space<vmem>>, vector<32x1xf32>
    %5 = vector.broadcast %4 : vector<32x1xf32> to vector<32x4xf32>
    %6 = arith.addf %3, %5 : vector<32x4xf32>
    %c0_6 = arith.constant 0 : index
    %c0_7 = arith.constant 0 : index
    %7 = vector.load %arg5[%c0_6, %c0_7] : memref<32x4xf32, #tpu.memory_space<vmem>>, vector<32x4xf32>
    tpu.vector_store %arg5[%c0_6, %c0_7], %6 {strides = array<i32>} : memref<32x4xf32, #tpu.memory_space<vmem>>, vector<32x4xf32>,
    %cst_8 = arith.constant 0.000000e+00 : f32
    %8 = vector.broadcast %cst_8 : f32 to vector<8x1xf32>
    %c0_9 = arith.constant 0 : index
    %c0_10 = arith.constant 0 : index
    %9 = vector.load %arg5[%c0_9, %c0_10] : memref<32x4xf32, #tpu.memory_space<vmem>>, vector<8x4xf32>
    %cst_11 = arith.constant dense<0.000000e+00> : vector<8xf32>
    %10 = vector.multi_reduction <add>, %9, %cst_11 [1] : vector<8x4xf32> to vector<8xf32>
    %11 = vector.shape_cast %10 : vector<8xf32> to vector<8x1xf32>
    %12 = arith.addf %8, %11 : vector<8x1xf32>
    %c8 = arith.constant 8 : index
    %c0_12 = arith.constant 0 : index
    %13 = vector.load %arg5[%c8, %c0_12] : memref<32x4xf32, #tpu.memory_space<vmem>>, vector<8x4xf32>
    %cst_13 = arith.constant dense<0.000000e+00> : vector<8xf32>
    %14 = vector.multi_reduction <add>, %13, %cst_13 [1] : vector<8x4xf32> to vector<8xf32>
    %15 = vector.shape_cast %14 : vector<8xf32> to vector<8x1xf32>
    %16 = arith.addf %12, %15 : vector<8x1xf32>
    %c16 = arith.constant 16 : index
    %c0_14 = arith.constant 0 : index
    %17 = vector.load %arg5[%c16, %c0_14] : memref<32x4xf32, #tpu.memory_space<vmem>>, vector<8x4xf32>
    %cst_15 = arith.constant dense<0.000000e+00> : vector<8xf32>
    %18 = vector.multi_reduction <add>, %17, %cst_15 [1] : vector<8x4xf32> to vector<8xf32>
    %19 = vector.shape_cast %18 : vector<8xf32> to vector<8x1xf32>
    %20 = arith.addf %16, %19 : vector<8x1xf32>
    %c24 = arith.constant 24 : index
    %c0_16 = arith.constant 0 : index
    %21 = vector.load %arg5[%c24, %c0_16] : memref<32x4xf32, #tpu.memory_space<vmem>>, vector<8x4xf32>
    %cst_17 = arith.constant dense<0.000000e+00> : vector<8xf32>
    %22 = vector.multi_reduction <add>, %21, %cst_17 [1] : vector<8x4xf32> to vector<8xf32>
    %23 = vector.shape_cast %22 : vector<8xf32> to vector<8x1xf32>
    %24 = arith.addf %20, %23 : vector<8x1xf32>
    %cst_18 = arith.constant 6.250000e-02 : f32
    %25 = vector.broadcast %cst_18 : f32 to vector<8x1xf32>
    %26 = arith.mulf %24, %25 : vector<8x1xf32>
    %cst_19 = arith.constant 0.000000e+00 : f32
    %27 = vector.broadcast %cst_19 : f32 to vector<8x1xf32>
    %c0_20 = arith.constant 0 : index
    %c0_21 = arith.constant 0 : index
    %28 = vector.load %arg5[%c0_20, %c0_21] : memref<32x4xf32, #tpu.memory_space<vmem>>, vector<8x4xf32>
    %29 = vector.broadcast %26 : vector<8x1xf32> to vector<8x4xf32>
    %30 = arith.subf %28, %29 : vector<8x4xf32>
    %c0_22 = arith.constant 0 : index
    %c0_23 = arith.constant 0 : index
    %31 = vector.load %arg5[%c0_22, %c0_23] : memref<32x4xf32, #tpu.memory_space<vmem>>, vector<8x4xf32>
    tpu.vector_store %arg5[%c0_22, %c0_23], %30 {strides = array<i32>} : memref<32x4xf32, #tpu.memory_space<vmem>>, vector<8x4xf32>,
    %32 = arith.mulf %30, %30 : vector<8x4xf32>
    %cst_24 = arith.constant dense<0.000000e+00> : vector<8xf32>
    %33 = vector.multi_reduction <add>, %32, %cst_24 [1] : vector<8x4xf32> to vector<8xf32>
    %34 = vector.shape_cast %33 : vector<8xf32> to vector<8x1xf32>
    %35 = arith.addf %27, %34 : vector<8x1xf32>
    %c8_25 = arith.constant 8 : index
    %c0_26 = arith.constant 0 : index
    %36 = vector.load %arg5[%c8_25, %c0_26] : memref<32x4xf32, #tpu.memory_space<vmem>>, vector<8x4xf32>
    %37 = vector.broadcast %26 : vector<8x1xf32> to vector<8x4xf32>
    %38 = arith.subf %36, %37 : vector<8x4xf32>
    %c8_27 = arith.constant 8 : index
    %c0_28 = arith.constant 0 : index
    %39 = vector.load %arg5[%c8_27, %c0_28] : memref<32x4xf32, #tpu.memory_space<vmem>>, vector<8x4xf32>
    tpu.vector_store %arg5[%c8_27, %c0_28], %38 {strides = array<i32>} : memref<32x4xf32, #tpu.memory_space<vmem>>, vector<8x4xf32>,
    %40 = arith.mulf %38, %38 : vector<8x4xf32>
    %cst_29 = arith.constant dense<0.000000e+00> : vector<8xf32>
    %41 = vector.multi_reduction <add>, %40, %cst_29 [1] : vector<8x4xf32> to vector<8xf32>
    %42 = vector.shape_cast %41 : vector<8xf32> to vector<8x1xf32>
    %43 = arith.addf %35, %42 : vector<8x1xf32>
    %c16_30 = arith.constant 16 : index
    %c0_31 = arith.constant 0 : index
    %44 = vector.load %arg5[%c16_30, %c0_31] : memref<32x4xf32, #tpu.memory_space<vmem>>, vector<8x4xf32>
    %45 = vector.broadcast %26 : vector<8x1xf32> to vector<8x4xf32>
    %46 = arith.subf %44, %45 : vector<8x4xf32>
    %c16_32 = arith.constant 16 : index
    %c0_33 = arith.constant 0 : index
    %47 = vector.load %arg5[%c16_32, %c0_33] : memref<32x4xf32, #tpu.memory_space<vmem>>, vector<8x4xf32>
    tpu.vector_store %arg5[%c16_32, %c0_33], %46 {strides = array<i32>} : memref<32x4xf32, #tpu.memory_space<vmem>>, vector<8x4xf32>,
    %48 = arith.mulf %46, %46 : vector<8x4xf32>
    %cst_34 = arith.constant dense<0.000000e+00> : vector<8xf32>
    %49 = vector.multi_reduction <add>, %48, %cst_34 [1] : vector<8x4xf32> to vector<8xf32>
    %50 = vector.shape_cast %49 : vector<8xf32> to vector<8x1xf32>
    %51 = arith.addf %43, %50 : vector<8x1xf32>
    %c24_35 = arith.constant 24 : index
    %c0_36 = arith.constant 0 : index
    %52 = vector.load %arg5[%c24_35, %c0_36] : memref<32x4xf32, #tpu.memory_space<vmem>>, vector<8x4xf32>
    %53 = vector.broadcast %26 : vector<8x1xf32> to vector<8x4xf32>
    %54 = arith.subf %52, %53 : vector<8x4xf32>
    %c24_37 = arith.constant 24 : index
    %c0_38 = arith.constant 0 : index
    %55 = vector.load %arg5[%c24_37, %c0_38] : memref<32x4xf32, #tpu.memory_space<vmem>>, vector<8x4xf32>
    tpu.vector_store %arg5[%c24_37, %c0_38], %54 {strides = array<i32>} : memref<32x4xf32, #tpu.memory_space<vmem>>, vector<8x4xf32>,
    %56 = arith.mulf %54, %54 : vector<8x4xf32>
    %cst_39 = arith.constant dense<0.000000e+00> : vector<8xf32>
    %57 = vector.multi_reduction <add>, %56, %cst_39 [1] : vector<8x4xf32> to vector<8xf32>
    %58 = vector.shape_cast %57 : vector<8xf32> to vector<8x1xf32>
    %59 = arith.addf %51, %58 : vector<8x1xf32>
    %cst_40 = arith.constant 6.250000e-02 : f32
    %60 = vector.broadcast %cst_40 : f32 to vector<8x1xf32>
    %61 = arith.mulf %59, %60 : vector<8x1xf32>
    %cst_41 = arith.constant 9.99999974E-6 : f32
    %62 = vector.broadcast %cst_41 : f32 to vector<8x1xf32>
    %63 = arith.addf %61, %62 : vector<8x1xf32>
    %64 = math.rsqrt %63 : vector<8x1xf32>
    %c0_42 = arith.constant 0 : index
    %c0_43 = arith.constant 0 : index
    %65 = vector.load %arg5[%c0_42, %c0_43] : memref<32x4xf32, #tpu.memory_space<vmem>>, vector<8x4xf32>
    %66 = vector.broadcast %64 : vector<8x1xf32> to vector<8x4xf32>
    %67 = arith.mulf %65, %66 : vector<8x4xf32>
    %cst_44 = arith.constant 0.000000e+00 : f32
    %68 = vector.broadcast %cst_44 : f32 to vector<8x4xf32>
    %69 = arith.maximumf %67, %68 : vector<8x4xf32>
    %70 = arith.truncf %69 : vector<8x4xf32> to vector<8x4xbf16>
    %c0_45 = arith.constant 0 : index
    %c0_46 = arith.constant 0 : index
    %c0_47 = arith.constant 0 : index
    %71 = vector.load %arg4[%c0_45, %c0_46, %c0_47] : memref<1x8x16xbf16, #tpu.memory_space<vmem>>, vector<1x8x4xbf16>
    %72 = vector.shape_cast %71 : vector<1x8x4xbf16> to vector<8x4xbf16>
    %73 = vector.shape_cast %70 : vector<8x4xbf16> to vector<1x8x4xbf16>
    tpu.vector_store %arg4[%c0_45, %c0_46, %c0_47], %73 {strides = array<i32>} : memref<1x8x16xbf16, #tpu.memory_space<vmem>>, vector<1x8x4xbf16>,
    %c8_48 = arith.constant 8 : index
    %c0_49 = arith.constant 0 : index
    %74 = vector.load %arg5[%c8_48, %c0_49] : memref<32x4xf32, #tpu.memory_space<vmem>>, vector<8x4xf32>
    %75 = vector.broadcast %64 : vector<8x1xf32> to vector<8x4xf32>
    %76 = arith.mulf %74, %75 : vector<8x4xf32>
    %cst_50 = arith.constant 0.000000e+00 : f32
    %77 = vector.broadcast %cst_50 : f32 to vector<8x4xf32>
    %78 = arith.maximumf %76, %77 : vector<8x4xf32>
    %79 = arith.truncf %78 : vector<8x4xf32> to vector<8x4xbf16>
    %c0_51 = arith.constant 0 : index
    %c0_52 = arith.constant 0 : index
    %c4 = arith.constant 4 : index
    %80 = vector.load %arg4[%c0_51, %c0_52, %c4] : memref<1x8x16xbf16, #tpu.memory_space<vmem>>, vector<1x8x4xbf16>
    %81 = vector.shape_cast %80 : vector<1x8x4xbf16> to vector<8x4xbf16>
    %82 = vector.shape_cast %79 : vector<8x4xbf16> to vector<1x8x4xbf16>
    tpu.vector_store %arg4[%c0_51, %c0_52, %c4], %82 {strides = array<i32>} : memref<1x8x16xbf16, #tpu.memory_space<vmem>>, vector<1x8x4xbf16>,
    %c16_53 = arith.constant 16 : index
    %c0_54 = arith.constant 0 : index
    %83 = vector.load %arg5[%c16_53, %c0_54] : memref<32x4xf32, #tpu.memory_space<vmem>>, vector<8x4xf32>
    %84 = vector.broadcast %64 : vector<8x1xf32> to vector<8x4xf32>
    %85 = arith.mulf %83, %84 : vector<8x4xf32>
    %cst_55 = arith.constant 0.000000e+00 : f32
    %86 = vector.broadcast %cst_55 : f32 to vector<8x4xf32>
    %87 = arith.maximumf %85, %86 : vector<8x4xf32>
    %88 = arith.truncf %87 : vector<8x4xf32> to vector<8x4xbf16>
    %c0_56 = arith.constant 0 : index
    %c0_57 = arith.constant 0 : index
    %c8_58 = arith.constant 8 : index
    %89 = vector.load %arg4[%c0_56, %c0_57, %c8_58] : memref<1x8x16xbf16, #tpu.memory_space<vmem>>, vector<1x8x4xbf16>
    %90 = vector.shape_cast %89 : vector<1x8x4xbf16> to vector<8x4xbf16>
    %91 = vector.shape_cast %88 : vector<8x4xbf16> to vector<1x8x4xbf16>
    tpu.vector_store %arg4[%c0_56, %c0_57, %c8_58], %91 {strides = array<i32>} : memref<1x8x16xbf16, #tpu.memory_space<vmem>>, vector<1x8x4xbf16>,
    %c24_59 = arith.constant 24 : index
    %c0_60 = arith.constant 0 : index
    %92 = vector.load %arg5[%c24_59, %c0_60] : memref<32x4xf32, #tpu.memory_space<vmem>>, vector<8x4xf32>
    %93 = vector.broadcast %64 : vector<8x1xf32> to vector<8x4xf32>
    %94 = arith.mulf %92, %93 : vector<8x4xf32>
    %cst_61 = arith.constant 0.000000e+00 : f32
    %95 = vector.broadcast %cst_61 : f32 to vector<8x4xf32>
    %96 = arith.maximumf %94, %95 : vector<8x4xf32>
    %97 = arith.truncf %96 : vector<8x4xf32> to vector<8x4xbf16>
    %c0_62 = arith.constant 0 : index
    %c0_63 = arith.constant 0 : index
    %c12 = arith.constant 12 : index
    %98 = vector.load %arg4[%c0_62, %c0_63, %c12] : memref<1x8x16xbf16, #tpu.memory_space<vmem>>, vector<1x8x4xbf16>
    %99 = vector.shape_cast %98 : vector<1x8x4xbf16> to vector<8x4xbf16>
    %100 = vector.shape_cast %97 : vector<8x4xbf16> to vector<1x8x4xbf16>
    tpu.vector_store %arg4[%c0_62, %c0_63, %c12], %100 {strides = array<i32>} : memref<1x8x16xbf16, #tpu.memory_space<vmem>>, vector<1x8x4xbf16>,
    return
  }
  func.func @transform_0(%arg0: i32) -> (i32, i32, i32) {
    %c0_i32 = arith.constant 0 : i32
    %c0_i32_0 = arith.constant 0 : i32
    %c0_i32_1 = arith.constant 0 : i32
    return %arg0, %c0_i32, %c0_i32_0 : i32, i32, i32
  }
  func.func @transform_1(%arg0: i32) -> (i32, i32) {
    %c0_i32 = arith.constant 0 : i32
    %c0_i32_0 = arith.constant 0 : i32
    %c0_i32_1 = arith.constant 0 : i32
    return %c0_i32, %c0_i32_0 : i32, i32
  }
  func.func @transform_2(%arg0: i32) -> (i32, i32) {
    %c0_i32 = arith.constant 0 : i32
    %c0_i32_0 = arith.constant 0 : i32
    %c0_i32_1 = arith.constant 0 : i32
    return %c0_i32, %c0_i32_0 : i32, i32
  }
  func.func @transform_3(%arg0: i32) -> (i32, i32, i32) {
    %c0_i32 = arith.constant 0 : i32
    %c0_i32_0 = arith.constant 0 : i32
    %c0_i32_1 = arith.constant 0 : i32
    return %arg0, %c0_i32, %c0_i32_0 : i32, i32, i32
  }
}

module attributes {stable_mosaic.version = 11 : i64} {
  func.func @_upscale_kernel(%arg0: i32, %arg1: memref<1x16x16xbf16, #tpu.memory_space<vmem>>, %arg2: memref<64x16xbf16, #tpu.memory_space<vmem>>, %arg3: memref<64x1xf32, #tpu.memory_space<vmem>>, %arg4: memref<1x16x64xbf16, #tpu.memory_space<vmem>>, %arg5: memref<64x16xf32, #tpu.memory_space<vmem>>) attributes {dimension_semantics = [#tpu.dimension_semantics<parallel>], iteration_bounds = array<i64: 2>, scalar_prefetch = 0 : i64, scratch_operands = 1 : i64, tpu.core_type = #tpu.core_type<tc>, window_params = [{transform_indices = @transform_0, window_bounds = array<i64: 1, 16, 16>}, {pipeline_mode = #tpu.pipeline_mode<synchronous>, transform_indices = @transform_1, window_bounds = array<i64: 64, 16>}, {pipeline_mode = #tpu.pipeline_mode<synchronous>, transform_indices = @transform_2, window_bounds = array<i64: 64, 1>}, {transform_indices = @transform_3, window_bounds = array<i64: 1, 16, 64>}]} {
    %c0 = arith.constant 0 : index
    %c0_0 = arith.constant 0 : index
    %0 = vector.load %arg2[%c0, %c0_0] : memref<64x16xbf16, #tpu.memory_space<vmem>>, vector<64x16xbf16>
    %c0_1 = arith.constant 0 : index
    %c0_2 = arith.constant 0 : index
    %c0_3 = arith.constant 0 : index
    %1 = vector.load %arg1[%c0_1, %c0_2, %c0_3] : memref<1x16x16xbf16, #tpu.memory_space<vmem>>, vector<1x16x16xbf16>
    %2 = vector.shape_cast %1 : vector<1x16x16xbf16> to vector<16x16xbf16>
    %cst = arith.constant dense<0.000000e+00> : vector<64x16xf32>
    %3 = tpu.matmul %0, %2, %cst {dimension_numbers = #tpu.dot_dimension_numbers<[1], [0], [0], [1], [0, 0, 1, 1], [], []>} : vector<64x16xbf16>, vector<16x16xbf16>, vector<64x16xf32> -> vector<64x16xf32>
    %c0_4 = arith.constant 0 : index
    %c0_5 = arith.constant 0 : index
    %4 = vector.load %arg3[%c0_4, %c0_5] : memref<64x1xf32, #tpu.memory_space<vmem>>, vector<64x1xf32>
    %5 = vector.broadcast %4 : vector<64x1xf32> to vector<64x16xf32>
    %6 = arith.addf %3, %5 : vector<64x16xf32>
    %c0_6 = arith.constant 0 : index
    %c0_7 = arith.constant 0 : index
    %7 = vector.load %arg5[%c0_6, %c0_7] : memref<64x16xf32, #tpu.memory_space<vmem>>, vector<64x16xf32>
    tpu.vector_store %arg5[%c0_6, %c0_7], %6 {strides = array<i32>} : memref<64x16xf32, #tpu.memory_space<vmem>>, vector<64x16xf32>,
    %cst_8 = arith.constant 0.000000e+00 : f32
    %8 = vector.broadcast %cst_8 : f32 to vector<16x1xf32>
    %c0_9 = arith.constant 0 : index
    %c0_10 = arith.constant 0 : index
    %9 = vector.load %arg5[%c0_9, %c0_10] : memref<64x16xf32, #tpu.memory_space<vmem>>, vector<16x16xf32>
    %cst_11 = arith.constant dense<0.000000e+00> : vector<16xf32>
    %10 = vector.multi_reduction <add>, %9, %cst_11 [1] : vector<16x16xf32> to vector<16xf32>
    %11 = vector.shape_cast %10 : vector<16xf32> to vector<16x1xf32>
    %12 = arith.addf %8, %11 : vector<16x1xf32>
    %c16 = arith.constant 16 : index
    %c0_12 = arith.constant 0 : index
    %13 = vector.load %arg5[%c16, %c0_12] : memref<64x16xf32, #tpu.memory_space<vmem>>, vector<16x16xf32>
    %cst_13 = arith.constant dense<0.000000e+00> : vector<16xf32>
    %14 = vector.multi_reduction <add>, %13, %cst_13 [1] : vector<16x16xf32> to vector<16xf32>
    %15 = vector.shape_cast %14 : vector<16xf32> to vector<16x1xf32>
    %16 = arith.addf %12, %15 : vector<16x1xf32>
    %c32 = arith.constant 32 : index
    %c0_14 = arith.constant 0 : index
    %17 = vector.load %arg5[%c32, %c0_14] : memref<64x16xf32, #tpu.memory_space<vmem>>, vector<16x16xf32>
    %cst_15 = arith.constant dense<0.000000e+00> : vector<16xf32>
    %18 = vector.multi_reduction <add>, %17, %cst_15 [1] : vector<16x16xf32> to vector<16xf32>
    %19 = vector.shape_cast %18 : vector<16xf32> to vector<16x1xf32>
    %20 = arith.addf %16, %19 : vector<16x1xf32>
    %c48 = arith.constant 48 : index
    %c0_16 = arith.constant 0 : index
    %21 = vector.load %arg5[%c48, %c0_16] : memref<64x16xf32, #tpu.memory_space<vmem>>, vector<16x16xf32>
    %cst_17 = arith.constant dense<0.000000e+00> : vector<16xf32>
    %22 = vector.multi_reduction <add>, %21, %cst_17 [1] : vector<16x16xf32> to vector<16xf32>
    %23 = vector.shape_cast %22 : vector<16xf32> to vector<16x1xf32>
    %24 = arith.addf %20, %23 : vector<16x1xf32>
    %cst_18 = arith.constant 1.562500e-02 : f32
    %25 = vector.broadcast %cst_18 : f32 to vector<16x1xf32>
    %26 = arith.mulf %24, %25 : vector<16x1xf32>
    %cst_19 = arith.constant 0.000000e+00 : f32
    %27 = vector.broadcast %cst_19 : f32 to vector<16x1xf32>
    %c0_20 = arith.constant 0 : index
    %c0_21 = arith.constant 0 : index
    %28 = vector.load %arg5[%c0_20, %c0_21] : memref<64x16xf32, #tpu.memory_space<vmem>>, vector<16x16xf32>
    %29 = vector.broadcast %26 : vector<16x1xf32> to vector<16x16xf32>
    %30 = arith.subf %28, %29 : vector<16x16xf32>
    %c0_22 = arith.constant 0 : index
    %c0_23 = arith.constant 0 : index
    %31 = vector.load %arg5[%c0_22, %c0_23] : memref<64x16xf32, #tpu.memory_space<vmem>>, vector<16x16xf32>
    tpu.vector_store %arg5[%c0_22, %c0_23], %30 {strides = array<i32>} : memref<64x16xf32, #tpu.memory_space<vmem>>, vector<16x16xf32>,
    %32 = arith.mulf %30, %30 : vector<16x16xf32>
    %cst_24 = arith.constant dense<0.000000e+00> : vector<16xf32>
    %33 = vector.multi_reduction <add>, %32, %cst_24 [1] : vector<16x16xf32> to vector<16xf32>
    %34 = vector.shape_cast %33 : vector<16xf32> to vector<16x1xf32>
    %35 = arith.addf %27, %34 : vector<16x1xf32>
    %c16_25 = arith.constant 16 : index
    %c0_26 = arith.constant 0 : index
    %36 = vector.load %arg5[%c16_25, %c0_26] : memref<64x16xf32, #tpu.memory_space<vmem>>, vector<16x16xf32>
    %37 = vector.broadcast %26 : vector<16x1xf32> to vector<16x16xf32>
    %38 = arith.subf %36, %37 : vector<16x16xf32>
    %c16_27 = arith.constant 16 : index
    %c0_28 = arith.constant 0 : index
    %39 = vector.load %arg5[%c16_27, %c0_28] : memref<64x16xf32, #tpu.memory_space<vmem>>, vector<16x16xf32>
    tpu.vector_store %arg5[%c16_27, %c0_28], %38 {strides = array<i32>} : memref<64x16xf32, #tpu.memory_space<vmem>>, vector<16x16xf32>,
    %40 = arith.mulf %38, %38 : vector<16x16xf32>
    %cst_29 = arith.constant dense<0.000000e+00> : vector<16xf32>
    %41 = vector.multi_reduction <add>, %40, %cst_29 [1] : vector<16x16xf32> to vector<16xf32>
    %42 = vector.shape_cast %41 : vector<16xf32> to vector<16x1xf32>
    %43 = arith.addf %35, %42 : vector<16x1xf32>
    %c32_30 = arith.constant 32 : index
    %c0_31 = arith.constant 0 : index
    %44 = vector.load %arg5[%c32_30, %c0_31] : memref<64x16xf32, #tpu.memory_space<vmem>>, vector<16x16xf32>
    %45 = vector.broadcast %26 : vector<16x1xf32> to vector<16x16xf32>
    %46 = arith.subf %44, %45 : vector<16x16xf32>
    %c32_32 = arith.constant 32 : index
    %c0_33 = arith.constant 0 : index
    %47 = vector.load %arg5[%c32_32, %c0_33] : memref<64x16xf32, #tpu.memory_space<vmem>>, vector<16x16xf32>
    tpu.vector_store %arg5[%c32_32, %c0_33], %46 {strides = array<i32>} : memref<64x16xf32, #tpu.memory_space<vmem>>, vector<16x16xf32>,
    %48 = arith.mulf %46, %46 : vector<16x16xf32>
    %cst_34 = arith.constant dense<0.000000e+00> : vector<16xf32>
    %49 = vector.multi_reduction <add>, %48, %cst_34 [1] : vector<16x16xf32> to vector<16xf32>
    %50 = vector.shape_cast %49 : vector<16xf32> to vector<16x1xf32>
    %51 = arith.addf %43, %50 : vector<16x1xf32>
    %c48_35 = arith.constant 48 : index
    %c0_36 = arith.constant 0 : index
    %52 = vector.load %arg5[%c48_35, %c0_36] : memref<64x16xf32, #tpu.memory_space<vmem>>, vector<16x16xf32>
    %53 = vector.broadcast %26 : vector<16x1xf32> to vector<16x16xf32>
    %54 = arith.subf %52, %53 : vector<16x16xf32>
    %c48_37 = arith.constant 48 : index
    %c0_38 = arith.constant 0 : index
    %55 = vector.load %arg5[%c48_37, %c0_38] : memref<64x16xf32, #tpu.memory_space<vmem>>, vector<16x16xf32>
    tpu.vector_store %arg5[%c48_37, %c0_38], %54 {strides = array<i32>} : memref<64x16xf32, #tpu.memory_space<vmem>>, vector<16x16xf32>,
    %56 = arith.mulf %54, %54 : vector<16x16xf32>
    %cst_39 = arith.constant dense<0.000000e+00> : vector<16xf32>
    %57 = vector.multi_reduction <add>, %56, %cst_39 [1] : vector<16x16xf32> to vector<16xf32>
    %58 = vector.shape_cast %57 : vector<16xf32> to vector<16x1xf32>
    %59 = arith.addf %51, %58 : vector<16x1xf32>
    %cst_40 = arith.constant 1.562500e-02 : f32
    %60 = vector.broadcast %cst_40 : f32 to vector<16x1xf32>
    %61 = arith.mulf %59, %60 : vector<16x1xf32>
    %cst_41 = arith.constant 9.99999974E-6 : f32
    %62 = vector.broadcast %cst_41 : f32 to vector<16x1xf32>
    %63 = arith.addf %61, %62 : vector<16x1xf32>
    %64 = math.rsqrt %63 : vector<16x1xf32>
    %c0_42 = arith.constant 0 : index
    %c0_43 = arith.constant 0 : index
    %65 = vector.load %arg5[%c0_42, %c0_43] : memref<64x16xf32, #tpu.memory_space<vmem>>, vector<16x16xf32>
    %66 = vector.broadcast %64 : vector<16x1xf32> to vector<16x16xf32>
    %67 = arith.mulf %65, %66 : vector<16x16xf32>
    %cst_44 = arith.constant 0.000000e+00 : f32
    %68 = vector.broadcast %cst_44 : f32 to vector<16x16xf32>
    %69 = arith.maximumf %67, %68 : vector<16x16xf32>
    %70 = arith.truncf %69 : vector<16x16xf32> to vector<16x16xbf16>
    %c0_45 = arith.constant 0 : index
    %c0_46 = arith.constant 0 : index
    %c0_47 = arith.constant 0 : index
    %71 = vector.load %arg4[%c0_45, %c0_46, %c0_47] : memref<1x16x64xbf16, #tpu.memory_space<vmem>>, vector<1x16x16xbf16>
    %72 = vector.shape_cast %71 : vector<1x16x16xbf16> to vector<16x16xbf16>
    %73 = vector.shape_cast %70 : vector<16x16xbf16> to vector<1x16x16xbf16>
    tpu.vector_store %arg4[%c0_45, %c0_46, %c0_47], %73 {strides = array<i32>} : memref<1x16x64xbf16, #tpu.memory_space<vmem>>, vector<1x16x16xbf16>,
    %c16_48 = arith.constant 16 : index
    %c0_49 = arith.constant 0 : index
    %74 = vector.load %arg5[%c16_48, %c0_49] : memref<64x16xf32, #tpu.memory_space<vmem>>, vector<16x16xf32>
    %75 = vector.broadcast %64 : vector<16x1xf32> to vector<16x16xf32>
    %76 = arith.mulf %74, %75 : vector<16x16xf32>
    %cst_50 = arith.constant 0.000000e+00 : f32
    %77 = vector.broadcast %cst_50 : f32 to vector<16x16xf32>
    %78 = arith.maximumf %76, %77 : vector<16x16xf32>
    %79 = arith.truncf %78 : vector<16x16xf32> to vector<16x16xbf16>
    %c0_51 = arith.constant 0 : index
    %c0_52 = arith.constant 0 : index
    %c16_53 = arith.constant 16 : index
    %80 = vector.load %arg4[%c0_51, %c0_52, %c16_53] : memref<1x16x64xbf16, #tpu.memory_space<vmem>>, vector<1x16x16xbf16>
    %81 = vector.shape_cast %80 : vector<1x16x16xbf16> to vector<16x16xbf16>
    %82 = vector.shape_cast %79 : vector<16x16xbf16> to vector<1x16x16xbf16>
    tpu.vector_store %arg4[%c0_51, %c0_52, %c16_53], %82 {strides = array<i32>} : memref<1x16x64xbf16, #tpu.memory_space<vmem>>, vector<1x16x16xbf16>,
    %c32_54 = arith.constant 32 : index
    %c0_55 = arith.constant 0 : index
    %83 = vector.load %arg5[%c32_54, %c0_55] : memref<64x16xf32, #tpu.memory_space<vmem>>, vector<16x16xf32>
    %84 = vector.broadcast %64 : vector<16x1xf32> to vector<16x16xf32>
    %85 = arith.mulf %83, %84 : vector<16x16xf32>
    %cst_56 = arith.constant 0.000000e+00 : f32
    %86 = vector.broadcast %cst_56 : f32 to vector<16x16xf32>
    %87 = arith.maximumf %85, %86 : vector<16x16xf32>
    %88 = arith.truncf %87 : vector<16x16xf32> to vector<16x16xbf16>
    %c0_57 = arith.constant 0 : index
    %c0_58 = arith.constant 0 : index
    %c32_59 = arith.constant 32 : index
    %89 = vector.load %arg4[%c0_57, %c0_58, %c32_59] : memref<1x16x64xbf16, #tpu.memory_space<vmem>>, vector<1x16x16xbf16>
    %90 = vector.shape_cast %89 : vector<1x16x16xbf16> to vector<16x16xbf16>
    %91 = vector.shape_cast %88 : vector<16x16xbf16> to vector<1x16x16xbf16>
    tpu.vector_store %arg4[%c0_57, %c0_58, %c32_59], %91 {strides = array<i32>} : memref<1x16x64xbf16, #tpu.memory_space<vmem>>, vector<1x16x16xbf16>,
    %c48_60 = arith.constant 48 : index
    %c0_61 = arith.constant 0 : index
    %92 = vector.load %arg5[%c48_60, %c0_61] : memref<64x16xf32, #tpu.memory_space<vmem>>, vector<16x16xf32>
    %93 = vector.broadcast %64 : vector<16x1xf32> to vector<16x16xf32>
    %94 = arith.mulf %92, %93 : vector<16x16xf32>
    %cst_62 = arith.constant 0.000000e+00 : f32
    %95 = vector.broadcast %cst_62 : f32 to vector<16x16xf32>
    %96 = arith.maximumf %94, %95 : vector<16x16xf32>
    %97 = arith.truncf %96 : vector<16x16xf32> to vector<16x16xbf16>
    %c0_63 = arith.constant 0 : index
    %c0_64 = arith.constant 0 : index
    %c48_65 = arith.constant 48 : index
    %98 = vector.load %arg4[%c0_63, %c0_64, %c48_65] : memref<1x16x64xbf16, #tpu.memory_space<vmem>>, vector<1x16x16xbf16>
    %99 = vector.shape_cast %98 : vector<1x16x16xbf16> to vector<16x16xbf16>
    %100 = vector.shape_cast %97 : vector<16x16xbf16> to vector<1x16x16xbf16>
    tpu.vector_store %arg4[%c0_63, %c0_64, %c48_65], %100 {strides = array<i32>} : memref<1x16x64xbf16, #tpu.memory_space<vmem>>, vector<1x16x16xbf16>,
    return
  }
  func.func @transform_0(%arg0: i32) -> (i32, i32, i32) {
    %c0_i32 = arith.constant 0 : i32
    %c0_i32_0 = arith.constant 0 : i32
    %c0_i32_1 = arith.constant 0 : i32
    return %arg0, %c0_i32, %c0_i32_0 : i32, i32, i32
  }
  func.func @transform_1(%arg0: i32) -> (i32, i32) {
    %c0_i32 = arith.constant 0 : i32
    %c0_i32_0 = arith.constant 0 : i32
    %c0_i32_1 = arith.constant 0 : i32
    return %c0_i32, %c0_i32_0 : i32, i32
  }
  func.func @transform_2(%arg0: i32) -> (i32, i32) {
    %c0_i32 = arith.constant 0 : i32
    %c0_i32_0 = arith.constant 0 : i32
    %c0_i32_1 = arith.constant 0 : i32
    return %c0_i32, %c0_i32_0 : i32, i32
  }
  func.func @transform_3(%arg0: i32) -> (i32, i32, i32) {
    %c0_i32 = arith.constant 0 : i32
    %c0_i32_0 = arith.constant 0 : i32
    %c0_i32_1 = arith.constant 0 : i32
    return %arg0, %c0_i32, %c0_i32_0 : i32, i32, i32
  }
}

module attributes {stable_mosaic.version = 11 : i64} {
  func.func @_upscale_kernel(%arg0: i32, %arg1: memref<1x24x64xbf16, #tpu.memory_space<vmem>>, %arg2: memref<96x24xbf16, #tpu.memory_space<vmem>>, %arg3: memref<96x1xf32, #tpu.memory_space<vmem>>, %arg4: memref<1x24x256xbf16, #tpu.memory_space<vmem>>, %arg5: memref<96x64xf32, #tpu.memory_space<vmem>>) attributes {dimension_semantics = [#tpu.dimension_semantics<parallel>], iteration_bounds = array<i64: 2>, scalar_prefetch = 0 : i64, scratch_operands = 1 : i64, tpu.core_type = #tpu.core_type<tc>, window_params = [{transform_indices = @transform_0, window_bounds = array<i64: 1, 24, 64>}, {pipeline_mode = #tpu.pipeline_mode<synchronous>, transform_indices = @transform_1, window_bounds = array<i64: 96, 24>}, {pipeline_mode = #tpu.pipeline_mode<synchronous>, transform_indices = @transform_2, window_bounds = array<i64: 96, 1>}, {transform_indices = @transform_3, window_bounds = array<i64: 1, 24, 256>}]} {
    %c0 = arith.constant 0 : index
    %c0_0 = arith.constant 0 : index
    %0 = vector.load %arg2[%c0, %c0_0] : memref<96x24xbf16, #tpu.memory_space<vmem>>, vector<96x24xbf16>
    %c0_1 = arith.constant 0 : index
    %c0_2 = arith.constant 0 : index
    %c0_3 = arith.constant 0 : index
    %1 = vector.load %arg1[%c0_1, %c0_2, %c0_3] : memref<1x24x64xbf16, #tpu.memory_space<vmem>>, vector<1x24x64xbf16>
    %2 = vector.shape_cast %1 : vector<1x24x64xbf16> to vector<24x64xbf16>
    %cst = arith.constant dense<0.000000e+00> : vector<96x64xf32>
    %3 = tpu.matmul %0, %2, %cst {dimension_numbers = #tpu.dot_dimension_numbers<[1], [0], [0], [1], [0, 0, 1, 1], [], []>} : vector<96x24xbf16>, vector<24x64xbf16>, vector<96x64xf32> -> vector<96x64xf32>
    %c0_4 = arith.constant 0 : index
    %c0_5 = arith.constant 0 : index
    %4 = vector.load %arg3[%c0_4, %c0_5] : memref<96x1xf32, #tpu.memory_space<vmem>>, vector<96x1xf32>
    %5 = vector.broadcast %4 : vector<96x1xf32> to vector<96x64xf32>
    %6 = arith.addf %3, %5 : vector<96x64xf32>
    %c0_6 = arith.constant 0 : index
    %c0_7 = arith.constant 0 : index
    %7 = vector.load %arg5[%c0_6, %c0_7] : memref<96x64xf32, #tpu.memory_space<vmem>>, vector<96x64xf32>
    tpu.vector_store %arg5[%c0_6, %c0_7], %6 {strides = array<i32>} : memref<96x64xf32, #tpu.memory_space<vmem>>, vector<96x64xf32>,
    %cst_8 = arith.constant 0.000000e+00 : f32
    %8 = vector.broadcast %cst_8 : f32 to vector<24x1xf32>
    %c0_9 = arith.constant 0 : index
    %c0_10 = arith.constant 0 : index
    %9 = vector.load %arg5[%c0_9, %c0_10] : memref<96x64xf32, #tpu.memory_space<vmem>>, vector<24x64xf32>
    %cst_11 = arith.constant dense<0.000000e+00> : vector<24xf32>
    %10 = vector.multi_reduction <add>, %9, %cst_11 [1] : vector<24x64xf32> to vector<24xf32>
    %11 = vector.shape_cast %10 : vector<24xf32> to vector<24x1xf32>
    %12 = arith.addf %8, %11 : vector<24x1xf32>
    %c24 = arith.constant 24 : index
    %c0_12 = arith.constant 0 : index
    %13 = vector.load %arg5[%c24, %c0_12] : memref<96x64xf32, #tpu.memory_space<vmem>>, vector<24x64xf32>
    %cst_13 = arith.constant dense<0.000000e+00> : vector<24xf32>
    %14 = vector.multi_reduction <add>, %13, %cst_13 [1] : vector<24x64xf32> to vector<24xf32>
    %15 = vector.shape_cast %14 : vector<24xf32> to vector<24x1xf32>
    %16 = arith.addf %12, %15 : vector<24x1xf32>
    %c48 = arith.constant 48 : index
    %c0_14 = arith.constant 0 : index
    %17 = vector.load %arg5[%c48, %c0_14] : memref<96x64xf32, #tpu.memory_space<vmem>>, vector<24x64xf32>
    %cst_15 = arith.constant dense<0.000000e+00> : vector<24xf32>
    %18 = vector.multi_reduction <add>, %17, %cst_15 [1] : vector<24x64xf32> to vector<24xf32>
    %19 = vector.shape_cast %18 : vector<24xf32> to vector<24x1xf32>
    %20 = arith.addf %16, %19 : vector<24x1xf32>
    %c72 = arith.constant 72 : index
    %c0_16 = arith.constant 0 : index
    %21 = vector.load %arg5[%c72, %c0_16] : memref<96x64xf32, #tpu.memory_space<vmem>>, vector<24x64xf32>
    %cst_17 = arith.constant dense<0.000000e+00> : vector<24xf32>
    %22 = vector.multi_reduction <add>, %21, %cst_17 [1] : vector<24x64xf32> to vector<24xf32>
    %23 = vector.shape_cast %22 : vector<24xf32> to vector<24x1xf32>
    %24 = arith.addf %20, %23 : vector<24x1xf32>
    %cst_18 = arith.constant 3.906250e-03 : f32
    %25 = vector.broadcast %cst_18 : f32 to vector<24x1xf32>
    %26 = arith.mulf %24, %25 : vector<24x1xf32>
    %cst_19 = arith.constant 0.000000e+00 : f32
    %27 = vector.broadcast %cst_19 : f32 to vector<24x1xf32>
    %c0_20 = arith.constant 0 : index
    %c0_21 = arith.constant 0 : index
    %28 = vector.load %arg5[%c0_20, %c0_21] : memref<96x64xf32, #tpu.memory_space<vmem>>, vector<24x64xf32>
    %29 = vector.broadcast %26 : vector<24x1xf32> to vector<24x64xf32>
    %30 = arith.subf %28, %29 : vector<24x64xf32>
    %c0_22 = arith.constant 0 : index
    %c0_23 = arith.constant 0 : index
    %31 = vector.load %arg5[%c0_22, %c0_23] : memref<96x64xf32, #tpu.memory_space<vmem>>, vector<24x64xf32>
    tpu.vector_store %arg5[%c0_22, %c0_23], %30 {strides = array<i32>} : memref<96x64xf32, #tpu.memory_space<vmem>>, vector<24x64xf32>,
    %32 = arith.mulf %30, %30 : vector<24x64xf32>
    %cst_24 = arith.constant dense<0.000000e+00> : vector<24xf32>
    %33 = vector.multi_reduction <add>, %32, %cst_24 [1] : vector<24x64xf32> to vector<24xf32>
    %34 = vector.shape_cast %33 : vector<24xf32> to vector<24x1xf32>
    %35 = arith.addf %27, %34 : vector<24x1xf32>
    %c24_25 = arith.constant 24 : index
    %c0_26 = arith.constant 0 : index
    %36 = vector.load %arg5[%c24_25, %c0_26] : memref<96x64xf32, #tpu.memory_space<vmem>>, vector<24x64xf32>
    %37 = vector.broadcast %26 : vector<24x1xf32> to vector<24x64xf32>
    %38 = arith.subf %36, %37 : vector<24x64xf32>
    %c24_27 = arith.constant 24 : index
    %c0_28 = arith.constant 0 : index
    %39 = vector.load %arg5[%c24_27, %c0_28] : memref<96x64xf32, #tpu.memory_space<vmem>>, vector<24x64xf32>
    tpu.vector_store %arg5[%c24_27, %c0_28], %38 {strides = array<i32>} : memref<96x64xf32, #tpu.memory_space<vmem>>, vector<24x64xf32>,
    %40 = arith.mulf %38, %38 : vector<24x64xf32>
    %cst_29 = arith.constant dense<0.000000e+00> : vector<24xf32>
    %41 = vector.multi_reduction <add>, %40, %cst_29 [1] : vector<24x64xf32> to vector<24xf32>
    %42 = vector.shape_cast %41 : vector<24xf32> to vector<24x1xf32>
    %43 = arith.addf %35, %42 : vector<24x1xf32>
    %c48_30 = arith.constant 48 : index
    %c0_31 = arith.constant 0 : index
    %44 = vector.load %arg5[%c48_30, %c0_31] : memref<96x64xf32, #tpu.memory_space<vmem>>, vector<24x64xf32>
    %45 = vector.broadcast %26 : vector<24x1xf32> to vector<24x64xf32>
    %46 = arith.subf %44, %45 : vector<24x64xf32>
    %c48_32 = arith.constant 48 : index
    %c0_33 = arith.constant 0 : index
    %47 = vector.load %arg5[%c48_32, %c0_33] : memref<96x64xf32, #tpu.memory_space<vmem>>, vector<24x64xf32>
    tpu.vector_store %arg5[%c48_32, %c0_33], %46 {strides = array<i32>} : memref<96x64xf32, #tpu.memory_space<vmem>>, vector<24x64xf32>,
    %48 = arith.mulf %46, %46 : vector<24x64xf32>
    %cst_34 = arith.constant dense<0.000000e+00> : vector<24xf32>
    %49 = vector.multi_reduction <add>, %48, %cst_34 [1] : vector<24x64xf32> to vector<24xf32>
    %50 = vector.shape_cast %49 : vector<24xf32> to vector<24x1xf32>
    %51 = arith.addf %43, %50 : vector<24x1xf32>
    %c72_35 = arith.constant 72 : index
    %c0_36 = arith.constant 0 : index
    %52 = vector.load %arg5[%c72_35, %c0_36] : memref<96x64xf32, #tpu.memory_space<vmem>>, vector<24x64xf32>
    %53 = vector.broadcast %26 : vector<24x1xf32> to vector<24x64xf32>
    %54 = arith.subf %52, %53 : vector<24x64xf32>
    %c72_37 = arith.constant 72 : index
    %c0_38 = arith.constant 0 : index
    %55 = vector.load %arg5[%c72_37, %c0_38] : memref<96x64xf32, #tpu.memory_space<vmem>>, vector<24x64xf32>
    tpu.vector_store %arg5[%c72_37, %c0_38], %54 {strides = array<i32>} : memref<96x64xf32, #tpu.memory_space<vmem>>, vector<24x64xf32>,
    %56 = arith.mulf %54, %54 : vector<24x64xf32>
    %cst_39 = arith.constant dense<0.000000e+00> : vector<24xf32>
    %57 = vector.multi_reduction <add>, %56, %cst_39 [1] : vector<24x64xf32> to vector<24xf32>
    %58 = vector.shape_cast %57 : vector<24xf32> to vector<24x1xf32>
    %59 = arith.addf %51, %58 : vector<24x1xf32>
    %cst_40 = arith.constant 3.906250e-03 : f32
    %60 = vector.broadcast %cst_40 : f32 to vector<24x1xf32>
    %61 = arith.mulf %59, %60 : vector<24x1xf32>
    %cst_41 = arith.constant 9.99999974E-6 : f32
    %62 = vector.broadcast %cst_41 : f32 to vector<24x1xf32>
    %63 = arith.addf %61, %62 : vector<24x1xf32>
    %64 = math.rsqrt %63 : vector<24x1xf32>
    %c0_42 = arith.constant 0 : index
    %c0_43 = arith.constant 0 : index
    %65 = vector.load %arg5[%c0_42, %c0_43] : memref<96x64xf32, #tpu.memory_space<vmem>>, vector<24x64xf32>
    %66 = vector.broadcast %64 : vector<24x1xf32> to vector<24x64xf32>
    %67 = arith.mulf %65, %66 : vector<24x64xf32>
    %cst_44 = arith.constant 0.000000e+00 : f32
    %68 = vector.broadcast %cst_44 : f32 to vector<24x64xf32>
    %69 = arith.maximumf %67, %68 : vector<24x64xf32>
    %70 = arith.truncf %69 : vector<24x64xf32> to vector<24x64xbf16>
    %c0_45 = arith.constant 0 : index
    %c0_46 = arith.constant 0 : index
    %c0_47 = arith.constant 0 : index
    %71 = vector.load %arg4[%c0_45, %c0_46, %c0_47] : memref<1x24x256xbf16, #tpu.memory_space<vmem>>, vector<1x24x64xbf16>
    %72 = vector.shape_cast %71 : vector<1x24x64xbf16> to vector<24x64xbf16>
    %73 = vector.shape_cast %70 : vector<24x64xbf16> to vector<1x24x64xbf16>
    tpu.vector_store %arg4[%c0_45, %c0_46, %c0_47], %73 {strides = array<i32>} : memref<1x24x256xbf16, #tpu.memory_space<vmem>>, vector<1x24x64xbf16>,
    %c24_48 = arith.constant 24 : index
    %c0_49 = arith.constant 0 : index
    %74 = vector.load %arg5[%c24_48, %c0_49] : memref<96x64xf32, #tpu.memory_space<vmem>>, vector<24x64xf32>
    %75 = vector.broadcast %64 : vector<24x1xf32> to vector<24x64xf32>
    %76 = arith.mulf %74, %75 : vector<24x64xf32>
    %cst_50 = arith.constant 0.000000e+00 : f32
    %77 = vector.broadcast %cst_50 : f32 to vector<24x64xf32>
    %78 = arith.maximumf %76, %77 : vector<24x64xf32>
    %79 = arith.truncf %78 : vector<24x64xf32> to vector<24x64xbf16>
    %c0_51 = arith.constant 0 : index
    %c0_52 = arith.constant 0 : index
    %c64 = arith.constant 64 : index
    %80 = vector.load %arg4[%c0_51, %c0_52, %c64] : memref<1x24x256xbf16, #tpu.memory_space<vmem>>, vector<1x24x64xbf16>
    %81 = vector.shape_cast %80 : vector<1x24x64xbf16> to vector<24x64xbf16>
    %82 = vector.shape_cast %79 : vector<24x64xbf16> to vector<1x24x64xbf16>
    tpu.vector_store %arg4[%c0_51, %c0_52, %c64], %82 {strides = array<i32>} : memref<1x24x256xbf16, #tpu.memory_space<vmem>>, vector<1x24x64xbf16>,
    %c48_53 = arith.constant 48 : index
    %c0_54 = arith.constant 0 : index
    %83 = vector.load %arg5[%c48_53, %c0_54] : memref<96x64xf32, #tpu.memory_space<vmem>>, vector<24x64xf32>
    %84 = vector.broadcast %64 : vector<24x1xf32> to vector<24x64xf32>
    %85 = arith.mulf %83, %84 : vector<24x64xf32>
    %cst_55 = arith.constant 0.000000e+00 : f32
    %86 = vector.broadcast %cst_55 : f32 to vector<24x64xf32>
    %87 = arith.maximumf %85, %86 : vector<24x64xf32>
    %88 = arith.truncf %87 : vector<24x64xf32> to vector<24x64xbf16>
    %c0_56 = arith.constant 0 : index
    %c0_57 = arith.constant 0 : index
    %c128 = arith.constant 128 : index
    %89 = vector.load %arg4[%c0_56, %c0_57, %c128] : memref<1x24x256xbf16, #tpu.memory_space<vmem>>, vector<1x24x64xbf16>
    %90 = vector.shape_cast %89 : vector<1x24x64xbf16> to vector<24x64xbf16>
    %91 = vector.shape_cast %88 : vector<24x64xbf16> to vector<1x24x64xbf16>
    tpu.vector_store %arg4[%c0_56, %c0_57, %c128], %91 {strides = array<i32>} : memref<1x24x256xbf16, #tpu.memory_space<vmem>>, vector<1x24x64xbf16>,
    %c72_58 = arith.constant 72 : index
    %c0_59 = arith.constant 0 : index
    %92 = vector.load %arg5[%c72_58, %c0_59] : memref<96x64xf32, #tpu.memory_space<vmem>>, vector<24x64xf32>
    %93 = vector.broadcast %64 : vector<24x1xf32> to vector<24x64xf32>
    %94 = arith.mulf %92, %93 : vector<24x64xf32>
    %cst_60 = arith.constant 0.000000e+00 : f32
    %95 = vector.broadcast %cst_60 : f32 to vector<24x64xf32>
    %96 = arith.maximumf %94, %95 : vector<24x64xf32>
    %97 = arith.truncf %96 : vector<24x64xf32> to vector<24x64xbf16>
    %c0_61 = arith.constant 0 : index
    %c0_62 = arith.constant 0 : index
    %c192 = arith.constant 192 : index
    %98 = vector.load %arg4[%c0_61, %c0_62, %c192] : memref<1x24x256xbf16, #tpu.memory_space<vmem>>, vector<1x24x64xbf16>
    %99 = vector.shape_cast %98 : vector<1x24x64xbf16> to vector<24x64xbf16>
    %100 = vector.shape_cast %97 : vector<24x64xbf16> to vector<1x24x64xbf16>
    tpu.vector_store %arg4[%c0_61, %c0_62, %c192], %100 {strides = array<i32>} : memref<1x24x256xbf16, #tpu.memory_space<vmem>>, vector<1x24x64xbf16>,
    return
  }
  func.func @transform_0(%arg0: i32) -> (i32, i32, i32) {
    %c0_i32 = arith.constant 0 : i32
    %c0_i32_0 = arith.constant 0 : i32
    %c0_i32_1 = arith.constant 0 : i32
    return %arg0, %c0_i32, %c0_i32_0 : i32, i32, i32
  }
  func.func @transform_1(%arg0: i32) -> (i32, i32) {
    %c0_i32 = arith.constant 0 : i32
    %c0_i32_0 = arith.constant 0 : i32
    %c0_i32_1 = arith.constant 0 : i32
    return %c0_i32, %c0_i32_0 : i32, i32
  }
  func.func @transform_2(%arg0: i32) -> (i32, i32) {
    %c0_i32 = arith.constant 0 : i32
    %c0_i32_0 = arith.constant 0 : i32
    %c0_i32_1 = arith.constant 0 : i32
    return %c0_i32, %c0_i32_0 : i32, i32
  }
  func.func @transform_3(%arg0: i32) -> (i32, i32, i32) {
    %c0_i32 = arith.constant 0 : i32
    %c0_i32_0 = arith.constant 0 : i32
    %c0_i32_1 = arith.constant 0 : i32
    return %arg0, %c0_i32, %c0_i32_0 : i32, i32, i32
  }
}

module attributes {stable_mosaic.version = 11 : i64} {
  func.func @_upscale_kernel(%arg0: i32, %arg1: memref<1x32x256xbf16, #tpu.memory_space<vmem>>, %arg2: memref<128x32xbf16, #tpu.memory_space<vmem>>, %arg3: memref<128x1xf32, #tpu.memory_space<vmem>>, %arg4: memref<1x32x1024xbf16, #tpu.memory_space<vmem>>, %arg5: memref<128x256xf32, #tpu.memory_space<vmem>>) attributes {dimension_semantics = [#tpu.dimension_semantics<parallel>], iteration_bounds = array<i64: 2>, scalar_prefetch = 0 : i64, scratch_operands = 1 : i64, tpu.core_type = #tpu.core_type<tc>, window_params = [{transform_indices = @transform_0, window_bounds = array<i64: 1, 32, 256>}, {pipeline_mode = #tpu.pipeline_mode<synchronous>, transform_indices = @transform_1, window_bounds = array<i64: 128, 32>}, {pipeline_mode = #tpu.pipeline_mode<synchronous>, transform_indices = @transform_2, window_bounds = array<i64: 128, 1>}, {transform_indices = @transform_3, window_bounds = array<i64: 1, 32, 1024>}]} {
    %c0 = arith.constant 0 : index
    %c0_0 = arith.constant 0 : index
    %0 = vector.load %arg2[%c0, %c0_0] : memref<128x32xbf16, #tpu.memory_space<vmem>>, vector<128x32xbf16>
    %c0_1 = arith.constant 0 : index
    %c0_2 = arith.constant 0 : index
    %c0_3 = arith.constant 0 : index
    %1 = vector.load %arg1[%c0_1, %c0_2, %c0_3] : memref<1x32x256xbf16, #tpu.memory_space<vmem>>, vector<1x32x256xbf16>
    %2 = vector.shape_cast %1 : vector<1x32x256xbf16> to vector<32x256xbf16>
    %cst = arith.constant dense<0.000000e+00> : vector<128x256xf32>
    %3 = tpu.matmul %0, %2, %cst {dimension_numbers = #tpu.dot_dimension_numbers<[1], [0], [0], [1], [0, 0, 1, 1], [], []>} : vector<128x32xbf16>, vector<32x256xbf16>, vector<128x256xf32> -> vector<128x256xf32>
    %c0_4 = arith.constant 0 : index
    %c0_5 = arith.constant 0 : index
    %4 = vector.load %arg3[%c0_4, %c0_5] : memref<128x1xf32, #tpu.memory_space<vmem>>, vector<128x1xf32>
    %5 = vector.broadcast %4 : vector<128x1xf32> to vector<128x256xf32>
    %6 = arith.addf %3, %5 : vector<128x256xf32>
    %c0_6 = arith.constant 0 : index
    %c0_7 = arith.constant 0 : index
    %7 = vector.load %arg5[%c0_6, %c0_7] : memref<128x256xf32, #tpu.memory_space<vmem>>, vector<128x256xf32>
    tpu.vector_store %arg5[%c0_6, %c0_7], %6 {strides = array<i32>} : memref<128x256xf32, #tpu.memory_space<vmem>>, vector<128x256xf32>,
    %cst_8 = arith.constant 0.000000e+00 : f32
    %8 = vector.broadcast %cst_8 : f32 to vector<32x1xf32>
    %c0_9 = arith.constant 0 : index
    %c0_10 = arith.constant 0 : index
    %9 = vector.load %arg5[%c0_9, %c0_10] : memref<128x256xf32, #tpu.memory_space<vmem>>, vector<32x256xf32>
    %cst_11 = arith.constant dense<0.000000e+00> : vector<32xf32>
    %10 = vector.multi_reduction <add>, %9, %cst_11 [1] : vector<32x256xf32> to vector<32xf32>
    %11 = vector.shape_cast %10 : vector<32xf32> to vector<32x1xf32>
    %12 = arith.addf %8, %11 : vector<32x1xf32>
    %c32 = arith.constant 32 : index
    %c0_12 = arith.constant 0 : index
    %13 = vector.load %arg5[%c32, %c0_12] : memref<128x256xf32, #tpu.memory_space<vmem>>, vector<32x256xf32>
    %cst_13 = arith.constant dense<0.000000e+00> : vector<32xf32>
    %14 = vector.multi_reduction <add>, %13, %cst_13 [1] : vector<32x256xf32> to vector<32xf32>
    %15 = vector.shape_cast %14 : vector<32xf32> to vector<32x1xf32>
    %16 = arith.addf %12, %15 : vector<32x1xf32>
    %c64 = arith.constant 64 : index
    %c0_14 = arith.constant 0 : index
    %17 = vector.load %arg5[%c64, %c0_14] : memref<128x256xf32, #tpu.memory_space<vmem>>, vector<32x256xf32>
    %cst_15 = arith.constant dense<0.000000e+00> : vector<32xf32>
    %18 = vector.multi_reduction <add>, %17, %cst_15 [1] : vector<32x256xf32> to vector<32xf32>
    %19 = vector.shape_cast %18 : vector<32xf32> to vector<32x1xf32>
    %20 = arith.addf %16, %19 : vector<32x1xf32>
    %c96 = arith.constant 96 : index
    %c0_16 = arith.constant 0 : index
    %21 = vector.load %arg5[%c96, %c0_16] : memref<128x256xf32, #tpu.memory_space<vmem>>, vector<32x256xf32>
    %cst_17 = arith.constant dense<0.000000e+00> : vector<32xf32>
    %22 = vector.multi_reduction <add>, %21, %cst_17 [1] : vector<32x256xf32> to vector<32xf32>
    %23 = vector.shape_cast %22 : vector<32xf32> to vector<32x1xf32>
    %24 = arith.addf %20, %23 : vector<32x1xf32>
    %cst_18 = arith.constant 9.765625E-4 : f32
    %25 = vector.broadcast %cst_18 : f32 to vector<32x1xf32>
    %26 = arith.mulf %24, %25 : vector<32x1xf32>
    %cst_19 = arith.constant 0.000000e+00 : f32
    %27 = vector.broadcast %cst_19 : f32 to vector<32x1xf32>
    %c0_20 = arith.constant 0 : index
    %c0_21 = arith.constant 0 : index
    %28 = vector.load %arg5[%c0_20, %c0_21] : memref<128x256xf32, #tpu.memory_space<vmem>>, vector<32x256xf32>
    %29 = vector.broadcast %26 : vector<32x1xf32> to vector<32x256xf32>
    %30 = arith.subf %28, %29 : vector<32x256xf32>
    %c0_22 = arith.constant 0 : index
    %c0_23 = arith.constant 0 : index
    %31 = vector.load %arg5[%c0_22, %c0_23] : memref<128x256xf32, #tpu.memory_space<vmem>>, vector<32x256xf32>
    tpu.vector_store %arg5[%c0_22, %c0_23], %30 {strides = array<i32>} : memref<128x256xf32, #tpu.memory_space<vmem>>, vector<32x256xf32>,
    %32 = arith.mulf %30, %30 : vector<32x256xf32>
    %cst_24 = arith.constant dense<0.000000e+00> : vector<32xf32>
    %33 = vector.multi_reduction <add>, %32, %cst_24 [1] : vector<32x256xf32> to vector<32xf32>
    %34 = vector.shape_cast %33 : vector<32xf32> to vector<32x1xf32>
    %35 = arith.addf %27, %34 : vector<32x1xf32>
    %c32_25 = arith.constant 32 : index
    %c0_26 = arith.constant 0 : index
    %36 = vector.load %arg5[%c32_25, %c0_26] : memref<128x256xf32, #tpu.memory_space<vmem>>, vector<32x256xf32>
    %37 = vector.broadcast %26 : vector<32x1xf32> to vector<32x256xf32>
    %38 = arith.subf %36, %37 : vector<32x256xf32>
    %c32_27 = arith.constant 32 : index
    %c0_28 = arith.constant 0 : index
    %39 = vector.load %arg5[%c32_27, %c0_28] : memref<128x256xf32, #tpu.memory_space<vmem>>, vector<32x256xf32>
    tpu.vector_store %arg5[%c32_27, %c0_28], %38 {strides = array<i32>} : memref<128x256xf32, #tpu.memory_space<vmem>>, vector<32x256xf32>,
    %40 = arith.mulf %38, %38 : vector<32x256xf32>
    %cst_29 = arith.constant dense<0.000000e+00> : vector<32xf32>
    %41 = vector.multi_reduction <add>, %40, %cst_29 [1] : vector<32x256xf32> to vector<32xf32>
    %42 = vector.shape_cast %41 : vector<32xf32> to vector<32x1xf32>
    %43 = arith.addf %35, %42 : vector<32x1xf32>
    %c64_30 = arith.constant 64 : index
    %c0_31 = arith.constant 0 : index
    %44 = vector.load %arg5[%c64_30, %c0_31] : memref<128x256xf32, #tpu.memory_space<vmem>>, vector<32x256xf32>
    %45 = vector.broadcast %26 : vector<32x1xf32> to vector<32x256xf32>
    %46 = arith.subf %44, %45 : vector<32x256xf32>
    %c64_32 = arith.constant 64 : index
    %c0_33 = arith.constant 0 : index
    %47 = vector.load %arg5[%c64_32, %c0_33] : memref<128x256xf32, #tpu.memory_space<vmem>>, vector<32x256xf32>
    tpu.vector_store %arg5[%c64_32, %c0_33], %46 {strides = array<i32>} : memref<128x256xf32, #tpu.memory_space<vmem>>, vector<32x256xf32>,
    %48 = arith.mulf %46, %46 : vector<32x256xf32>
    %cst_34 = arith.constant dense<0.000000e+00> : vector<32xf32>
    %49 = vector.multi_reduction <add>, %48, %cst_34 [1] : vector<32x256xf32> to vector<32xf32>
    %50 = vector.shape_cast %49 : vector<32xf32> to vector<32x1xf32>
    %51 = arith.addf %43, %50 : vector<32x1xf32>
    %c96_35 = arith.constant 96 : index
    %c0_36 = arith.constant 0 : index
    %52 = vector.load %arg5[%c96_35, %c0_36] : memref<128x256xf32, #tpu.memory_space<vmem>>, vector<32x256xf32>
    %53 = vector.broadcast %26 : vector<32x1xf32> to vector<32x256xf32>
    %54 = arith.subf %52, %53 : vector<32x256xf32>
    %c96_37 = arith.constant 96 : index
    %c0_38 = arith.constant 0 : index
    %55 = vector.load %arg5[%c96_37, %c0_38] : memref<128x256xf32, #tpu.memory_space<vmem>>, vector<32x256xf32>
    tpu.vector_store %arg5[%c96_37, %c0_38], %54 {strides = array<i32>} : memref<128x256xf32, #tpu.memory_space<vmem>>, vector<32x256xf32>,
    %56 = arith.mulf %54, %54 : vector<32x256xf32>
    %cst_39 = arith.constant dense<0.000000e+00> : vector<32xf32>
    %57 = vector.multi_reduction <add>, %56, %cst_39 [1] : vector<32x256xf32> to vector<32xf32>
    %58 = vector.shape_cast %57 : vector<32xf32> to vector<32x1xf32>
    %59 = arith.addf %51, %58 : vector<32x1xf32>
    %cst_40 = arith.constant 9.765625E-4 : f32
    %60 = vector.broadcast %cst_40 : f32 to vector<32x1xf32>
    %61 = arith.mulf %59, %60 : vector<32x1xf32>
    %cst_41 = arith.constant 9.99999974E-6 : f32
    %62 = vector.broadcast %cst_41 : f32 to vector<32x1xf32>
    %63 = arith.addf %61, %62 : vector<32x1xf32>
    %64 = math.rsqrt %63 : vector<32x1xf32>
    %c0_42 = arith.constant 0 : index
    %c0_43 = arith.constant 0 : index
    %65 = vector.load %arg5[%c0_42, %c0_43] : memref<128x256xf32, #tpu.memory_space<vmem>>, vector<32x256xf32>
    %66 = vector.broadcast %64 : vector<32x1xf32> to vector<32x256xf32>
    %67 = arith.mulf %65, %66 : vector<32x256xf32>
    %cst_44 = arith.constant 0.000000e+00 : f32
    %68 = vector.broadcast %cst_44 : f32 to vector<32x256xf32>
    %69 = arith.maximumf %67, %68 : vector<32x256xf32>
    %70 = arith.truncf %69 : vector<32x256xf32> to vector<32x256xbf16>
    %c0_45 = arith.constant 0 : index
    %c0_46 = arith.constant 0 : index
    %c0_47 = arith.constant 0 : index
    %71 = vector.load %arg4[%c0_45, %c0_46, %c0_47] : memref<1x32x1024xbf16, #tpu.memory_space<vmem>>, vector<1x32x256xbf16>
    %72 = vector.shape_cast %71 : vector<1x32x256xbf16> to vector<32x256xbf16>
    %73 = vector.shape_cast %70 : vector<32x256xbf16> to vector<1x32x256xbf16>
    tpu.vector_store %arg4[%c0_45, %c0_46, %c0_47], %73 {strides = array<i32>} : memref<1x32x1024xbf16, #tpu.memory_space<vmem>>, vector<1x32x256xbf16>,
    %c32_48 = arith.constant 32 : index
    %c0_49 = arith.constant 0 : index
    %74 = vector.load %arg5[%c32_48, %c0_49] : memref<128x256xf32, #tpu.memory_space<vmem>>, vector<32x256xf32>
    %75 = vector.broadcast %64 : vector<32x1xf32> to vector<32x256xf32>
    %76 = arith.mulf %74, %75 : vector<32x256xf32>
    %cst_50 = arith.constant 0.000000e+00 : f32
    %77 = vector.broadcast %cst_50 : f32 to vector<32x256xf32>
    %78 = arith.maximumf %76, %77 : vector<32x256xf32>
    %79 = arith.truncf %78 : vector<32x256xf32> to vector<32x256xbf16>
    %c0_51 = arith.constant 0 : index
    %c0_52 = arith.constant 0 : index
    %c256 = arith.constant 256 : index
    %80 = vector.load %arg4[%c0_51, %c0_52, %c256] : memref<1x32x1024xbf16, #tpu.memory_space<vmem>>, vector<1x32x256xbf16>
    %81 = vector.shape_cast %80 : vector<1x32x256xbf16> to vector<32x256xbf16>
    %82 = vector.shape_cast %79 : vector<32x256xbf16> to vector<1x32x256xbf16>
    tpu.vector_store %arg4[%c0_51, %c0_52, %c256], %82 {strides = array<i32>} : memref<1x32x1024xbf16, #tpu.memory_space<vmem>>, vector<1x32x256xbf16>,
    %c64_53 = arith.constant 64 : index
    %c0_54 = arith.constant 0 : index
    %83 = vector.load %arg5[%c64_53, %c0_54] : memref<128x256xf32, #tpu.memory_space<vmem>>, vector<32x256xf32>
    %84 = vector.broadcast %64 : vector<32x1xf32> to vector<32x256xf32>
    %85 = arith.mulf %83, %84 : vector<32x256xf32>
    %cst_55 = arith.constant 0.000000e+00 : f32
    %86 = vector.broadcast %cst_55 : f32 to vector<32x256xf32>
    %87 = arith.maximumf %85, %86 : vector<32x256xf32>
    %88 = arith.truncf %87 : vector<32x256xf32> to vector<32x256xbf16>
    %c0_56 = arith.constant 0 : index
    %c0_57 = arith.constant 0 : index
    %c512 = arith.constant 512 : index
    %89 = vector.load %arg4[%c0_56, %c0_57, %c512] : memref<1x32x1024xbf16, #tpu.memory_space<vmem>>, vector<1x32x256xbf16>
    %90 = vector.shape_cast %89 : vector<1x32x256xbf16> to vector<32x256xbf16>
    %91 = vector.shape_cast %88 : vector<32x256xbf16> to vector<1x32x256xbf16>
    tpu.vector_store %arg4[%c0_56, %c0_57, %c512], %91 {strides = array<i32>} : memref<1x32x1024xbf16, #tpu.memory_space<vmem>>, vector<1x32x256xbf16>,
    %c96_58 = arith.constant 96 : index
    %c0_59 = arith.constant 0 : index
    %92 = vector.load %arg5[%c96_58, %c0_59] : memref<128x256xf32, #tpu.memory_space<vmem>>, vector<32x256xf32>
    %93 = vector.broadcast %64 : vector<32x1xf32> to vector<32x256xf32>
    %94 = arith.mulf %92, %93 : vector<32x256xf32>
    %cst_60 = arith.constant 0.000000e+00 : f32
    %95 = vector.broadcast %cst_60 : f32 to vector<32x256xf32>
    %96 = arith.maximumf %94, %95 : vector<32x256xf32>
    %97 = arith.truncf %96 : vector<32x256xf32> to vector<32x256xbf16>
    %c0_61 = arith.constant 0 : index
    %c0_62 = arith.constant 0 : index
    %c768 = arith.constant 768 : index
    %98 = vector.load %arg4[%c0_61, %c0_62, %c768] : memref<1x32x1024xbf16, #tpu.memory_space<vmem>>, vector<1x32x256xbf16>
    %99 = vector.shape_cast %98 : vector<1x32x256xbf16> to vector<32x256xbf16>
    %100 = vector.shape_cast %97 : vector<32x256xbf16> to vector<1x32x256xbf16>
    tpu.vector_store %arg4[%c0_61, %c0_62, %c768], %100 {strides = array<i32>} : memref<1x32x1024xbf16, #tpu.memory_space<vmem>>, vector<1x32x256xbf16>,
    return
  }
  func.func @transform_0(%arg0: i32) -> (i32, i32, i32) {
    %c0_i32 = arith.constant 0 : i32
    %c0_i32_0 = arith.constant 0 : i32
    %c0_i32_1 = arith.constant 0 : i32
    return %arg0, %c0_i32, %c0_i32_0 : i32, i32, i32
  }
  func.func @transform_1(%arg0: i32) -> (i32, i32) {
    %c0_i32 = arith.constant 0 : i32
    %c0_i32_0 = arith.constant 0 : i32
    %c0_i32_1 = arith.constant 0 : i32
    return %c0_i32, %c0_i32_0 : i32, i32
  }
  func.func @transform_2(%arg0: i32) -> (i32, i32) {
    %c0_i32 = arith.constant 0 : i32
    %c0_i32_0 = arith.constant 0 : i32
    %c0_i32_1 = arith.constant 0 : i32
    return %c0_i32, %c0_i32_0 : i32, i32
  }
  func.func @transform_3(%arg0: i32) -> (i32, i32, i32) {
    %c0_i32 = arith.constant 0 : i32
    %c0_i32_0 = arith.constant 0 : i32
    %c0_i32_1 = arith.constant 0 : i32
    return %arg0, %c0_i32, %c0_i32_0 : i32, i32, i32
  }
}

</mosaic_0001>

<bundles_post_ra>
// kernel: model_forward.10
= control target key start
LH: loop header
LB: loop body
LE: loop exit
PB: predicated region body
PF: predicated region fallthrough
CT: control target
= control target key end

     0   :  { %s744_s24 = smov 0   ;;  %s831_s0 = inlined_call_operand.vmem [shape: bf16[2,3,64], index: 0, kind: input, shape index: {}]   ;;  %s832_s1 = inlined_call_operand.vmem [shape: bf16[2,8,64], index: 1, kind: input, shape index: {}]   ;;  %s833_s2 = inlined_call_operand.vmem [shape: bf16[8,3], index: 2, kind: input, shape index: {}]   ;;  %s834_s3 = inlined_call_operand.vmem [shape: f32[8,1], index: 3, kind: input, shape index: {}]   ;;  %s835_s4 = inlined_call_operand.vmem [shape: bf16[8,72], index: 4, kind: input, shape index: {}]   ;;  %s836_s5 = inlined_call_operand.vmem [shape: f32[8,1], index: 5, kind: input, shape index: {}]   ;;  %s837_s6 = inlined_call_operand.vmem [shape: bf16[2,8,64], index: 6, kind: output, shape index: {0}]   ;;  %s838_s7 = inlined_call_operand.vmem [shape: bf16[2,8,64], index: 7, kind: output, shape index: {1}]  }
   0x1 LB: > { %s621_s25 = sadd.s32 4294967295, %s690_s24   ;;  %p625_p0 = scmp.ge.s32.totalorder %s690_s24, 1  ;;  %s690_s24 = sphi %s744_s24, %s18_s24  }
   0x2   : > { %p248_p1 = scmp.lt.s32.totalorder %s690_s24, 3 }
   0x4   : > { %p249_p2 = pnand %p625_p0, %p248_p1 }
   0x5   : > { %p286_p3 = scmp.lt.s32.totalorder (!%p249_p2), %s621_s25, 1  ;;  %vm315_vm0 = vcmask (!%p249_p2), 1040384   ;;  %v305_v0 = vld [vmem:[%s834_s3] sm:$0xff] (!%p249_p2)  ;;  %v692_v1 = vmov (!%p249_p2), 0.0   ;;  %vm316_vm1 = vcmask (!%p249_p2), 1041408   ;;  %v693_v2 = vmov (!%p249_p2), 65535  }
   0x6   : > { %252 = sbr.rel (%p249_p2) target bundleno = 596 (0x254), region = 44  ;;  %642 = vmatprep.subr.bf16.mxu0 (!%p249_p2), %v692_v1  ;;  %v317_v3 = vsel (!%p249_p2), %vm315_vm0, 4294967295, %v693_v2  ;;  %648 = vmatprep.subr.bf16.mxu1 (!%p249_p2), %v692_v1  ;;  %vm694_vm2 = vmmov (!%p249_p2), 0   ;;  %v695_v4 = vmov (!%p249_p2), 0   ;;  %v303_v8 = vld [vmem:[%s833_s2] sm:$0xf] (!%p249_p2)  ;;  %v368_v20 = vlaneseq (!%p249_p2) }
   0x7   : > { %644 = vmatprep.mubr.msk.bf16.mxu0 (!%p249_p2), %vm694_vm2, %v692_v1  ;;  %682 = vset.pattern.permute.xlu0 (!%p249_p2), %v695_v4  ;;  %v318_v5 = vsel (!%p249_p2), %vm316_vm1, %v317_v3, 0  ;;  %vm311_vm3 = vcmask (!%p249_p2), 23552   ;;  %vm366_vm4 = vcmask (!%p249_p2), 519168   ;;  %s696_s18 = smov (!%p249_p2), 9   ;;  %s697_s19 = smov (!%p249_p2), 8   ;;  %v470_v19 = vld [vmem:[%s836_s5] sm:$0xff] (!%p249_p2) }
   0x8   : > { %308 = vperm.xlu0 (!%p249_p2), %682, %v305_v0   ;;  %658 = vmatprep.mubr.msk.bf16.mxu1 (!%p249_p2), %vm694_vm2, %v692_v1  ;;  %s698_s20 = smov (!%p249_p2), 1   ;;  %s699_s21 = smov (!%p249_p2), 7   ;;  %v369_v21 = vand.u32 (!%p249_p2), 127, %v368_v20  ;;  %vm385_vm6 = vcmask (!%p249_p2), 72704   ;;  %vm397_vm7 = vcmask (!%p249_p2), 64512   ;;  %vm413_vm9 = vcmask (!%p249_p2), 7168  }
   0x9   : > { %683 = vset.pattern.permute.xlu1 (!%p249_p2), %v695_v4  ;;  %s700_s22 = smov (!%p249_p2), 127   ;;  %s701_s23 = smov (!%p249_p2), 120   ;;  %vm452_vm10 = vcmask (!%p249_p2), 1043456   ;;  %vm402_vm11 = vcmask (!%p249_p2), 56320   ;;  %vm420_vm14 = vcmask (!%p249_p2), 515072   ;;  %vm434_vm15 = vcmask (!%p249_p2), 457728  }
   0xa   : > { %s703_s26 = smov (!%p249_p2), 119   ;;  %v374_v22 = vand.u32 (!%p249_p2), 7, %v369_v21  ;;  %vm427_vm0 = vcmask (!%p249_p2), 465920   ;;  %vm439_vm1 = vcmask (!%p249_p2), 449536   ;;  %v469_v56 = vld [vmem:[%s835_s4] sm:$0xf] (!%p249_p2) }
   0xb   : > { %vm476_vm2 = vcmask (!%p249_p2), 588800  }
   0xc   : > { %vm390_vm5 = vcmp.ge.s32.totalorder (!%p249_p2), %v374_v22, 1  ;;  %vm406_vm12 = vcmp.le.s32.totalorder (!%p249_p2), %v374_v22, 6 }
   0xd   : > { %s844_s25 = smov (!%p286_p3, %s621_s25), 1  ;;  %vm790_vm8 = vmpackc.low %vm390_vm5, %vm390_vm5 }
   0xe   : > { %s626_s28 = sshll.u32 %s844_s25, 1  ;;  %s765_s11 = sshll.u32 %s844_s25, 2  ;;  %vm797_vm13 = vmpackc.low %vm406_vm12, %vm406_vm12 }
   0xf   : > { %s289_s8 = scalar_lea.vmem %s831_s0, %s626_s28  ;;  %s293_s14 = scalar_lea.vmem %s832_s1, %s765_s11 }
  0x10   : > { %v304_v6 = vld [vmem:[%s289_s8] sm:$0x3]  ;;  %s297_s17 = scalar_lea.vmem %s837_s6, %s765_s11  ;;  %s702_s25 = smov 121  }
  0x11   : > { %v320_v7 = vand.u32 %v318_v5, %v304_v6  ;;  %v362_v9 = vld [vmem:[%s293_s14] sm:$0xf]  ;;  %s301_s10 = scalar_lea.vmem %s838_s7, %s765_s11 }
  0x12   : > { %v363_v11 = vunpack.c.l.bf16 %v362_v9 }
  0x13   : > { %643 = vmatpush3.bf16.msra.mxu0 %v320_v7 }
  0x16   : > { %645 = vmatmul.mubr.msk.bf16.vlgmr.msra.gmra.mrb[0].mxu0 %vm311_vm3, %v303_v8 }
  0x87   : > { %v309_v10 = vpop.permute.xlu0 %308 }
  0xe9   : > { %v356_v12 = vpop.f32.mrb[0].mxu0 }
  0xea   : > { %v357_v13 = vadd.f32 %v356_v12, %v309_v10  ;;  %v646_v14 = vpop.f32.mrb[1].mxu0 }
  0xeb   : > { %v359_v15 = vpop.f32.mrb[2].mxu0 }
  0xec   : > { %v364_v16 = vadd.f32 %v363_v11, %v357_v13  ;;  %v647_v17 = vpop.f32.mrb[3].mxu0 }
  0xee   : > { %v775_v18 = vpack.c.bf16 %v364_v16, %v364_v16 }
  0xf0   : > { %383 = vrot.lane.b32.xlu1 %v775_v18, %s696_s18  ;;  %395 = vrot.lane.b32.xlu0 %v775_v18, %s697_s19  ;;  %367 = vst.msk [vmem:[%s297_s17] sm:$0xf] %vm366_vm4, %v775_v18 }
  0xf4   : > { %411 = vrot.lane.b32.xlu1 %v775_v18, %s698_s20  ;;  %400 = vrot.lane.b32.xlu0 %v775_v18, %s699_s21 }
  0xf8   : > { %418 = vrot.lane.b32.xlu1 %v775_v18, %s700_s22  ;;  %432 = vrot.lane.b32.xlu0 %v775_v18, %s701_s23 }
  0xfc   : > { %425 = vrot.lane.b32.xlu1 %v775_v18, %s702_s25  ;;  %437 = vrot.lane.b32.xlu0 %v775_v18, %s703_s26 }
 0x100   : > { %473 = vperm.xlu1 %683, %v470_v19  }
 0x162   : > { %v384_v24 = vpop.permute.xlu1 %383  ;;  %v396_v25 = vpop.permute.xlu0 %395 }
 0x163   : > { %v388_v26 = vsel %vm385_vm6, 0, %v384_v24  ;;  %v399_v27 = vsel %vm397_vm7, 0, %v396_v25 }
 0x164   : > { %v394_v28 = vsel %vm790_vm8, %v388_v26, 0  ;;  %v445_v29 = vrot.slane %v399_v27, 4 }
 0x166   : > { %v412_v30 = vpop.permute.xlu1 %411  ;;  %v401_v31 = vpop.permute.xlu0 %400  ;;  %v455_v32 = vsel %vm452_vm10, %v394_v28, %v445_v29 }
 0x167   : > { %v415_v33 = vsel %vm413_vm9, 0, %v412_v30  ;;  %v404_v35 = vsel %vm402_vm11, 0, %v401_v31  ;;  %649 = vmatpush3.bf16.msra.mxu1 %v455_v32 }
 0x168   : > { %v417_v36 = vsel %vm790_vm8, %v415_v33, 0  ;;  %650 = vmatprep.subr.bf16.mxu1 %v692_v1  ;;  %v410_v38 = vsel %vm797_vm13, %v404_v35, 0 }
 0x169   : > { %v447_v37 = vrot.slane %v417_v36, 4 }
 0x16a   : > { %v419_v39 = vpop.permute.xlu1 %418  ;;  %v433_v40 = vpop.permute.xlu0 %432 }
 0x16b   : > { %v422_v41 = vsel %vm420_vm14, %v419_v39, 0  ;;  %v459_v42 = vsel %vm452_vm10, %v410_v38, %v447_v37  ;;  %v436_v45 = vsel %vm434_vm15, %v433_v40, 0 }
 0x16c   : > { %v424_v43 = vsel %vm797_vm13, %v422_v41, 0  ;;  %651 = vmatpush3.bf16.msra.mxu1 %v459_v42  ;;  %v451_v51 = vrot.slane %v436_v45, 4 }
 0x16d   : > { %v449_v44 = vrot.slane %v424_v43, 4  ;;  %652 = vmatprep.subr.bf16.mxu1 %v692_v1 }
 0x16e   : > { %v426_v46 = vpop.permute.xlu1 %425  ;;  %v438_v47 = vpop.permute.xlu0 %437 }
 0x16f   : > { %v429_v48 = vsel %vm427_vm0, %v426_v46, 0  ;;  %v463_v49 = vsel %vm452_vm10, %v775_v18, %v449_v44  ;;  %v441_v52 = vsel %vm439_vm1, %v438_v47, 0 }
 0x170   : > { %v431_v50 = vsel %vm790_vm8, %v429_v48, 0  ;;  %653 = vmatpush3.bf16.msra.mxu1 %v463_v49  ;;  %v443_v54 = vsel %vm797_vm13, %v441_v52, 0 }
 0x171   : > { %654 = vmatprep.subr.bf16.mxu1 %v692_v1  ;;  %v467_v53 = vsel %vm452_vm10, %v431_v50, %v451_v51  ;;  %v481_v55 = vsel %vm452_vm10, %v443_v54, 0 }
 0x174   : > { %655 = vmatpush3.bf16.msra.mxu1 %v467_v53 }
 0x175   : > { %656 = vmatprep.subr.bf16.mxu1 %v692_v1 }
 0x178   : > { %657 = vmatpush3.bf16.msra.mxu1 %v481_v55 }
 0x17b   : > { %659 = vmatmul.mubr.msk.bf16.vlgmr.msra.gmra.mrb[0].mxu1 %vm476_vm2, %v469_v56 }
 0x17f   : > { %v474_v57 = vpop.permute.xlu1 %473 }
 0x24e   : > { %v517_v58 = vpop.f32.mrb[0].mxu1 }
 0x24f   : > { %v518_v59 = vadd.f32 %v517_v58, %v474_v57  ;;  %v660_v60 = vpop.f32.mrb[1].mxu1 }
 0x250   : > { %v520_v61 = vpop.f32.mrb[2].mxu1 }
 0x251   : > { %v523_v62 = vpack.c.bf16 %v518_v59, %v518_v59  ;;  %v661_v63 = vpop.f32.mrb[3].mxu1 }
 0x253   : > { %524 = vst.msk [vmem:[%s301_s10] sm:$0xf] %vm366_vm4, %v523_v62 }
 0x254 PF: > { %s18_s24 = sadd.s32 1, %s690_s24  }
 0x255   : > { %p15_p4 = scmp.ge.s32.totalorder %s18_s24, 4  }
 0x257   :  { %17 = sbr.rel (!%p15_p4) target bundleno = 1 (0x1), region = 89 }

// kernel: model_forward.8
= control target key start
LH: loop header
LB: loop body
LE: loop exit
PB: predicated region body
PF: predicated region fallthrough
CT: control target
= control target key end

     0   :  { %s724_s24 = smov 0   ;;  %s806_s0 = inlined_call_operand.vmem [shape: bf16[2,3,4], index: 0, kind: input, shape index: {}]   ;;  %s807_s1 = inlined_call_operand.vmem [shape: bf16[2,8,4], index: 1, kind: input, shape index: {}]   ;;  %s808_s2 = inlined_call_operand.vmem [shape: bf16[8,3], index: 2, kind: input, shape index: {}]   ;;  %s809_s3 = inlined_call_operand.vmem [shape: f32[8,1], index: 3, kind: input, shape index: {}]   ;;  %s810_s4 = inlined_call_operand.vmem [shape: bf16[8,72], index: 4, kind: input, shape index: {}]   ;;  %s811_s5 = inlined_call_operand.vmem [shape: f32[8,1], index: 5, kind: input, shape index: {}]   ;;  %s812_s6 = inlined_call_operand.vmem [shape: bf16[2,8,4], index: 6, kind: output, shape index: {0}]   ;;  %s813_s7 = inlined_call_operand.vmem [shape: bf16[2,8,4], index: 7, kind: output, shape index: {1}]  }
   0x1 LB: > { %s605_s25 = sadd.s32 4294967295, %s672_s24   ;;  %p609_p0 = scmp.ge.s32.totalorder %s672_s24, 1  ;;  %s672_s24 = sphi %s724_s24, %s18_s24  }
   0x2   : > { %p248_p1 = scmp.lt.s32.totalorder %s672_s24, 3 }
   0x4   : > { %p249_p2 = pnand %p609_p0, %p248_p1 }
   0x5   : > { %p286_p3 = scmp.lt.s32.totalorder (!%p249_p2), %s605_s25, 1  ;;  %vm315_vm0 = vcmask (!%p249_p2), 1040384   ;;  %v305_v0 = vld [vmem:[%s809_s3] sm:$0xff] (!%p249_p2)  ;;  %v674_v1 = vmov (!%p249_p2), 0.0   ;;  %vm316_vm1 = vcmask (!%p249_p2), 1041408   ;;  %v675_v2 = vmov (!%p249_p2), 65535  }
   0x6   : > { %252 = sbr.rel (%p249_p2) target bundleno = 596 (0x254), region = 44  ;;  %626 = vmatprep.subr.bf16.mxu0 (!%p249_p2), %v674_v1  ;;  %v317_v3 = vsel (!%p249_p2), %vm315_vm0, 4294967295, %v675_v2  ;;  %632 = vmatprep.subr.bf16.mxu1 (!%p249_p2), %v674_v1  ;;  %vm676_vm2 = vmmov (!%p249_p2), 0   ;;  %v677_v4 = vmov (!%p249_p2), 0   ;;  %v303_v8 = vld [vmem:[%s808_s2] sm:$0xf] (!%p249_p2)  ;;  %v368_v20 = vlaneseq (!%p249_p2) }
   0x7   : > { %628 = vmatprep.mubr.msk.bf16.mxu0 (!%p249_p2), %vm676_vm2, %v674_v1  ;;  %664 = vset.pattern.permute.xlu0 (!%p249_p2), %v677_v4  ;;  %v318_v5 = vsel (!%p249_p2), %vm316_vm1, %v317_v3, 0  ;;  %vm311_vm3 = vcmask (!%p249_p2), 23552   ;;  %vm366_vm4 = vcmask (!%p249_p2), 27648   ;;  %s678_s18 = smov (!%p249_p2), 3   ;;  %s679_s19 = smov (!%p249_p2), 2   ;;  %v454_v19 = vld [vmem:[%s811_s5] sm:$0xff] (!%p249_p2) }
   0x8   : > { %308 = vperm.xlu0 (!%p249_p2), %664, %v305_v0   ;;  %642 = vmatprep.mubr.msk.bf16.mxu1 (!%p249_p2), %vm676_vm2, %v674_v1  ;;  %s680_s20 = smov (!%p249_p2), 1   ;;  %s681_s21 = smov (!%p249_p2), 127   ;;  %v369_v21 = vand.u32 (!%p249_p2), 127, %v368_v20  ;;  %vm396_vm6 = vcmask (!%p249_p2), 15360   ;;  %vm436_vm9 = vcmask (!%p249_p2), 1043456   ;;  %vm401_vm10 = vcmask (!%p249_p2), 7168  }
   0x9   : > { %665 = vset.pattern.permute.xlu1 (!%p249_p2), %v677_v4  ;;  %s682_s22 = smov (!%p249_p2), 126   ;;  %s683_s23 = smov (!%p249_p2), 125   ;;  %v453_v52 = vld [vmem:[%s810_s4] sm:$0xf] (!%p249_p2)  ;;  %vm460_vm12 = vcmask (!%p249_p2), 588800  }
   0xa   : > { %v374_v22 = vand.u32 (!%p249_p2), 1, %v369_v21 }
   0xc   : > { %vm389_vm5 = vcmp.ge.s32.totalorder (!%p249_p2), %v374_v22, 1  ;;  %vm405_vm8 = vcmp.le.s32.totalorder (!%p249_p2), %v374_v22, 0 }
   0xd   : > { %s819_s25 = smov (!%p286_p3, %s605_s25), 1  ;;  %vm760_vm7 = vmpackc.low %vm389_vm5, %vm389_vm5 }
   0xe   : > { %s610_s28 = sshll.u32 %s819_s25, 1  ;;  %s746_s11 = sshll.u32 %s819_s25, 2  ;;  %vm768_vm11 = vmpackc.low %vm405_vm8, %vm405_vm8 }
   0xf   : > { %s289_s8 = scalar_lea.vmem %s806_s0, %s610_s28  ;;  %s293_s14 = scalar_lea.vmem %s807_s1, %s746_s11 }
  0x10   : > { %v304_v6 = vld [vmem:[%s289_s8] sm:$0x3]  ;;  %s297_s17 = scalar_lea.vmem %s812_s6, %s746_s11  ;;  %s301_s8 = scalar_lea.vmem %s813_s7, %s746_s11 }
  0x11   : > { %v320_v7 = vand.u32 %v318_v5, %v304_v6  ;;  %v362_v9 = vld [vmem:[%s293_s14] sm:$0xf] }
  0x12   : > { %v363_v11 = vunpack.c.l.bf16 %v362_v9 }
  0x13   : > { %627 = vmatpush3.bf16.msra.mxu0 %v320_v7 }
  0x16   : > { %629 = vmatmul.mubr.msk.bf16.vlgmr.msra.gmra.mrb[0].mxu0 %vm311_vm3, %v303_v8 }
  0x87   : > { %v309_v10 = vpop.permute.xlu0 %308 }
  0xe9   : > { %v356_v12 = vpop.f32.mrb[0].mxu0 }
  0xea   : > { %v357_v13 = vadd.f32 %v356_v12, %v309_v10  ;;  %v630_v14 = vpop.f32.mrb[1].mxu0 }
  0xeb   : > { %v359_v15 = vpop.f32.mrb[2].mxu0 }
  0xec   : > { %v364_v16 = vadd.f32 %v363_v11, %v357_v13  ;;  %v631_v17 = vpop.f32.mrb[3].mxu0 }
  0xee   : > { %v365_v18 = vpack.c.bf16 %v364_v16, %v364_v16 }
  0xf0   : > { %383 = vrot.lane.b32.xlu1 %v365_v18, %s678_s18  ;;  %394 = vrot.lane.b32.xlu0 %v365_v18, %s679_s19  ;;  %367 = vst.msk [vmem:[%s297_s17] sm:$0xf] %vm366_vm4, %v365_v18 }
  0xf4   : > { %399 = vrot.lane.b32.xlu1 %v365_v18, %s680_s20  ;;  %411 = vrot.lane.b32.xlu0 %v365_v18, %s681_s21 }
  0xf8   : > { %418 = vrot.lane.b32.xlu1 %v365_v18, %s682_s22  ;;  %422 = vrot.lane.b32.xlu0 %v365_v18, %s683_s23 }
  0xfc   : > { %457 = vperm.xlu1 %665, %v454_v19  }
 0x162   : > { %v384_v24 = vpop.permute.xlu1 %383  ;;  %v395_v25 = vpop.permute.xlu0 %394 }
 0x163   : > { %v387_v26 = vsel %vm311_vm3, 0, %v384_v24  ;;  %v398_v27 = vsel %vm396_vm6, 0, %v395_v25 }
 0x164   : > { %v393_v28 = vsel %vm760_vm7, %v387_v26, 0  ;;  %v429_v29 = vrot.slane %v398_v27, 4 }
 0x166   : > { %v400_v31 = vpop.permute.xlu1 %399  ;;  %v412_v32 = vpop.permute.xlu0 %411  ;;  %v439_v33 = vsel %vm436_vm9, %v393_v28, %v429_v29 }
 0x167   : > { %v403_v34 = vsel %vm401_vm10, 0, %v400_v31  ;;  %v414_v35 = vsel %vm311_vm3, %v412_v32, 0  ;;  %633 = vmatpush3.bf16.msra.mxu1 %v439_v33 }
 0x168   : > { %v410_v36 = vsel %vm760_vm7, %v403_v34, 0  ;;  %v416_v37 = vsel %vm768_vm11, %v414_v35, 0  ;;  %634 = vmatprep.subr.bf16.mxu1 %v674_v1  ;;  %v409_v39 = vsel %vm768_vm11, %v403_v34, 0  ;;  %v417_v48 = vsel %vm760_vm7, %v414_v35, 0 }
 0x169   : > { %v431_v38 = vrot.slane %v410_v36, 4  ;;  %v433_v41 = vrot.slane %v416_v37, 4 }
 0x16a   : > { %v419_v40 = vpop.permute.xlu1 %418  ;;  %v423_v44 = vpop.permute.xlu0 %422 }
 0x16b   : > { %v443_v42 = vsel %vm436_vm9, %v409_v39, %v431_v38  ;;  %v421_v43 = vsel %vm396_vm6, %v419_v40, 0  ;;  %v447_v46 = vsel %vm436_vm9, %v365_v18, %v433_v41  ;;  %v425_v47 = vsel %vm401_vm10, %v423_v44, 0 }
 0x16c   : > { %635 = vmatpush3.bf16.msra.mxu1 %v443_v42  ;;  %v435_v45 = vrot.slane %v421_v43, 4  ;;  %v427_v50 = vsel %vm768_vm11, %v425_v47, 0 }
 0x16d   : > { %636 = vmatprep.subr.bf16.mxu1 %v674_v1  ;;  %v465_v51 = vsel %vm436_vm9, %v427_v50, 0 }
 0x16e   : > { %v451_v49 = vsel %vm436_vm9, %v417_v48, %v435_v45 }
 0x170   : > { %637 = vmatpush3.bf16.msra.mxu1 %v447_v46 }
 0x171   : > { %638 = vmatprep.subr.bf16.mxu1 %v674_v1 }
 0x174   : > { %639 = vmatpush3.bf16.msra.mxu1 %v451_v49 }
 0x175   : > { %640 = vmatprep.subr.bf16.mxu1 %v674_v1 }
 0x178   : > { %641 = vmatpush3.bf16.msra.mxu1 %v465_v51 }
 0x17b   : > { %643 = vmatmul.mubr.msk.bf16.vlgmr.msra.gmra.mrb[0].mxu1 %vm460_vm12, %v453_v52  ;;  %v458_v53 = vpop.permute.xlu1 %457 }
 0x24e   : > { %v501_v54 = vpop.f32.mrb[0].mxu1 }
 0x24f   : > { %v502_v55 = vadd.f32 %v501_v54, %v458_v53  ;;  %v644_v56 = vpop.f32.mrb[1].mxu1 }
 0x250   : > { %v504_v57 = vpop.f32.mrb[2].mxu1 }
 0x251   : > { %v507_v58 = vpack.c.bf16 %v502_v55, %v502_v55  ;;  %v645_v59 = vpop.f32.mrb[3].mxu1 }
 0x253   : > { %508 = vst.msk [vmem:[%s301_s8] sm:$0xf] %vm366_vm4, %v507_v58 }
 0x254 PF: > { %s18_s24 = sadd.s32 1, %s672_s24  }
 0x255   : > { %p15_p4 = scmp.ge.s32.totalorder %s18_s24, 4  }
 0x257   :  { %17 = sbr.rel (!%p15_p4) target bundleno = 1 (0x1), region = 89 }

// kernel: model_forward.9
= control target key start
LH: loop header
LB: loop body
LE: loop exit
PB: predicated region body
PF: predicated region fallthrough
CT: control target
= control target key end

     0   :  { %s743_s24 = smov 0   ;;  %s832_s0 = inlined_call_operand.vmem [shape: bf16[2,3,16], index: 0, kind: input, shape index: {}]   ;;  %s833_s1 = inlined_call_operand.vmem [shape: bf16[2,8,16], index: 1, kind: input, shape index: {}]   ;;  %s834_s2 = inlined_call_operand.vmem [shape: bf16[8,3], index: 2, kind: input, shape index: {}]   ;;  %s835_s3 = inlined_call_operand.vmem [shape: f32[8,1], index: 3, kind: input, shape index: {}]   ;;  %s836_s4 = inlined_call_operand.vmem [shape: bf16[8,72], index: 4, kind: input, shape index: {}]   ;;  %s837_s5 = inlined_call_operand.vmem [shape: f32[8,1], index: 5, kind: input, shape index: {}]   ;;  %s838_s6 = inlined_call_operand.vmem [shape: bf16[2,8,16], index: 6, kind: output, shape index: {0}]   ;;  %s839_s7 = inlined_call_operand.vmem [shape: bf16[2,8,16], index: 7, kind: output, shape index: {1}]  }
   0x1 LB: > { %s620_s25 = sadd.s32 4294967295, %s689_s24   ;;  %p624_p0 = scmp.ge.s32.totalorder %s689_s24, 1  ;;  %s689_s24 = sphi %s743_s24, %s18_s24  }
   0x2   : > { %p248_p1 = scmp.lt.s32.totalorder %s689_s24, 3 }
   0x4   : > { %p249_p2 = pnand %p624_p0, %p248_p1 }
   0x5   : > { %p286_p3 = scmp.lt.s32.totalorder (!%p249_p2), %s620_s25, 1  ;;  %vm315_vm0 = vcmask (!%p249_p2), 1040384   ;;  %v305_v0 = vld [vmem:[%s835_s3] sm:$0xff] (!%p249_p2)  ;;  %v691_v1 = vmov (!%p249_p2), 0.0   ;;  %vm316_vm1 = vcmask (!%p249_p2), 1041408   ;;  %v692_v2 = vmov (!%p249_p2), 65535  }
   0x6   : > { %252 = sbr.rel (%p249_p2) target bundleno = 596 (0x254), region = 44  ;;  %641 = vmatprep.subr.bf16.mxu0 (!%p249_p2), %v691_v1  ;;  %v317_v3 = vsel (!%p249_p2), %vm315_vm0, 4294967295, %v692_v2  ;;  %647 = vmatprep.subr.bf16.mxu1 (!%p249_p2), %v691_v1  ;;  %vm693_vm2 = vmmov (!%p249_p2), 0   ;;  %v694_v4 = vmov (!%p249_p2), 0   ;;  %v303_v8 = vld [vmem:[%s834_s2] sm:$0xf] (!%p249_p2)  ;;  %v368_v20 = vlaneseq (!%p249_p2) }
   0x7   : > { %643 = vmatprep.mubr.msk.bf16.mxu0 (!%p249_p2), %vm693_vm2, %v691_v1  ;;  %681 = vset.pattern.permute.xlu0 (!%p249_p2), %v694_v4  ;;  %v318_v5 = vsel (!%p249_p2), %vm316_vm1, %v317_v3, 0  ;;  %vm311_vm3 = vcmask (!%p249_p2), 23552   ;;  %vm366_vm4 = vcmask (!%p249_p2), 125952   ;;  %s695_s18 = smov (!%p249_p2), 5   ;;  %s696_s19 = smov (!%p249_p2), 4   ;;  %v469_v19 = vld [vmem:[%s837_s5] sm:$0xff] (!%p249_p2) }
   0x8   : > { %308 = vperm.xlu0 (!%p249_p2), %681, %v305_v0   ;;  %657 = vmatprep.mubr.msk.bf16.mxu1 (!%p249_p2), %vm693_vm2, %v691_v1  ;;  %s697_s20 = smov (!%p249_p2), 1   ;;  %s698_s21 = smov (!%p249_p2), 3   ;;  %v369_v21 = vand.u32 (!%p249_p2), 127, %v368_v20  ;;  %vm385_vm6 = vcmask (!%p249_p2), 39936   ;;  %vm397_vm7 = vcmask (!%p249_p2), 31744   ;;  %vm451_vm9 = vcmask (!%p249_p2), 1043456  }
   0x9   : > { %682 = vset.pattern.permute.xlu1 (!%p249_p2), %v694_v4  ;;  %s699_s22 = smov (!%p249_p2), 127   ;;  %s700_s23 = smov (!%p249_p2), 124   ;;  %vm412_vm10 = vcmask (!%p249_p2), 7168   ;;  %vm419_vm13 = vcmask (!%p249_p2), 121856   ;;  %vm433_vm14 = vcmask (!%p249_p2), 97280   ;;  %vm426_vm15 = vcmask (!%p249_p2), 105472  }
   0xa   : > { %s702_s26 = smov (!%p249_p2), 123   ;;  %v374_v22 = vand.u32 (!%p249_p2), 3, %v369_v21  ;;  %vm438_vm0 = vcmask (!%p249_p2), 89088   ;;  %v468_v56 = vld [vmem:[%s836_s4] sm:$0xf] (!%p249_p2)  ;;  %vm475_vm1 = vcmask (!%p249_p2), 588800  }
   0xc   : > { %vm390_vm5 = vcmp.ge.s32.totalorder (!%p249_p2), %v374_v22, 1  ;;  %vm405_vm11 = vcmp.le.s32.totalorder (!%p249_p2), %v374_v22, 2 }
   0xd   : > { %s845_s25 = smov (!%p286_p3, %s620_s25), 1  ;;  %vm790_vm8 = vmpackc.low %vm390_vm5, %vm390_vm5 }
   0xe   : > { %s625_s28 = sshll.u32 %s845_s25, 1  ;;  %s765_s11 = sshll.u32 %s845_s25, 2  ;;  %vm797_vm12 = vmpackc.low %vm405_vm11, %vm405_vm11 }
   0xf   : > { %s289_s8 = scalar_lea.vmem %s832_s0, %s625_s28  ;;  %s293_s14 = scalar_lea.vmem %s833_s1, %s765_s11 }
  0x10   : > { %v304_v6 = vld [vmem:[%s289_s8] sm:$0x3]  ;;  %s297_s17 = scalar_lea.vmem %s838_s6, %s765_s11  ;;  %s701_s25 = smov 125  }
  0x11   : > { %v320_v7 = vand.u32 %v318_v5, %v304_v6  ;;  %v362_v9 = vld [vmem:[%s293_s14] sm:$0xf]  ;;  %s301_s10 = scalar_lea.vmem %s839_s7, %s765_s11 }
  0x12   : > { %v363_v11 = vunpack.c.l.bf16 %v362_v9 }
  0x13   : > { %642 = vmatpush3.bf16.msra.mxu0 %v320_v7 }
  0x16   : > { %644 = vmatmul.mubr.msk.bf16.vlgmr.msra.gmra.mrb[0].mxu0 %vm311_vm3, %v303_v8 }
  0x87   : > { %v309_v10 = vpop.permute.xlu0 %308 }
  0xe9   : > { %v356_v12 = vpop.f32.mrb[0].mxu0 }
  0xea   : > { %v357_v13 = vadd.f32 %v356_v12, %v309_v10  ;;  %v645_v14 = vpop.f32.mrb[1].mxu0 }
  0xeb   : > { %v359_v15 = vpop.f32.mrb[2].mxu0 }
  0xec   : > { %v364_v16 = vadd.f32 %v363_v11, %v357_v13  ;;  %v646_v17 = vpop.f32.mrb[3].mxu0 }
  0xee   : > { %v775_v18 = vpack.c.bf16 %v364_v16, %v364_v16 }
  0xf0   : > { %383 = vrot.lane.b32.xlu1 %v775_v18, %s695_s18  ;;  %395 = vrot.lane.b32.xlu0 %v775_v18, %s696_s19  ;;  %367 = vst.msk [vmem:[%s297_s17] sm:$0xf] %vm366_vm4, %v775_v18 }
  0xf4   : > { %410 = vrot.lane.b32.xlu1 %v775_v18, %s697_s20  ;;  %400 = vrot.lane.b32.xlu0 %v775_v18, %s698_s21 }
  0xf8   : > { %417 = vrot.lane.b32.xlu1 %v775_v18, %s699_s22  ;;  %431 = vrot.lane.b32.xlu0 %v775_v18, %s700_s23 }
  0xfc   : > { %424 = vrot.lane.b32.xlu1 %v775_v18, %s701_s25  ;;  %436 = vrot.lane.b32.xlu0 %v775_v18, %s702_s26 }
 0x100   : > { %472 = vperm.xlu1 %682, %v469_v19  }
 0x162   : > { %v384_v24 = vpop.permute.xlu1 %383  ;;  %v396_v25 = vpop.permute.xlu0 %395 }
 0x163   : > { %v388_v26 = vsel %vm385_vm6, 0, %v384_v24  ;;  %v399_v27 = vsel %vm397_vm7, 0, %v396_v25 }
 0x164   : > { %v394_v28 = vsel %vm790_vm8, %v388_v26, 0  ;;  %v444_v29 = vrot.slane %v399_v27, 4 }
 0x166   : > { %v411_v30 = vpop.permute.xlu1 %410  ;;  %v401_v31 = vpop.permute.xlu0 %400  ;;  %v454_v32 = vsel %vm451_vm9, %v394_v28, %v444_v29 }
 0x167   : > { %v414_v33 = vsel %vm412_vm10, 0, %v411_v30  ;;  %v403_v35 = vsel %vm311_vm3, 0, %v401_v31  ;;  %648 = vmatpush3.bf16.msra.mxu1 %v454_v32 }
 0x168   : > { %v416_v36 = vsel %vm790_vm8, %v414_v33, 0  ;;  %649 = vmatprep.subr.bf16.mxu1 %v691_v1  ;;  %v409_v38 = vsel %vm797_vm12, %v403_v35, 0 }
 0x169   : > { %v446_v37 = vrot.slane %v416_v36, 4 }
 0x16a   : > { %v418_v39 = vpop.permute.xlu1 %417  ;;  %v432_v40 = vpop.permute.xlu0 %431 }
 0x16b   : > { %v421_v41 = vsel %vm419_vm13, %v418_v39, 0  ;;  %v458_v42 = vsel %vm451_vm9, %v409_v38, %v446_v37  ;;  %v435_v45 = vsel %vm433_vm14, %v432_v40, 0 }
 0x16c   : > { %v423_v43 = vsel %vm797_vm12, %v421_v41, 0  ;;  %650 = vmatpush3.bf16.msra.mxu1 %v458_v42  ;;  %v450_v51 = vrot.slane %v435_v45, 4 }
 0x16d   : > { %v448_v44 = vrot.slane %v423_v43, 4  ;;  %651 = vmatprep.subr.bf16.mxu1 %v691_v1 }
 0x16e   : > { %v425_v46 = vpop.permute.xlu1 %424  ;;  %v437_v47 = vpop.permute.xlu0 %436 }
 0x16f   : > { %v428_v48 = vsel %vm426_vm15, %v425_v46, 0  ;;  %v462_v49 = vsel %vm451_vm9, %v775_v18, %v448_v44  ;;  %v440_v52 = vsel %vm438_vm0, %v437_v47, 0 }
 0x170   : > { %v430_v50 = vsel %vm790_vm8, %v428_v48, 0  ;;  %652 = vmatpush3.bf16.msra.mxu1 %v462_v49  ;;  %v442_v54 = vsel %vm797_vm12, %v440_v52, 0 }
 0x171   : > { %653 = vmatprep.subr.bf16.mxu1 %v691_v1  ;;  %v466_v53 = vsel %vm451_vm9, %v430_v50, %v450_v51  ;;  %v480_v55 = vsel %vm451_vm9, %v442_v54, 0 }
 0x174   : > { %654 = vmatpush3.bf16.msra.mxu1 %v466_v53 }
 0x175   : > { %655 = vmatprep.subr.bf16.mxu1 %v691_v1 }
 0x178   : > { %656 = vmatpush3.bf16.msra.mxu1 %v480_v55 }
 0x17b   : > { %658 = vmatmul.mubr.msk.bf16.vlgmr.msra.gmra.mrb[0].mxu1 %vm475_vm1, %v468_v56 }
 0x17f   : > { %v473_v57 = vpop.permute.xlu1 %472 }
 0x24e   : > { %v516_v58 = vpop.f32.mrb[0].mxu1 }
 0x24f   : > { %v517_v59 = vadd.f32 %v516_v58, %v473_v57  ;;  %v659_v60 = vpop.f32.mrb[1].mxu1 }
 0x250   : > { %v519_v61 = vpop.f32.mrb[2].mxu1 }
 0x251   : > { %v522_v62 = vpack.c.bf16 %v517_v59, %v517_v59  ;;  %v660_v63 = vpop.f32.mrb[3].mxu1 }
 0x253   : > { %523 = vst.msk [vmem:[%s301_s10] sm:$0xf] %vm366_vm4, %v522_v62 }
 0x254 PF: > { %s18_s24 = sadd.s32 1, %s689_s24  }
 0x255   : > { %p15_p4 = scmp.ge.s32.totalorder %s18_s24, 4  }
 0x257   :  { %17 = sbr.rel (!%p15_p4) target bundleno = 1 (0x1), region = 89 }

// kernel: tile.23
= control target key start
LH: loop header
LB: loop body
LE: loop exit
PB: predicated region body
PF: predicated region fallthrough
CT: control target
= control target key end

     0   :  { %s22_s0 = inlined_call_operand.vmem [shape: f32[8], index: 0, kind: input, shape index: {}]   ;;  %s23_s1 = inlined_call_operand.vmem [shape: f32[4,8], index: 1, kind: output, shape index: {}]  }
   0x1   :  { %v4_v0 = vld [vmem:[%s22_s0] ss:$0 sm:$0xff] }
   0x2   :  { %5 = vst [vmem:[%s23_s1] sm:$0xf] %v4_v0 }

// kernel: model_forward.11
= control target key start
LH: loop header
LB: loop body
LE: loop exit
PB: predicated region body
PF: predicated region fallthrough
CT: control target
= control target key end

     0   :  { %13 = vsyncpa [#allocation3], 0  ;;  %s1191_s0 = inlined_call_operand.vmem [shape: bf16[2,3,256], index: 0, kind: input, shape index: {}]   ;;  %s1192_s1 = inlined_call_operand.vmem [shape: bf16[2,8,256], index: 1, kind: input, shape index: {}]   ;;  %s1193_s2 = inlined_call_operand.vmem [shape: bf16[8,3], index: 2, kind: input, shape index: {}]   ;;  %s1194_s3 = inlined_call_operand.vmem [shape: f32[8,1], index: 3, kind: input, shape index: {}]   ;;  %s1195_s4 = inlined_call_operand.vmem [shape: bf16[8,72], index: 4, kind: input, shape index: {}]   ;;  %s1196_s5 = inlined_call_operand.vmem [shape: f32[8,1], index: 5, kind: input, shape index: {}]   ;;  %s1197_s6 = inlined_call_operand.hbm [shape: bf16[2,8,256], index: 6, kind: output, shape index: {0}]   ;;  %s1198_s7 = inlined_call_operand.vmem [shape: bf16[2,8,256], index: 7, kind: output, shape index: {1}]  }
   0x1   :  { %15 = vsyncpa [#allocation3 + $0x1], 0  ;;  %s986_s24 = smov 0   ;;  %s988_s25 = smov 0  }
   0x2   :  { %s990_s26 = smov 0   ;;  %s992_s27 = smov 0  }
   0x3 LB: > { %s1007_s28 = sadd.s32 4294967295, %s933_s27   ;;  %s792_s29 = sadd.s32 4294967294, %s933_s27   ;;  %s933_s27 = sphi %s992_s27, %s1206_s27   ;;  %s929_s26 = sphi %s990_s26, %s1205_s26   ;;  %s925_s25 = sphi %s988_s25, %s1204_s25   ;;  %s921_s24 = sphi %s986_s24, %s1203_s24  }
   0x4   : > { %s1011_s30 = sadd.s32 1, %s933_s27   ;;  %s164_s8 = sadd.s32 1, %s929_s26 }
   0x5   : > { %s161_s9 = ssub.s32 %s933_s27, %s1011_s30  ;;  %p174_p0 = scmp.ne.s32.totalorder %s929_s26, %s925_s25 }
   0x6   : > { %p162_p1 = scmp.eq.s32.totalorder %s161_s9, 0  ;;  %p175_p2 = scmp.eq.s32.totalorder %s1007_s28, 1 }
   0x7   : > { %p180_p3 = scmp.ne.s32.totalorder %s925_s25, %s921_s24  ;;  %p181_p4 = scmp.eq.s32.totalorder %s792_s29, 1 }
   0x8   : > { %s1022_s10 = scalar_select %p162_p1, %s929_s26, %s164_s8  }
   0x9   : > { %p1024_p5 = por %p175_p2, %p174_p0  ;;  %p1028_p6 = por %p181_p4, %p180_p3 }
   0xa   : > { %p795_p7 = scmp.ge.s32.totalorder %s933_s27, 1  ;;  %p253_p8 = scmp.lt.s32.totalorder %s933_s27, 3 }
   0xc   : > { %p254_p9 = pnand %p795_p7, %p253_p8 }
   0xd   : > { %p295_p10 = scmp.lt.s32.totalorder (!%p254_p9), %s1007_s28, 1  ;;  %vm334_vm0 = vcmask (!%p254_p9), 1040384   ;;  %v315_v0 = vld [vmem:[%s1194_s3] sm:$0xff] (!%p254_p9)  ;;  %v935_v1 = vmov (!%p254_p9), 0   ;;  %vm335_vm1 = vcmask (!%p254_p9), 1041408   ;;  %v936_v2 = vmov (!%p254_p9), 65535  }
   0xe   : > { %257 = sbr.rel (%p254_p9) target bundleno = 620 (0x26c), region = 44  ;;  %376 = vmatprep.mubr.bf16.mxu0 (!%p254_p9), %v935_v1  ;;  %869 = vset.pattern.permute.xlu0 (!%p254_p9), %v935_v1  ;;  %v336_v3 = vsel (!%p254_p9), %vm334_vm0, 4294967295, %v936_v2  ;;  %v313_v9 = vld [vmem:[%s1193_s2] sm:$0xf] (!%p254_p9)  ;;  %vm330_vm2 = vcmask (!%p254_p9), 23552   ;;  %s285_s9 = sand.u32 (!%p254_p9), 1, %s925_s25   ;;  %v399_v26 = vlaneseq (!%p254_p9) }
   0xf   : > { %318 = vperm.xlu0 (!%p254_p9), %869, %v315_v0   ;;  %655 = vmatprep.mubr.bf16.mxu1 (!%p254_p9), %v935_v1  ;;  %v337_v4 = vsel (!%p254_p9), %vm335_vm1, %v336_v3, 0  ;;  %s1061_s13 = sshll.u32 (!%p254_p9), %s285_s9, 3  ;;  %s937_s14 = smov (!%p254_p9), 17   ;;  %v607_v25 = vld [vmem:[%s1196_s5] sm:$0xff] (!%p254_p9)  ;;  %vm462_vm9 = vcmask (!%p254_p9), 130048   ;;  %vm430_vm10 = vcmask (!%p254_p9), 138240  }
  0x10   : > { %870 = vset.pattern.permute.xlu1 (!%p254_p9), %v935_v1  ;;  %s287_s17 = scalar_lea.vmem (!%p254_p9), [#allocation2], %s1061_s13  ;;  %s939_s18 = smov (!%p254_p9), 1   ;;  %v400_v27 = vand.u32 (!%p254_p9), 127, %v399_v26  ;;  %v447_v31 = vshrl.u32 (!%p254_p9), %v399_v26, 7  ;;  %vm502_vm11 = vcmask (!%p254_p9), 7168   ;;  %vm573_vm14 = vcmask (!%p254_p9), 1043456  }
  0x11   : > { %s941_s20 = smov (!%p254_p9), 127   ;;  %s942_s21 = smov (!%p254_p9), 112   ;;  %vm471_vm15 = vcmask (!%p254_p9), 121856  }
  0x12   : > { %s943_s23 = smov (!%p254_p9), 113   ;;  %s944_s29 = smov (!%p254_p9), 111   ;;  %v401_v28 = vadd.s32 (!%p254_p9), 128, %v400_v27  ;;  %v406_v29 = vand.u32 (!%p254_p9), 15, %v400_v27  ;;  %v448_v32 = vsub.s32 (!%p254_p9), 0, %v447_v31  ;;  %v452_v36 = vsub.s32 (!%p254_p9), 4, %v447_v31 }
  0x14   : > { %v413_v30 = vand.u32 (!%p254_p9), 15, %v401_v28  ;;  %vm438_vm3 = vcmp.ge.s32.totalorder (!%p254_p9), %v406_v29, 1  ;;  %vm478_vm6 = vcmp.le.s32.totalorder (!%p254_p9), %v406_v29, 14 }
  0x15   : > { %s1041_s15 = scalar_select %p295_p10, %s1007_s28, 1 }
  0x16   : > { %vm439_vm4 = vcmp.ge.s32.totalorder %v413_v30, 1  ;;  %vm479_vm7 = vcmp.le.s32.totalorder %v413_v30, 14 }
  0x17   : > { %s814_s16 = sshll.u32 %s1041_s15, 2  ;;  %s1199_s22 = sshll.u32 %s1041_s15, 3  ;;  %vm444_vm5 = vmpackc.low %vm439_vm4, %vm438_vm3  ;;  %vm541_vm3 = vcmask 916480   ;;  %vm528_vm4 = vcmask 924672  }
  0x18   : > { %s299_s19 = scalar_lea.vmem %s1191_s0, %s814_s16  ;;  %s304_s8 = scalar_lea.vmem %s1192_s1, %s1199_s22  ;;  %v445_v35 = vsel %vm444_vm5, 65537, %v935_v1  ;;  %vm484_vm8 = vmpackc.low %vm479_vm7, %vm478_vm6  ;;  %vm550_vm5 = vcmask 908288   ;;  %vm613_vm6 = vcmask 588800  }
  0x19   : > { %v803_v5 = vld.sshfl [vmem:[%s299_s19] sm:$0x33 pattern:$0x76325410]  ;;  %s938_s16 = smov 16   ;;  %s940_s19 = smov 15   ;;  %v1090_v37 = vrot.slane %v445_v35, %v448_v32  ;;  %v453_v40 = vrot.slane %v445_v35, %v452_v36 }
  0x1a   : > { %v329_v6 = vcombine.high %v803_v5, %v803_v5  ;;  %v339_v7 = vand.u32 %v803_v5, %v337_v4  ;;  %v385_v10 = vld [vmem:[%s304_s8] sm:$0xff]  ;;  %v485_v41 = vsel %vm484_vm8, 65537, %v935_v1  ;;  %s674_s8 = scalar_lea.sflag [#allocation3], %s285_s9 }
  0x1b   : > { %v386_v12 = vunpack.c.l.bf16 %v385_v10  ;;  %v387_v14 = vunpack.c.h.bf16 %v385_v10  ;;  %vm454_vm12 = vcmp.ne.s16.totalorder %v1090_v37, 0  ;;  %v1095_v44 = vrot.slane %v485_v41, %v448_v32  ;;  %v606_v37 = vld [vmem:[%s1195_s4] sm:$0xf] }
  0x1c   : > { %v342_v8 = vand.u32 %v337_v4, %v329_v6  ;;  %v1097_v45 = vrot.slane %v485_v41, %v452_v36  ;;  %vm455_vm13 = vcmp.ne.s16.totalorder %v453_v40, 0 }
  0x1d   : > { %vm494_vm0 = vcmp.ne.s16.totalorder %v1095_v44, 0 }
  0x1e   : > { %344 = vmatprep.subr.bf16.mxu0 %v342_v8  ;;  %vm495_vm1 = vcmp.ne.s16.totalorder %v1097_v45, 0 }
  0x1f   : > { %345 = vmatpush1.bf16.msra.mxu0 %v339_v7 }
  0x22   : > { %804 = vmatmul.mubr.msk.bf16.vlgmr.msra.gmra.mrb[0].mxu0 %vm330_vm2, %v313_v9  ;;  %vm515_vm2 = vcmask 1039360  }
  0x8e   : > { %v319_v11 = vpop.permute.xlu0 %318 }
  0xf5   : > { %v378_v13 = vpop.f32.mrb[0].mxu0 }
  0xf6   : > { %v379_v15 = vadd.f32 %v378_v13, %v319_v11  ;;  %v380_v16 = vpop.f32.mrb[1].mxu0 }
  0xf7   : > { %v381_v17 = vadd.f32 %v380_v16, %v319_v11  ;;  %v382_v18 = vpop.f32.mrb[2].mxu0 }
  0xf8   : > { %v388_v19 = vadd.f32 %v386_v12, %v379_v15  ;;  %v383_v20 = vpop.f32.mrb[3].mxu0 }
  0xf9   : > { %v389_v21 = vadd.f32 %v387_v14, %v381_v17 }
  0xfa   : > { %v1063_v22 = vpack.c.bf16 %v388_v19, %v388_v19 }
  0xfb   : > { %v817_v23 = vpack.c.bf16 %v389_v21, %v388_v19  ;;  %v1070_v24 = vpack.c.bf16 %v389_v21, %v389_v21 }
  0xfc   : > { %426 = vrot.lane.b32.xlu1 %v1063_v22, %s937_s14  ;;  %458 = vrot.lane.b32.xlu0 %v1063_v22, %s938_s16 }
  0xfd   : > { %398 = vst [vmem:[%s287_s17] sm:$0xff] %v817_v23 }
 0x100   : > { %498 = vrot.lane.b32.xlu1 %v1063_v22, %s939_s18  ;;  %428 = vrot.lane.b32.xlu0 %v1070_v24, %s937_s14 }
 0x104   : > { %460 = vrot.lane.b32.xlu1 %v1070_v24, %s938_s16  ;;  %500 = vrot.lane.b32.xlu0 %v1070_v24, %s939_s18  ;;  %s945_s16 = smov [#allocation2]  }
 0x105   : > { %s875_s18 = sshll.u32 %s945_s16, 4  ;;  %s876_s18 = int_to_ptr.vmem [resolvable:$false] %s875_s18 }
 0x106   : > { %s877_s22 = scalar_lea.vmem %s876_s18, 256 }
 0x108   : > { %467 = vrot.lane.b32.xlu1 %v1063_v22, %s940_s19  ;;  %469 = vrot.lane.b32.xlu0 %v1070_v24, %s940_s19  ;;  %s819_s19 = sshll.u32 %s1007_s28, 7 }
 0x10c   : > { %513 = vrot.lane.b32.xlu1 %v1070_v24, %s941_s20  ;;  %511 = vrot.lane.b32.xlu0 %v1063_v22, %s941_s20  ;;  %s693_s20 = sshll.u32 %s287_s17, 4  ;;  %s694_s20 = int_to_ptr.vmem [resolvable:$true] %s693_s20 }
 0x10d   : > { %s871_s14 = scalar_lea.vmem %s694_s20, 128  ;;  %p878_p0 = scmp.lt.s32.totalorder %s694_s20, %s876_s18 }
 0x10e   : > { %p872_p11 = scmp.ne.s32.totalorder %s694_s20, %s871_s14  ;;  %p879_p1 = scmp.lt.s32.totalorder %s877_s22, %s871_s14 }
 0x110   : > { %539 = vrot.lane.b32.xlu1 %v1070_v24, %s942_s21  ;;  %526 = vrot.lane.b32.xlu0 %v1070_v24, %s943_s23  ;;  %p873_p12 = pnand %p872_p11, %p1024_p5  ;;  %p880_p2 = por %p879_p1, %p878_p0 }
 0x112   : > { %p874_p13 = pneg %p873_p12 }
 0x114   : > { %537 = vrot.lane.b32.xlu1 %v1063_v22, %s942_s21  ;;  %524 = vrot.lane.b32.xlu0 %v1063_v22, %s943_s23  ;;  %p881_p3 = pnand %p880_p2, %p874_p13 }
 0x118   : > { %546 = vrot.lane.b32.xlu1 %v1063_v22, %s944_s29  ;;  %548 = vrot.lane.b32.xlu0 %v1070_v24, %s944_s29  ;;  %s1148_s29 = scalar_lea.hbm %s1197_s6, %s819_s19 }
 0x11c   : > { %610 = vperm.xlu1 %870, %v607_v25  }
 0x16e   : > { %v427_v33 = vpop.permute.xlu1 %426  ;;  %v459_v34 = vpop.permute.xlu0 %458 }
 0x16f   : > { %v466_v42 = vsel %vm462_vm9, 0, %v459_v34  ;;  %v436_v43 = vsel %vm430_vm10, 0, %v427_v33 }
 0x170   : > { %v560_v49 = vrot.slane %v466_v42, 4  ;;  %v456_v55 = vsel %vm454_vm12, %v436_v43, 0 }
 0x172   : > { %v499_v38 = vpop.permute.xlu1 %498  ;;  %v429_v39 = vpop.permute.xlu0 %428  ;;  %v576_v0 = vsel %vm573_vm14, %v456_v55, %v560_v49 }
 0x173   : > { %v431_v46 = vsel %vm430_vm10, %v427_v33, %v429_v39  ;;  %v507_v50 = vsel %vm502_vm11, 0, %v499_v38 }
 0x174   : > { %v457_v56 = vsel %vm455_vm13, %v431_v46, 0  ;;  %v509_v57 = vsel %vm454_vm12, %v507_v50, 0 }
 0x175   : > { %v564_v3 = vrot.slane %v509_v57, 4 }
 0x176   : > { %v461_v47 = vpop.permute.xlu1 %460  ;;  %v501_v48 = vpop.permute.xlu0 %500 }
 0x177   : > { %v463_v51 = vsel %vm462_vm9, %v459_v34, %v461_v47  ;;  %v503_v52 = vsel %vm502_vm11, %v499_v38, %v501_v48 }
 0x178   : > { %v561_v53 = vrot.slane %v463_v51, 4  ;;  %v510_v54 = vsel %vm455_vm13, %v503_v52, 0 }
 0x179   : > { %v565_v61 = vrot.slane %v510_v54, 4 }
 0x17a   : > { %v468_v58 = vpop.permute.xlu1 %467  ;;  %v470_v59 = vpop.permute.xlu0 %469  ;;  %v580_v60 = vsel %vm573_vm14, %v457_v56, %v561_v53 }
 0x17b   : > { %v476_v62 = vsel %vm471_vm15, 0, %v468_v58  ;;  %v472_v63 = vsel %vm471_vm15, %v468_v58, %v470_v59  ;;  %623 = vmatprep.subr.bf16.mxu1 %v580_v60 }
 0x17c   : > { %v496_v1 = vsel %vm494_vm0, %v476_v62, 0  ;;  %v497_v2 = vsel %vm495_vm1, %v472_v63, 0  ;;  %624 = vmatpush1.bf16.msra.mxu1 %v576_v0 }
 0x17d   : > { %v588_v4 = vsel %vm573_vm14, %v497_v2, %v565_v61  ;;  %v584_v9 = vsel %vm573_vm14, %v496_v1, %v564_v3 }
 0x17e   : > { %v514_v5 = vpop.permute.xlu1 %513  ;;  %625 = vmatprep.subr.bf16.mxu1 %v588_v4  ;;  %v512_v6 = vpop.permute.xlu0 %511 }
 0x17f   : > { %v520_v7 = vsel %vm515_vm2, %v514_v5, 0  ;;  %v516_v8 = vsel %vm515_vm2, %v512_v6, %v514_v5 }
 0x180   : > { %v523_v10 = vsel %vm495_vm1, %v520_v7, 0  ;;  %v522_v11 = vsel %vm494_vm0, %v516_v8, 0  ;;  %626 = vmatpush1.bf16.msra.mxu1 %v584_v9 }
 0x181   : > { %v569_v12 = vrot.slane %v523_v10, 4  ;;  %v568_v13 = vrot.slane %v522_v11, 4 }
 0x182   : > { %v540_v14 = vpop.permute.xlu1 %539  ;;  %v527_v15 = vpop.permute.xlu0 %526 }
 0x183   : > { %v545_v16 = vsel %vm541_vm3, %v540_v14, 0  ;;  %v533_v17 = vsel %vm528_vm4, %v527_v15, 0  ;;  %v596_v18 = vsel %vm573_vm14, %v1070_v24, %v569_v12  ;;  %v592_v19 = vsel %vm573_vm14, %v1063_v22, %v568_v13 }
 0x184   : > { %v572_v20 = vrot.slane %v545_v16, 4  ;;  %v536_v21 = vsel %vm455_vm13, %v533_v17, 0  ;;  %627 = vmatprep.subr.bf16.mxu1 %v596_v18 }
 0x185   : > { %628 = vmatpush1.bf16.msra.mxu1 %v592_v19 }
 0x186   : > { %v538_v23 = vpop.permute.xlu1 %537  ;;  %v525_v25 = vpop.permute.xlu0 %524  ;;  %v604_v26 = vsel %vm573_vm14, %v536_v21, %v572_v20 }
 0x187   : > { %v542_v27 = vsel %vm541_vm3, %v538_v23, %v540_v14  ;;  %v529_v28 = vsel %vm528_vm4, %v525_v25, %v527_v15  ;;  %629 = vmatprep.subr.bf16.mxu1 %v604_v26 }
 0x188   : > { %v571_v29 = vrot.slane %v542_v27, 4  ;;  %v535_v24 = vsel %vm454_vm12, %v529_v28, 0 }
 0x18a   : > { %v547_v22 = vpop.permute.xlu1 %546  ;;  %v549_v30 = vpop.permute.xlu0 %548  ;;  %v600_v31 = vsel %vm573_vm14, %v535_v24, %v571_v29 }
 0x18b   : > { %v551_v32 = vsel %vm550_vm5, %v547_v22, %v549_v30  ;;  %v555_v33 = vsel %vm550_vm5, %v549_v30, 0  ;;  %630 = vmatpush1.bf16.msra.mxu1 %v600_v31 }
 0x18c   : > { %v558_v34 = vsel %vm495_vm1, %v555_v33, 0  ;;  %v557_v35 = vsel %vm494_vm0, %v551_v32, 0 }
 0x18d   : > { %806 = vmatprep.subr.msk.bf16.mxu1 %vm573_vm14, %v558_v34  ;;  %v618_v36 = vsel %vm573_vm14, %v557_v35, 0 }
 0x18f   : > { %632 = vmatpush1.bf16.msra.mxu1 %v618_v36 }
 0x192   : > { %807 = vmatmul.mubr.msk.bf16.vlgmr.msra.gmra.mrb[0].mxu1 %vm613_vm6, %v606_v37 }
 0x193   : > { %884 = shalt.err (!%p881_p3)
}
 0x194   : > { %s885_s28 = scalar_lea.hbm %s1148_s29, 128  ;;  %s889_s17 = scalar_lea.hbm %s1197_s6, 256 }
 0x195   : > { %p886_p4 = scmp.ne.s32.totalorder %s1148_s29, %s885_s28  ;;  %p890_p9 = scmp.lt.u32.totalorder %s1148_s29, %s1197_s6 }
 0x196   : > { %p891_p10 = scmp.lt.u32.totalorder %s889_s17, %s885_s28  ;;  %p893_p12 = scmp.lt.u32.totalorder %s885_s28, %s1148_s29 }
 0x197   : > { %p887_p7 = pnand %p886_p4, %p1024_p5 }
 0x198   : > { %p892_p11 = por %p891_p10, %p890_p9 }
 0x199   : > { %p888_p8 = pneg %p887_p7 }
 0x19a   : > { %p894_p13 = por %p893_p12, %p892_p11 }
 0x19c   : > { %p895_p0 = pnand %p894_p13, %p888_p8 }
 0x19e   : > { %898 = shalt.err (!%p895_p0)
}
 0x19f   : > { %820 = dma.vmem_to_hbm [thread:$0]  (%p1024_p5), %s694_s20, 128, %s1148_s29, %s674_s8   ;;  %v611_v38 = vpop.permute.xlu1 %610 }
 0x1a0   : > { %s1202_s22 = sshll.u32 %s1041_s15, 3 }
 0x1a1   : > { %s309_s16 = scalar_lea.vmem %s1198_s7, %s1202_s22 }
 0x265   : > { %v657_v39 = vpop.f32.mrb[0].mxu1 }
 0x266   : > { %v658_v40 = vadd.f32 %v657_v39, %v611_v38  ;;  %v659_v41 = vpop.f32.mrb[1].mxu1 }
 0x267   : > { %v660_v42 = vadd.f32 %v659_v41, %v611_v38  ;;  %v661_v43 = vpop.f32.mrb[2].mxu1 }
 0x268   : > { %v662_v44 = vpop.f32.mrb[3].mxu1 }
 0x269   : > { %v818_v45 = vpack.c.bf16 %v660_v42, %v658_v40 }
 0x26b   : > { %672 = vst [vmem:[%s309_s16] sm:$0xff] %v818_v45 }
 0x26c PF: > { %p826_p1 = scmp.ge.s32.totalorder %s933_s27, 2  ;;  %s708_s11 = sand.u32 1, %s921_s24  }
 0x26d   : > { %s709_s20 = scalar_lea.sflag [#allocation3], %s708_s11 }
 0x26e   : > { %p823_p5 = pnand %p826_p1, %p1028_p6 }
 0x270   : > { %916 = dma.done.wait (!%p823_p5), %s709_s20, 128  }
 0x271   : > { %918 = vsyncadd (!%p823_p5), %s709_s20, 4294967168  ;;  %p18_p2 = scmp.ge.s32.totalorder %s1011_s30, 4   ;;  %s1203_s24 = smov %s925_s25 }
 0x272   : > { %s1204_s25 = smov %s929_s26  ;;  %s1205_s26 = smov %s1022_s10 }
 0x273   : > { %s1206_s27 = smov %s1011_s30  ;;  %20 = sbr.rel (!%p18_p2) target bundleno = 3 (0x3), region = 94 }
 0x27a   :  { %722 = vsyncpa [#allocation3], 1 }
 0x27b   :  { %724 = vsyncpa [#allocation3 + $0x1], 1 }

// kernel: tile.0
= control target key start
LH: loop header
LB: loop body
LE: loop exit
PB: predicated region body
PF: predicated region fallthrough
CT: control target
= control target key end

     0   :  { %s66_s8 = smov 125   ;;  %vm7_vm0 = vcmask 7168   ;;  %s67_s11 = smov 126   ;;  %s117_s0 = inlined_call_operand.vmem [shape: f32[4,8], index: 0, kind: input, shape index: {}]   ;;  %s118_s1 = inlined_call_operand.vmem [shape: f32[32,1], index: 1, kind: output, shape index: {}]  }
   0x1   :  { %v4_v0 = vld [vmem:[%s117_s0] sm:$0xf]  ;;  %s65_s0 = smov 127   ;;  %s68_s12 = smov 124  }
   0x2   :  { %5 = vst [vmem:[#allocation0] sm:$0xf] %v4_v0  ;;  %s69_s13 = smov 123   ;;  %s70_s14 = smov 122  }
   0x3   :  { %s71_s15 = smov 121  }
   0x9   :  { %v9_v1 = vld [vmem:[#allocation0] sm:$0xf]  }
   0xa   :  { %v21_v2 = vld [vmem:[#allocation0] sm:$0xf]   ;;  %10 = vrot.lane.b32.xlu0 %v9_v1, %s65_s0 }
   0xb   :  { %22 = vrot.lane.b32.xlu1 %v21_v2, %s66_s8  ;;  %v15_v3 = vld [vmem:[#allocation0] sm:$0xf]  }
   0xc   :  { %v27_v4 = vld [vmem:[#allocation0] sm:$0xf]  }
   0xd   :  { %v6_v5 = vld [vmem:[#allocation0] sm:$0xf]  }
   0xe   :  { %8 = vst.msk [vmem:[%s118_s1] ss:$8 sm:$0xf] %vm7_vm0, %v6_v5   ;;  %16 = vrot.lane.b32.xlu0 %v15_v3, %s67_s11  ;;  %v33_v6 = vld [vmem:[#allocation0] sm:$0xf]  }
   0xf   :  { %28 = vrot.lane.b32.xlu1 %v27_v4, %s68_s12  ;;  %v39_v7 = vld [vmem:[#allocation0] sm:$0xf]  }
  0x10   :  { %v45_v8 = vld [vmem:[#allocation0] sm:$0xf]  }
  0x12   :  { %34 = vrot.lane.b32.xlu0 %v33_v6, %s69_s13 }
  0x13   :  { %40 = vrot.lane.b32.xlu1 %v39_v7, %s70_s14 }
  0x16   :  { %46 = vrot.lane.b32.xlu0 %v45_v8, %s71_s15 }
  0x7c   :  { %v11_v9 = vpop.permute.xlu0 %10  }
  0x7d   :  { %v23_v10 = vpop.permute.xlu1 %22   ;;  %51 = vst.msk [vmem:[%s118_s1 + $0x1] ss:$8 sm:$0xf] %vm7_vm0, %v11_v9  }
  0x7e   :  { %53 = vst.msk [vmem:[%s118_s1 + $0x3] ss:$8 sm:$0xf] %vm7_vm0, %v23_v10  }
  0x80   :  { %v17_v11 = vpop.permute.xlu0 %16  }
  0x81   :  { %v29_v12 = vpop.permute.xlu1 %28   ;;  %52 = vst.msk [vmem:[%s118_s1 + $0x2] ss:$8 sm:$0xf] %vm7_vm0, %v17_v11  }
  0x82   :  { %54 = vst.msk [vmem:[%s118_s1 + $0x4] ss:$8 sm:$0xf] %vm7_vm0, %v29_v12  }
  0x84   :  { %v35_v13 = vpop.permute.xlu0 %34  }
  0x85   :  { %v41_v14 = vpop.permute.xlu1 %40   ;;  %55 = vst.msk [vmem:[%s118_s1 + $0x5] ss:$8 sm:$0xf] %vm7_vm0, %v35_v13  }
  0x86   :  { %56 = vst.msk [vmem:[%s118_s1 + $0x6] ss:$8 sm:$0xf] %vm7_vm0, %v41_v14  }
  0x88   :  { %v47_v15 = vpop.permute.xlu0 %46  }
  0x89   :  { %57 = vst.msk [vmem:[%s118_s1 + $0x7] ss:$8 sm:$0xf] %vm7_vm0, %v47_v15  }

// kernel: tile.28
= control target key start
LH: loop header
LB: loop body
LE: loop exit
PB: predicated region body
PF: predicated region fallthrough
CT: control target
= control target key end

     0   :  { %s22_s0 = inlined_call_operand.vmem [shape: f32[16], index: 0, kind: input, shape index: {}]   ;;  %s23_s1 = inlined_call_operand.vmem [shape: f32[4,16], index: 1, kind: output, shape index: {}]  }
   0x1   :  { %v4_v0 = vld [vmem:[%s22_s0] ss:$0 sm:$0xff] }
   0x2   :  { %5 = vst [vmem:[%s23_s1] sm:$0xf] %v4_v0 }

// kernel: tile.1
= control target key start
LH: loop header
LB: loop body
LE: loop exit
PB: predicated region body
PF: predicated region fallthrough
CT: control target
= control target key end

     0   :  { %s176_s8 = smov 125   ;;  %s177_s9 = smov 126   ;;  %vm7_vm0 = vcmask 7168   ;;  %s331_s0 = inlined_call_operand.vmem [shape: f32[4,16], index: 0, kind: input, shape index: {}]   ;;  %s332_s1 = inlined_call_operand.vmem [shape: f32[64,1], index: 1, kind: output, shape index: {}]  }
   0x1   :  { %v4_v0 = vld [vmem:[%s331_s0] sm:$0xf]  ;;  %s175_s0 = smov 127   ;;  %s178_s10 = smov 124  }
   0x2   :  { %5 = vst [vmem:[#allocation0] sm:$0xf] %v4_v0  ;;  %s179_s11 = smov 123   ;;  %s180_s12 = smov 122  }
   0x3   :  { %s181_s13 = smov 121   ;;  %s182_s14 = smov 120  }
   0x4   :  { %s183_s19 = smov 119   ;;  %s184_s20 = smov 118  }
   0x5   :  { %s185_s21 = smov 117   ;;  %s186_s22 = smov 116  }
   0x6   :  { %s187_s23 = smov 115   ;;  %s188_s24 = smov 114  }
   0x7   :  { %s189_s25 = smov 113  }
   0x9   :  { %v10_v1 = vld [vmem:[#allocation0] sm:$0xf]  }
   0xa   :  { %v26_v2 = vld [vmem:[#allocation0] sm:$0xf]   ;;  %11 = vrot.lane.b32.xlu0 %v10_v1, %s175_s0 }
   0xb   :  { %27 = vrot.lane.b32.xlu1 %v26_v2, %s176_s8  ;;  %v18_v3 = vld [vmem:[#allocation0] sm:$0xf]  }
   0xc   :  { %v34_v4 = vld [vmem:[#allocation0] sm:$0xf]  }
   0xd   :  { %v42_v5 = vld [vmem:[#allocation0] sm:$0xf]  }
   0xe   :  { %19 = vrot.lane.b32.xlu0 %v18_v3, %s177_s9  ;;  %v50_v6 = vld [vmem:[#allocation0] sm:$0xf]  }
   0xf   :  { %35 = vrot.lane.b32.xlu1 %v34_v4, %s178_s10  ;;  %v58_v7 = vld [vmem:[#allocation0] sm:$0xf]  }
  0x10   :  { %v66_v8 = vld [vmem:[#allocation0] sm:$0xf]  }
  0x11   :  { %v74_v9 = vld [vmem:[#allocation0] sm:$0xf]  }
  0x12   :  { %43 = vrot.lane.b32.xlu0 %v42_v5, %s179_s11  ;;  %v82_v10 = vld [vmem:[#allocation0] sm:$0xf]  }
  0x13   :  { %51 = vrot.lane.b32.xlu1 %v50_v6, %s180_s12  ;;  %v6_v11 = vld [vmem:[#allocation0] sm:$0xf]  }
  0x14   :  { %8 = vst.msk [vmem:[%s332_s1] ss:$16 sm:$0x3] %vm7_vm0, %v6_v11   ;;  %9 = vst.msk [vmem:[%s332_s1] ss:$16 sm:$0xc] %vm7_vm0, %v6_v11  }
  0x15   :  { %v90_v12 = vld [vmem:[#allocation0] sm:$0xf]  }
  0x16   :  { %59 = vrot.lane.b32.xlu0 %v58_v7, %s181_s13  ;;  %v98_v13 = vld [vmem:[#allocation0] sm:$0xf]  }
  0x17   :  { %67 = vrot.lane.b32.xlu1 %v66_v8, %s182_s14  ;;  %v106_v14 = vld [vmem:[#allocation0] sm:$0xf]  }
  0x18   :  { %v114_v15 = vld [vmem:[#allocation0] sm:$0xf]  }
  0x19   :  { %v122_v16 = vld [vmem:[#allocation0] sm:$0xf]  }
  0x1a   :  { %75 = vrot.lane.b32.xlu0 %v74_v9, %s183_s19 }
  0x1b   :  { %83 = vrot.lane.b32.xlu1 %v82_v10, %s184_s20 }
  0x1e   :  { %91 = vrot.lane.b32.xlu0 %v90_v12, %s185_s21 }
  0x1f   :  { %99 = vrot.lane.b32.xlu1 %v98_v13, %s186_s22 }
  0x22   :  { %107 = vrot.lane.b32.xlu0 %v106_v14, %s187_s23 }
  0x23   :  { %115 = vrot.lane.b32.xlu1 %v114_v15, %s188_s24 }
  0x26   :  { %123 = vrot.lane.b32.xlu0 %v122_v16, %s189_s25 }
  0x7c   :  { %v12_v17 = vpop.permute.xlu0 %11  }
  0x7d   :  { %v28_v18 = vpop.permute.xlu1 %27   ;;  %130 = vst.msk [vmem:[%s332_s1 + $0x1] ss:$16 sm:$0x3] %vm7_vm0, %v12_v17   ;;  %131 = vst.msk [vmem:[%s332_s1 + $0x1] ss:$16 sm:$0xc] %vm7_vm0, %v12_v17  }
  0x7e   :  { %134 = vst.msk [vmem:[%s332_s1 + $0x3] ss:$16 sm:$0x3] %vm7_vm0, %v28_v18   ;;  %135 = vst.msk [vmem:[%s332_s1 + $0x3] ss:$16 sm:$0xc] %vm7_vm0, %v28_v18  }
  0x80   :  { %v20_v19 = vpop.permute.xlu0 %19  }
  0x81   :  { %v36_v20 = vpop.permute.xlu1 %35   ;;  %132 = vst.msk [vmem:[%s332_s1 + $0x2] ss:$16 sm:$0x3] %vm7_vm0, %v20_v19   ;;  %133 = vst.msk [vmem:[%s332_s1 + $0x2] ss:$16 sm:$0xc] %vm7_vm0, %v20_v19  }
  0x82   :  { %136 = vst.msk [vmem:[%s332_s1 + $0x4] ss:$16 sm:$0x3] %vm7_vm0, %v36_v20   ;;  %137 = vst.msk [vmem:[%s332_s1 + $0x4] ss:$16 sm:$0xc] %vm7_vm0, %v36_v20  }
  0x84   :  { %v44_v21 = vpop.permute.xlu0 %43  }
  0x85   :  { %v52_v22 = vpop.permute.xlu1 %51   ;;  %138 = vst.msk [vmem:[%s332_s1 + $0x5] ss:$16 sm:$0x3] %vm7_vm0, %v44_v21   ;;  %139 = vst.msk [vmem:[%s332_s1 + $0x5] ss:$16 sm:$0xc] %vm7_vm0, %v44_v21  }
  0x86   :  { %140 = vst.msk [vmem:[%s332_s1 + $0x6] ss:$16 sm:$0x3] %vm7_vm0, %v52_v22   ;;  %141 = vst.msk [vmem:[%s332_s1 + $0x6] ss:$16 sm:$0xc] %vm7_vm0, %v52_v22  }
  0x88   :  { %v60_v23 = vpop.permute.xlu0 %59  }
  0x89   :  { %v68_v24 = vpop.permute.xlu1 %67   ;;  %142 = vst.msk [vmem:[%s332_s1 + $0x7] ss:$16 sm:$0x3] %vm7_vm0, %v60_v23   ;;  %143 = vst.msk [vmem:[%s332_s1 + $0x7] ss:$16 sm:$0xc] %vm7_vm0, %v60_v23  }
  0x8a   :  { %144 = vst.msk [vmem:[%s332_s1 + $0x8] ss:$16 sm:$0x3] %vm7_vm0, %v68_v24   ;;  %145 = vst.msk [vmem:[%s332_s1 + $0x8] ss:$16 sm:$0xc] %vm7_vm0, %v68_v24  }
  0x8c   :  { %v76_v25 = vpop.permute.xlu0 %75  }
  0x8d   :  { %v84_v26 = vpop.permute.xlu1 %83   ;;  %146 = vst.msk [vmem:[%s332_s1 + $0x9] ss:$16 sm:$0x3] %vm7_vm0, %v76_v25   ;;  %147 = vst.msk [vmem:[%s332_s1 + $0x9] ss:$16 sm:$0xc] %vm7_vm0, %v76_v25  }
  0x8e   :  { %148 = vst.msk [vmem:[%s332_s1 + $0xa] ss:$16 sm:$0x3] %vm7_vm0, %v84_v26   ;;  %149 = vst.msk [vmem:[%s332_s1 + $0xa] ss:$16 sm:$0xc] %vm7_vm0, %v84_v26  }
  0x90   :  { %v92_v27 = vpop.permute.xlu0 %91  }
  0x91   :  { %v100_v28 = vpop.permute.xlu1 %99   ;;  %150 = vst.msk [vmem:[%s332_s1 + $0xb] ss:$16 sm:$0x3] %vm7_vm0, %v92_v27   ;;  %151 = vst.msk [vmem:[%s332_s1 + $0xb] ss:$16 sm:$0xc] %vm7_vm0, %v92_v27  }
  0x92   :  { %152 = vst.msk [vmem:[%s332_s1 + $0xc] ss:$16 sm:$0x3] %vm7_vm0, %v100_v28   ;;  %153 = vst.msk [vmem:[%s332_s1 + $0xc] ss:$16 sm:$0xc] %vm7_vm0, %v100_v28  }
  0x94   :  { %v108_v29 = vpop.permute.xlu0 %107  }
  0x95   :  { %v116_v30 = vpop.permute.xlu1 %115   ;;  %154 = vst.msk [vmem:[%s332_s1 + $0xd] ss:$16 sm:$0x3] %vm7_vm0, %v108_v29   ;;  %155 = vst.msk [vmem:[%s332_s1 + $0xd] ss:$16 sm:$0xc] %vm7_vm0, %v108_v29  }
  0x96   :  { %156 = vst.msk [vmem:[%s332_s1 + $0xe] ss:$16 sm:$0x3] %vm7_vm0, %v116_v30   ;;  %157 = vst.msk [vmem:[%s332_s1 + $0xe] ss:$16 sm:$0xc] %vm7_vm0, %v116_v30  }
  0x98   :  { %v124_v31 = vpop.permute.xlu0 %123  }
  0x99   :  { %158 = vst.msk [vmem:[%s332_s1 + $0xf] ss:$16 sm:$0x3] %vm7_vm0, %v124_v31   ;;  %159 = vst.msk [vmem:[%s332_s1 + $0xf] ss:$16 sm:$0xc] %vm7_vm0, %v124_v31  }

// kernel: tile.33
= control target key start
LH: loop header
LB: loop body
LE: loop exit
PB: predicated region body
PF: predicated region fallthrough
CT: control target
= control target key end

     0   :  { %s22_s0 = inlined_call_operand.vmem [shape: f32[24], index: 0, kind: input, shape index: {}]   ;;  %s23_s1 = inlined_call_operand.vmem [shape: f32[4,24], index: 1, kind: output, shape index: {}]  }
   0x1   :  { %v4_v0 = vld [vmem:[%s22_s0] ss:$0 sm:$0xff] }
   0x2   :  { %5 = vst [vmem:[%s23_s1] sm:$0xf] %v4_v0 }

// kernel: tile.2
= control target key start
LH: loop header
LB: loop body
LE: loop exit
PB: predicated region body
PF: predicated region fallthrough
CT: control target
= control target key end

     0   :  { %s263_s8 = smov 125   ;;  %s264_s9 = smov 126   ;;  %vm7_vm0 = vcmask 7168   ;;  %s486_s0 = inlined_call_operand.vmem [shape: f32[4,24], index: 0, kind: input, shape index: {}]   ;;  %s487_s1 = inlined_call_operand.vmem [shape: f32[96,1], index: 1, kind: output, shape index: {}]  }
   0x1   :  { %v4_v0 = vld [vmem:[%s486_s0] sm:$0xf]  ;;  %s262_s0 = smov 127   ;;  %s265_s10 = smov 124  }
   0x2   :  { %5 = vst [vmem:[#allocation0] sm:$0xf] %v4_v0  ;;  %s266_s11 = smov 123   ;;  %s267_s12 = smov 122  }
   0x3   :  { %s268_s13 = smov 121   ;;  %s269_s14 = smov 120  }
   0x4   :  { %s270_s15 = smov 119   ;;  %s271_s16 = smov 118  }
   0x5   :  { %s272_s17 = smov 117   ;;  %s273_s18 = smov 116  }
   0x6   :  { %s274_s19 = smov 115   ;;  %s275_s20 = smov 114  }
   0x7   :  { %s276_s21 = smov 113   ;;  %s277_s22 = smov 112  }
   0x8   :  { %s278_s25 = smov 111   ;;  %s279_s26 = smov 110  }
   0x9   :  { %v9_v1 = vld.sshfl [vmem:[#allocation0] sm:$0xff pattern:$0x11111230]   ;;  %s280_s27 = smov 109   ;;  %s281_s28 = smov 108  }
   0xa   :  { %10 = vrot.lane.b32.xlu0 %v9_v1, %s262_s0  ;;  %26 = vrot.lane.b32.xlu1 %v9_v1, %s263_s8  ;;  %v65_v2 = vld.sshfl [vmem:[#allocation0] sm:$0xff pattern:$0x22222301]   ;;  %s282_s29 = smov 107   ;;  %s283_s30 = smov 106  }
   0xb   :  { %v129_v3 = vld.sshfl [vmem:[#allocation0] sm:$0xff pattern:$0x33333012]   ;;  %s284_s2 = smov 105  }
   0xc   :  { %v6_v4 = vld [vmem:[#allocation0] sm:$0xf]  }
   0xd   :  { %8 = vst.msk [vmem:[%s487_s1] ss:$24 sm:$0xf] %vm7_vm0, %v6_v4  }
   0xe   :  { %18 = vrot.lane.b32.xlu0 %v9_v1, %s264_s9  ;;  %34 = vrot.lane.b32.xlu1 %v9_v1, %s265_s10 }
  0x12   :  { %42 = vrot.lane.b32.xlu0 %v9_v1, %s266_s11  ;;  %50 = vrot.lane.b32.xlu1 %v9_v1, %s267_s12 }
  0x16   :  { %58 = vrot.lane.b32.xlu0 %v9_v1, %s268_s13  ;;  %66 = vrot.lane.b32.xlu1 %v65_v2, %s269_s14 }
  0x1a   :  { %74 = vrot.lane.b32.xlu0 %v65_v2, %s270_s15  ;;  %82 = vrot.lane.b32.xlu1 %v65_v2, %s271_s16 }
  0x1e   :  { %90 = vrot.lane.b32.xlu0 %v65_v2, %s272_s17  ;;  %98 = vrot.lane.b32.xlu1 %v65_v2, %s273_s18 }
  0x22   :  { %106 = vrot.lane.b32.xlu0 %v65_v2, %s274_s19  ;;  %114 = vrot.lane.b32.xlu1 %v65_v2, %s275_s20 }
  0x26   :  { %122 = vrot.lane.b32.xlu0 %v65_v2, %s276_s21  ;;  %130 = vrot.lane.b32.xlu1 %v129_v3, %s277_s22 }
  0x2a   :  { %138 = vrot.lane.b32.xlu0 %v129_v3, %s278_s25  ;;  %146 = vrot.lane.b32.xlu1 %v129_v3, %s279_s26 }
  0x2e   :  { %154 = vrot.lane.b32.xlu0 %v129_v3, %s280_s27  ;;  %162 = vrot.lane.b32.xlu1 %v129_v3, %s281_s28 }
  0x32   :  { %170 = vrot.lane.b32.xlu0 %v129_v3, %s282_s29  ;;  %178 = vrot.lane.b32.xlu1 %v129_v3, %s283_s30 }
  0x36   :  { %186 = vrot.lane.b32.xlu0 %v129_v3, %s284_s2 }
  0x7c   :  { %v11_v5 = vpop.permute.xlu0 %10   ;;  %v27_v6 = vpop.permute.xlu1 %26  }
  0x7d   :  { %193 = vst.msk [vmem:[%s487_s1 + $0x1] ss:$72 sm:$0x3] %vm7_vm0, %v11_v5   ;;  %194 = vst.msk [vmem:[%s487_s1 + $0x61] ss:$-24 sm:$0xc] %vm7_vm0, %v11_v5  }
  0x7e   :  { %197 = vst.msk [vmem:[%s487_s1 + $0x3] ss:$72 sm:$0x3] %vm7_vm0, %v27_v6   ;;  %198 = vst.msk [vmem:[%s487_s1 + $0x63] ss:$-24 sm:$0xc] %vm7_vm0, %v27_v6  }
  0x80   :  { %v19_v7 = vpop.permute.xlu0 %18   ;;  %v35_v8 = vpop.permute.xlu1 %34  }
  0x81   :  { %195 = vst.msk [vmem:[%s487_s1 + $0x2] ss:$72 sm:$0x3] %vm7_vm0, %v19_v7   ;;  %196 = vst.msk [vmem:[%s487_s1 + $0x62] ss:$-24 sm:$0xc] %vm7_vm0, %v19_v7  }
  0x82   :  { %199 = vst.msk [vmem:[%s487_s1 + $0x4] ss:$72 sm:$0x3] %vm7_vm0, %v35_v8   ;;  %200 = vst.msk [vmem:[%s487_s1 + $0x64] ss:$-24 sm:$0xc] %vm7_vm0, %v35_v8  }
  0x84   :  { %v43_v9 = vpop.permute.xlu0 %42   ;;  %v51_v10 = vpop.permute.xlu1 %50  }
  0x85   :  { %201 = vst.msk [vmem:[%s487_s1 + $0x5] ss:$72 sm:$0x3] %vm7_vm0, %v43_v9   ;;  %202 = vst.msk [vmem:[%s487_s1 + $0x65] ss:$-24 sm:$0xc] %vm7_vm0, %v43_v9  }
  0x86   :  { %203 = vst.msk [vmem:[%s487_s1 + $0x6] ss:$72 sm:$0x3] %vm7_vm0, %v51_v10   ;;  %204 = vst.msk [vmem:[%s487_s1 + $0x66] ss:$-24 sm:$0xc] %vm7_vm0, %v51_v10  }
  0x88   :  { %v59_v11 = vpop.permute.xlu0 %58   ;;  %v67_v12 = vpop.permute.xlu1 %66  }
  0x89   :  { %205 = vst.msk [vmem:[%s487_s1 + $0x7] ss:$72 sm:$0x3] %vm7_vm0, %v59_v11   ;;  %206 = vst.msk [vmem:[%s487_s1 + $0x67] ss:$-24 sm:$0xc] %vm7_vm0, %v59_v11  }
  0x8a   :  { %207 = vst.msk [vmem:[%s487_s1 + $0x20] ss:$-24 sm:$0x3] %vm7_vm0, %v67_v12   ;;  %208 = vst.msk [vmem:[%s487_s1 + $0x80] ss:$-24 sm:$0xc] %vm7_vm0, %v67_v12  }
  0x8c   :  { %v75_v13 = vpop.permute.xlu0 %74   ;;  %v83_v14 = vpop.permute.xlu1 %82  }
  0x8d   :  { %209 = vst.msk [vmem:[%s487_s1 + $0x21] ss:$-24 sm:$0x3] %vm7_vm0, %v75_v13   ;;  %210 = vst.msk [vmem:[%s487_s1 + $0x81] ss:$-24 sm:$0xc] %vm7_vm0, %v75_v13  }
  0x8e   :  { %211 = vst.msk [vmem:[%s487_s1 + $0x22] ss:$-24 sm:$0x3] %vm7_vm0, %v83_v14   ;;  %212 = vst.msk [vmem:[%s487_s1 + $0x82] ss:$-24 sm:$0xc] %vm7_vm0, %v83_v14  }
  0x90   :  { %v91_v15 = vpop.permute.xlu0 %90   ;;  %v99_v16 = vpop.permute.xlu1 %98  }
  0x91   :  { %213 = vst.msk [vmem:[%s487_s1 + $0x23] ss:$-24 sm:$0x3] %vm7_vm0, %v91_v15   ;;  %214 = vst.msk [vmem:[%s487_s1 + $0x83] ss:$-24 sm:$0xc] %vm7_vm0, %v91_v15  }
  0x92   :  { %215 = vst.msk [vmem:[%s487_s1 + $0x24] ss:$-24 sm:$0x3] %vm7_vm0, %v99_v16   ;;  %216 = vst.msk [vmem:[%s487_s1 + $0x84] ss:$-24 sm:$0xc] %vm7_vm0, %v99_v16  }
  0x94   :  { %v107_v17 = vpop.permute.xlu0 %106   ;;  %v115_v18 = vpop.permute.xlu1 %114  }
  0x95   :  { %217 = vst.msk [vmem:[%s487_s1 + $0x25] ss:$-24 sm:$0x3] %vm7_vm0, %v107_v17   ;;  %218 = vst.msk [vmem:[%s487_s1 + $0x85] ss:$-24 sm:$0xc] %vm7_vm0, %v107_v17  }
  0x96   :  { %219 = vst.msk [vmem:[%s487_s1 + $0x26] ss:$-24 sm:$0x3] %vm7_vm0, %v115_v18   ;;  %220 = vst.msk [vmem:[%s487_s1 + $0x86] ss:$-24 sm:$0xc] %vm7_vm0, %v115_v18  }
  0x98   :  { %v123_v19 = vpop.permute.xlu0 %122   ;;  %v131_v20 = vpop.permute.xlu1 %130  }
  0x99   :  { %221 = vst.msk [vmem:[%s487_s1 + $0x27] ss:$-24 sm:$0x3] %vm7_vm0, %v123_v19   ;;  %222 = vst.msk [vmem:[%s487_s1 + $0x87] ss:$-24 sm:$0xc] %vm7_vm0, %v123_v19  }
  0x9a   :  { %223 = vst.msk [vmem:[%s487_s1 + $0x40] ss:$-24 sm:$0x7] %vm7_vm0, %v131_v20   ;;  %224 = vst.msk [vmem:[%s487_s1 + $0x55] sm:$0x8] %vm7_vm0, %v131_v20  }
  0x9c   :  { %v139_v21 = vpop.permute.xlu0 %138   ;;  %v147_v22 = vpop.permute.xlu1 %146  }
  0x9d   :  { %225 = vst.msk [vmem:[%s487_s1 + $0x41] ss:$-24 sm:$0x7] %vm7_vm0, %v139_v21   ;;  %226 = vst.msk [vmem:[%s487_s1 + $0x56] sm:$0x8] %vm7_vm0, %v139_v21  }
  0x9e   :  { %227 = vst.msk [vmem:[%s487_s1 + $0x42] ss:$-24 sm:$0x7] %vm7_vm0, %v147_v22   ;;  %228 = vst.msk [vmem:[%s487_s1 + $0x57] sm:$0x8] %vm7_vm0, %v147_v22  }
  0xa0   :  { %v155_v23 = vpop.permute.xlu0 %154   ;;  %v163_v24 = vpop.permute.xlu1 %162  }
  0xa1   :  { %229 = vst.msk [vmem:[%s487_s1 + $0x43] ss:$-24 sm:$0x7] %vm7_vm0, %v155_v23   ;;  %230 = vst.msk [vmem:[%s487_s1 + $0x58] sm:$0x8] %vm7_vm0, %v155_v23  }
  0xa2   :  { %231 = vst.msk [vmem:[%s487_s1 + $0x44] ss:$-24 sm:$0x7] %vm7_vm0, %v163_v24   ;;  %232 = vst.msk [vmem:[%s487_s1 + $0x59] sm:$0x8] %vm7_vm0, %v163_v24  }
  0xa4   :  { %v171_v25 = vpop.permute.xlu0 %170   ;;  %v179_v26 = vpop.permute.xlu1 %178  }
  0xa5   :  { %233 = vst.msk [vmem:[%s487_s1 + $0x45] ss:$-24 sm:$0x7] %vm7_vm0, %v171_v25   ;;  %234 = vst.msk [vmem:[%s487_s1 + $0x5a] sm:$0x8] %vm7_vm0, %v171_v25  }
  0xa6   :  { %235 = vst.msk [vmem:[%s487_s1 + $0x46] ss:$-24 sm:$0x7] %vm7_vm0, %v179_v26   ;;  %236 = vst.msk [vmem:[%s487_s1 + $0x5b] sm:$0x8] %vm7_vm0, %v179_v26  }
  0xa8   :  { %v187_v27 = vpop.permute.xlu0 %186  }
  0xa9   :  { %237 = vst.msk [vmem:[%s487_s1 + $0x47] ss:$-24 sm:$0x7] %vm7_vm0, %v187_v27   ;;  %238 = vst.msk [vmem:[%s487_s1 + $0x5c] sm:$0x8] %vm7_vm0, %v187_v27  }

// kernel: model_forward.12
= control target key start
LH: loop header
LB: loop body
LE: loop exit
PB: predicated region body
PF: predicated region fallthrough
CT: control target
= control target key end

     0   :  { %s500_s12 = smov 0   ;;  %s560_s0 = inlined_call_operand.vmem [shape: bf16[2,8,4], index: 0, kind: input, shape index: {}]   ;;  %s561_s1 = inlined_call_operand.vmem [shape: bf16[32,8], index: 1, kind: input, shape index: {}]   ;;  %s562_s2 = inlined_call_operand.vmem [shape: f32[32,1], index: 2, kind: input, shape index: {}]   ;;  %s563_s3 = inlined_call_operand.vmem [shape: bf16[2,8,16], index: 3, kind: output, shape index: {}]  }
   0x1 LB: > { %s421_s13 = sadd.s32 4294967295, %s474_s12   ;;  %p425_p0 = scmp.ge.s32.totalorder %s474_s12, 1  ;;  %s474_s12 = sphi %s500_s12, %s13_s12  }
   0x2   : > { %p136_p1 = scmp.lt.s32.totalorder %s474_s12, 3 }
   0x4   : > { %p137_p2 = pnand %p425_p0, %p136_p1 }
   0x5   : > { %p158_p3 = scmp.lt.s32.totalorder (!%p137_p2), %s421_s13, 1  ;;  %v464_v0 = vld [vmem:[%s561_s1] sm:$0xff] (!%p137_p2)   ;;  %vm206_vm0 = vcmask (!%p137_p2), 64512   ;;  %v174_v2 = vld [vmem:[%s562_s2 + $0x10] sm:$0xff] (!%p137_p2)  ;;  %v476_v3 = vmov (!%p137_p2), 0   ;;  %vm213_vm1 = vcmask (!%p137_p2), 1043456  }
   0x6   : > { %140 = sbr.rel (%p137_p2) target bundleno = 695 (0x2b7), region = 32  ;;  %v172_v1 = vld [vmem:[%s562_s2] sm:$0xff] (!%p137_p2)  ;;  %445 = vmatprep.mubr.msk.bf16.mxu0 (!%p137_p2), %vm206_vm0, %v464_v0  ;;  %462 = vset.pattern.permute.xlu0 (!%p137_p2), %v476_v3  ;;  %v173_v4 = vld [vmem:[%s562_s2 + $0x8] sm:$0xff] (!%p137_p2)  ;;  %v175_v6 = vld [vmem:[%s562_s2 + $0x18] sm:$0xff] (!%p137_p2)  ;;  %vm266_vm2 = vcmask (!%p137_p2), 31744   ;;  %vm330_vm3 = vcmask (!%p137_p2), 27648  }
   0x7   : > { %463 = vset.pattern.permute.xlu1 (!%p137_p2), %v476_v3  ;;  %178 = vperm.xlu0 (!%p137_p2), %462, %v172_v1   ;;  %v465_v8 = vld [vmem:[%s561_s1 + $0x8] sm:$0xff] (!%p137_p2)   ;;  %s477_s6 = smov (!%p137_p2), 8   ;;  %s478_s7 = smov (!%p137_p2), 4   ;;  %vm342_vm4 = vcmask (!%p137_p2), 60448   ;;  %vm354_vm5 = vcmask (!%p137_p2), 93248   ;;  %vm366_vm6 = vcmask (!%p137_p2), 126048  }
   0x8   : > { %188 = vperm.xlu1 (!%p137_p2), %463, %v174_v2   ;;  %s479_s8 = smov (!%p137_p2), 12  }
   0xb   : > { %183 = vperm.xlu0 (!%p137_p2), %462, %v173_v4  }
   0xc   : > { %193 = vperm.xlu1 (!%p137_p2), %463, %v175_v6  }
   0xd   : > { %s565_s13 = smov (!%p158_p3, %s421_s13), 1 }
   0xe   : > { %s426_s20 = sshll.u32 %s565_s13, 2 }
   0xf   : > { %s161_s23 = scalar_lea.vmem %s560_s0, %s426_s20  ;;  %s165_s5 = scalar_lea.vmem %s563_s3, %s426_s20 }
  0x10   : > { %v171_v5 = vld [vmem:[%s161_s23] sm:$0xf] }
  0x11   : > { %449 = vmatprep.subr.msk.bf16.mxu0 %vm213_vm1, %v171_v5  ;;  %v215_v7 = vsel %vm213_vm1, %v171_v5, 0 }
  0x12   : > { %444 = vmatpush3.bf16.msra.mxu0 %v215_v7 }
  0x15   : > { %446 = vmatmul.mubr.msk.bf16.vlgmr.msra.gmra.mrb[0].mxu0 %vm206_vm0, %v465_v8 }
  0x86   : > { %v179_v10 = vpop.permute.xlu0 %178 }
  0x87   : > { %v189_v9 = vpop.permute.xlu1 %188 }
  0x8a   : > { %v184_v17 = vpop.permute.xlu0 %183 }
  0x8b   : > { %v194_v12 = vpop.permute.xlu1 %193 }
  0xe8   : > { %v447_v11 = vpop.f32.mrb[0].mxu0 }
  0xe9   : > { %v260_v13 = vadd.f32 %v447_v11, %v189_v9  ;;  %v251_v14 = vpop.f32.mrb[1].mxu0 }
  0xea   : > { %v252_v15 = vadd.f32 %v251_v14, %v179_v10  ;;  %v448_v16 = vpop.f32.mrb[2].mxu0 }
  0xeb   : > { %269 = vst.msk [vmem:[#allocation2 + $0x10] sm:$0xff] %vm266_vm2, %v260_v13  ;;  %v263_v18 = vadd.f32 %v448_v16, %v194_v12  ;;  %v254_v19 = vpop.f32.mrb[3].mxu0 }
  0xec   : > { %267 = vst.msk [vmem:[#allocation2] sm:$0xff] %vm266_vm2, %v252_v15  ;;  %v255_v20 = vadd.f32 %v254_v19, %v184_v17 }
  0xed   : > { %270 = vst.msk [vmem:[#allocation2 + $0x18] sm:$0xff] %vm266_vm2, %v263_v18 }
  0xee   : > { %268 = vst.msk [vmem:[#allocation2 + $0x8] sm:$0xff] %vm266_vm2, %v255_v20 }
  0xf2   : > { %v281_v24 = vld [vmem:[#allocation2 + $0x10] sm:$0xff] }
  0xf3   : > { %v271_v21 = vld [vmem:[#allocation2] sm:$0xff]  ;;  %v282_v26 = vsel %vm266_vm2, %v281_v24, 0.0 }
  0xf4   : > { %v272_v22 = vsel %vm266_vm2, %v271_v21, 0.0  ;;  %v286_v27 = vld [vmem:[#allocation2 + $0x18] sm:$0xff] }
  0xf5   : > { %273 = vadd.xlane.f32.xlu0 %v272_v22  ;;  %v276_v23 = vld [vmem:[#allocation2 + $0x8] sm:$0xff]  ;;  %v287_v28 = vsel %vm266_vm2, %v286_v27, 0.0 }
  0xf6   : > { %v277_v25 = vsel %vm266_vm2, %v276_v23, 0.0 }
  0xf7   : > { %278 = vadd.xlane.f32.xlu1 %v277_v25 }
  0xf9   : > { %283 = vadd.xlane.f32.xlu0 %v282_v26 }
  0xfd   : > { %288 = vadd.xlane.f32.xlu0 %v287_v28 }
 0x182   : > { %v274_v29 = vpop.xlane.xlu0 %273 }
 0x184   : > { %v279_v30 = vpop.xlane.xlu1 %278 }
 0x185   : > { %v280_v31 = vadd.f32 %v279_v30, %v274_v29 }
 0x186   : > { %v284_v32 = vpop.xlane.xlu0 %283 }
 0x187   : > { %v285_v33 = vadd.f32 %v284_v32, %v280_v31 }
 0x18a   : > { %v289_v34 = vpop.xlane.xlu0 %288 }
 0x18b   : > { %v290_v35 = vadd.f32 %v289_v34, %v285_v33 }
 0x18d   : > { %v291_v36 = vmul.f32 0.0625, %v290_v35 }
 0x18f   : > { %v300_v37 = vsub.f32 %v276_v23, %v291_v36  ;;  %v292_v38 = vsub.f32 %v271_v21, %v291_v36  ;;  %v316_v39 = vsub.f32 %v286_v27, %v291_v36  ;;  %v308_v40 = vsub.f32 %v281_v24, %v291_v36 }
 0x191   : > { %v302_v41 = vmul.f32 %v300_v37, %v300_v37  ;;  %301 = vst.msk [vmem:[#allocation2 + $0x8] sm:$0xff] %vm266_vm2, %v300_v37  ;;  %v294_v42 = vmul.f32 %v292_v38, %v292_v38  ;;  %293 = vst.msk [vmem:[#allocation2] sm:$0xff] %vm266_vm2, %v292_v38  ;;  %v318_v45 = vmul.f32 %v316_v39, %v316_v39 }
 0x192   : > { %317 = vst.msk [vmem:[#allocation2 + $0x18] sm:$0xff] %vm266_vm2, %v316_v39  ;;  %309 = vst.msk [vmem:[#allocation2 + $0x10] sm:$0xff] %vm266_vm2, %v308_v40  ;;  %v310_v46 = vmul.f32 %v308_v40, %v308_v40 }
 0x193   : > { %v303_v43 = vsel %vm266_vm2, %v302_v41, 0.0  ;;  %v295_v44 = vsel %vm266_vm2, %v294_v42, 0.0  ;;  %v319_v47 = vsel %vm266_vm2, %v318_v45, 0.0 }
 0x194   : > { %304 = vadd.xlane.f32.xlu0 %v303_v43  ;;  %296 = vadd.xlane.f32.xlu1 %v295_v44  ;;  %v311_v48 = vsel %vm266_vm2, %v310_v46, 0.0 }
 0x198   : > { %320 = vadd.xlane.f32.xlu0 %v319_v47  ;;  %312 = vadd.xlane.f32.xlu1 %v311_v48  ;;  %v332_v60 = vld [vmem:[#allocation2 + $0x8] sm:$0xff]  ;;  %v326_v62 = vld [vmem:[#allocation2] sm:$0xff] }
 0x199   : > { %v344_v58 = vld [vmem:[#allocation2 + $0x10] sm:$0xff]  ;;  %v356_v61 = vld [vmem:[#allocation2 + $0x18] sm:$0xff] }
 0x221   : > { %v305_v49 = vpop.xlane.xlu0 %304  ;;  %v297_v50 = vpop.xlane.xlu1 %296 }
 0x222   : > { %v306_v51 = vadd.f32 %v305_v49, %v297_v50 }
 0x225   : > { %v313_v52 = vpop.xlane.xlu1 %312  ;;  %v321_v54 = vpop.xlane.xlu0 %320 }
 0x226   : > { %v314_v53 = vadd.f32 %v313_v52, %v306_v51 }
 0x228   : > { %v322_v55 = vadd.f32 %v321_v54, %v314_v53 }
 0x22a   : > { %v323_v56 = vmul.f32 0.0625, %v322_v55 }
 0x22c   : > { %v324_v57 = vadd.f32 1e-05, %v323_v56 }
 0x22e   : > { %466 = vrsqrt.f32 %v324_v57 }
 0x238   : > { %v467_v59 = vpop.eup %466 }
 0x239   : > { %v345_v63 = vmul.f32 %v467_v59, %v344_v58  ;;  %v333_v0 = vmul.f32 %v467_v59, %v332_v60  ;;  %v357_v1 = vmul.f32 %v467_v59, %v356_v61  ;;  %v327_v2 = vmul.f32 %v467_v59, %v326_v62 }
 0x23b   : > { %v346_v3 = vmax.f32 %v345_v63, 0.0  ;;  %v334_v4 = vmax.f32 %v333_v0, 0.0  ;;  %v328_v5 = vmax.f32 %v327_v2, 0.0  ;;  %v358_v8 = vmax.f32 %v357_v1, 0.0 }
 0x23d   : > { %v438_v6 = vpack.c.bf16 %v346_v3, %v346_v3  ;;  %v437_v7 = vpack.c.bf16 %v334_v4, %v334_v4  ;;  %v329_v9 = vpack.c.bf16 %v328_v5, %v328_v5  ;;  %v439_v10 = vpack.c.bf16 %v358_v8, %v358_v8 }
 0x23f   : > { %351 = vrot.lane.b32.xlu0 %v438_v6, %s477_s6  ;;  %339 = vrot.lane.b32.xlu1 %v437_v7, %s478_s7  ;;  %331 = vst.msk [vmem:[%s165_s5] sm:$0xf] %vm330_vm3, %v329_v9 }
 0x243   : > { %363 = vrot.lane.b32.xlu1 %v439_v10, %s479_s8 }
 0x2b1   : > { %v352_v11 = vpop.permute.xlu0 %351  ;;  %v340_v12 = vpop.permute.xlu1 %339 }
 0x2b2   : > { %343 = vst.msk [vmem:[%s165_s5] sm:$0xf] %vm342_vm4, %v340_v12 }
 0x2b3   : > { %355 = vst.msk [vmem:[%s165_s5] sm:$0xf] %vm354_vm5, %v352_v11 }
 0x2b5   : > { %v364_v13 = vpop.permute.xlu1 %363 }
 0x2b6   : > { %367 = vst.msk [vmem:[%s165_s5] sm:$0xf] %vm366_vm6, %v364_v13 }
 0x2b7 PF: > { %s13_s12 = sadd.s32 1, %s474_s12  }
 0x2b8   : > { %p10_p4 = scmp.ge.s32.totalorder %s13_s12, 4  }
 0x2ba   :  { %12 = sbr.rel (!%p10_p4) target bundleno = 1 (0x1), region = 62 }

// kernel: tile.38
= control target key start
LH: loop header
LB: loop body
LE: loop exit
PB: predicated region body
PF: predicated region fallthrough
CT: control target
= control target key end

     0   :  { %s22_s0 = inlined_call_operand.vmem [shape: f32[32], index: 0, kind: input, shape index: {}]   ;;  %s23_s1 = inlined_call_operand.vmem [shape: f32[4,32], index: 1, kind: output, shape index: {}]  }
   0x1   :  { %v4_v0 = vld [vmem:[%s22_s0] ss:$0 sm:$0xff] }
   0x2   :  { %5 = vst [vmem:[%s23_s1] sm:$0xf] %v4_v0 }

// kernel: tile.3
= control target key start
LH: loop header
LB: loop body
LE: loop exit
PB: predicated region body
PF: predicated region fallthrough
CT: control target
= control target key end

     0   :  { %s546_s8 = smov 125   ;;  %s547_s9 = smov 126   ;;  %vm7_vm0 = vcmask 7168   ;;  %s1101_s0 = inlined_call_operand.vmem [shape: f32[4,32], index: 0, kind: input, shape index: {}]   ;;  %s1102_s1 = inlined_call_operand.vmem [shape: f32[128,1], index: 1, kind: output, shape index: {}]  }
   0x1   :  { %v4_v0 = vld [vmem:[%s1101_s0] sm:$0xf]  ;;  %s545_s0 = smov 127   ;;  %s548_s10 = smov 124  }
   0x2   :  { %5 = vst [vmem:[#allocation0] sm:$0xf] %v4_v0  ;;  %s549_s11 = smov 123   ;;  %s550_s12 = smov 122  }
   0x3   :  { %s551_s13 = smov 121   ;;  %s552_s14 = smov 120  }
   0x4   :  { %s553_s15 = smov 119   ;;  %s554_s16 = smov 118  }
   0x5   :  { %s555_s17 = smov 117   ;;  %s556_s18 = smov 116  }
   0x6   :  { %s557_s19 = smov 115   ;;  %s558_s20 = smov 114  }
   0x7   :  { %s559_s21 = smov 113   ;;  %s560_s22 = smov 112  }
   0x8   :  { %s561_s23 = smov 111   ;;  %s562_s24 = smov 110  }
   0x9   :  { %v15_v1 = vld [vmem:[#allocation0] sm:$0xf]   ;;  %s563_s25 = smov 109   ;;  %s564_s26 = smov 108  }
   0xa   :  { %v39_v2 = vld [vmem:[#allocation0] sm:$0xf]   ;;  %16 = vrot.lane.b32.xlu0 %v15_v1, %s545_s0  ;;  %s565_s27 = smov 107   ;;  %s566_s28 = smov 106  }
   0xb   :  { %40 = vrot.lane.b32.xlu1 %v39_v2, %s546_s8  ;;  %v27_v3 = vld [vmem:[#allocation0] sm:$0xf]   ;;  %s567_s29 = smov 105   ;;  %s568_s30 = smov 104  }
   0xc   :  { %v51_v4 = vld [vmem:[#allocation0] sm:$0xf]  }
   0xd   :  { %v63_v5 = vld [vmem:[#allocation0] sm:$0xf]  }
   0xe   :  { %28 = vrot.lane.b32.xlu0 %v27_v3, %s547_s9  ;;  %v75_v6 = vld [vmem:[#allocation0] sm:$0xf]   ;;  %s569_s9 = smov 103  }
   0xf   :  { %52 = vrot.lane.b32.xlu1 %v51_v4, %s548_s10  ;;  %v87_v7 = vld [vmem:[#allocation0] sm:$0xf]   ;;  %s570_s10 = smov 102  }
  0x10   :  { %v99_v8 = vld [vmem:[#allocation0] sm:$0xf]  }
  0x11   :  { %v111_v9 = vld [vmem:[#allocation0] sm:$0xf]  }
  0x12   :  { %64 = vrot.lane.b32.xlu0 %v63_v5, %s549_s11  ;;  %v123_v10 = vld [vmem:[#allocation0] sm:$0xf]   ;;  %s571_s11 = smov 101  }
  0x13   :  { %76 = vrot.lane.b32.xlu1 %v75_v6, %s550_s12  ;;  %v135_v11 = vld [vmem:[#allocation0] sm:$0xf]   ;;  %s572_s12 = smov 100  }
  0x14   :  { %v147_v12 = vld [vmem:[#allocation0] sm:$0xf]  }
  0x15   :  { %v159_v13 = vld [vmem:[#allocation0] sm:$0xf]  }
  0x16   :  { %88 = vrot.lane.b32.xlu0 %v87_v7, %s551_s13  ;;  %v171_v14 = vld [vmem:[#allocation0] sm:$0xf]   ;;  %s573_s13 = smov 99  }
  0x17   :  { %100 = vrot.lane.b32.xlu1 %v99_v8, %s552_s14  ;;  %v183_v15 = vld [vmem:[#allocation0] sm:$0xf]   ;;  %s574_s14 = smov 98  }
  0x18   :  { %v195_v16 = vld [vmem:[#allocation0] sm:$0xf]  }
  0x19   :  { %v207_v17 = vld [vmem:[#allocation0] sm:$0xf]  }
  0x1a   :  { %112 = vrot.lane.b32.xlu0 %v111_v9, %s553_s15  ;;  %v219_v18 = vld [vmem:[#allocation0] sm:$0xf]   ;;  %s575_s15 = smov 97  }
  0x1b   :  { %124 = vrot.lane.b32.xlu1 %v123_v10, %s554_s16  ;;  %v231_v19 = vld [vmem:[#allocation0] sm:$0xf]  }
  0x1c   :  { %v243_v20 = vld [vmem:[#allocation0] sm:$0xf]  }
  0x1d   :  { %v255_v21 = vld [vmem:[#allocation0] sm:$0xf]  }
  0x1e   :  { %136 = vrot.lane.b32.xlu0 %v135_v11, %s555_s17  ;;  %v267_v22 = vld [vmem:[#allocation0] sm:$0xf]  }
  0x1f   :  { %148 = vrot.lane.b32.xlu1 %v147_v12, %s556_s18  ;;  %v279_v23 = vld [vmem:[#allocation0] sm:$0xf]  }
  0x20   :  { %v291_v24 = vld [vmem:[#allocation0] sm:$0xf]  }
  0x21   :  { %v303_v25 = vld [vmem:[#allocation0] sm:$0xf]  }
  0x22   :  { %160 = vrot.lane.b32.xlu0 %v159_v13, %s557_s19  ;;  %v315_v26 = vld [vmem:[#allocation0] sm:$0xf]  }
  0x23   :  { %172 = vrot.lane.b32.xlu1 %v171_v14, %s558_s20  ;;  %v6_v27 = vld [vmem:[#allocation0] sm:$0xf]  }
  0x24   :  { %8 = vst.msk [vmem:[%s1102_s1] sm:$0x1] %vm7_vm0, %v6_v27   ;;  %387 = vst.msk [vmem:[%s1102_s1 + $0x1f] sm:$0x2] %vm7_vm0, %v6_v27   ;;  %v327_v28 = vld [vmem:[#allocation0] sm:$0xf]  }
  0x25   :  { %388 = vst.msk [vmem:[%s1102_s1 + $0x3e] sm:$0x4] %vm7_vm0, %v6_v27   ;;  %389 = vst.msk [vmem:[%s1102_s1 + $0x5d] sm:$0x8] %vm7_vm0, %v6_v27   ;;  %v339_v29 = vld [vmem:[#allocation0] sm:$0xf]  }
  0x26   :  { %184 = vrot.lane.b32.xlu0 %v183_v15, %s559_s21  ;;  %v351_v30 = vld [vmem:[#allocation0] sm:$0xf]  }
  0x27   :  { %196 = vrot.lane.b32.xlu1 %v195_v16, %s560_s22  ;;  %v363_v31 = vld [vmem:[#allocation0] sm:$0xf]  }
  0x28   :  { %v375_v32 = vld [vmem:[#allocation0] sm:$0xf]  }
  0x2a   :  { %208 = vrot.lane.b32.xlu0 %v207_v17, %s561_s23 }
  0x2b   :  { %220 = vrot.lane.b32.xlu1 %v219_v18, %s562_s24 }
  0x2e   :  { %232 = vrot.lane.b32.xlu0 %v231_v19, %s563_s25 }
  0x2f   :  { %244 = vrot.lane.b32.xlu1 %v243_v20, %s564_s26 }
  0x32   :  { %256 = vrot.lane.b32.xlu0 %v255_v21, %s565_s27 }
  0x33   :  { %268 = vrot.lane.b32.xlu1 %v267_v22, %s566_s28 }
  0x36   :  { %280 = vrot.lane.b32.xlu0 %v279_v23, %s567_s29 }
  0x37   :  { %292 = vrot.lane.b32.xlu1 %v291_v24, %s568_s30 }
  0x3a   :  { %304 = vrot.lane.b32.xlu0 %v303_v25, %s569_s9 }
  0x3b   :  { %316 = vrot.lane.b32.xlu1 %v315_v26, %s570_s10 }
  0x3e   :  { %328 = vrot.lane.b32.xlu0 %v327_v28, %s571_s11 }
  0x3f   :  { %340 = vrot.lane.b32.xlu1 %v339_v29, %s572_s12 }
  0x42   :  { %352 = vrot.lane.b32.xlu0 %v351_v30, %s573_s13 }
  0x43   :  { %364 = vrot.lane.b32.xlu1 %v363_v31, %s574_s14 }
  0x46   :  { %376 = vrot.lane.b32.xlu0 %v375_v32, %s575_s15 }
  0x7c   :  { %v17_v33 = vpop.permute.xlu0 %16  }
  0x7d   :  { %v41_v34 = vpop.permute.xlu1 %40   ;;  %390 = vst.msk [vmem:[%s1102_s1 + $0x1] sm:$0x1] %vm7_vm0, %v17_v33   ;;  %391 = vst.msk [vmem:[%s1102_s1 + $0x20] sm:$0x2] %vm7_vm0, %v17_v33  }
  0x7e   :  { %392 = vst.msk [vmem:[%s1102_s1 + $0x3f] sm:$0x4] %vm7_vm0, %v17_v33   ;;  %393 = vst.msk [vmem:[%s1102_s1 + $0x5e] sm:$0x8] %vm7_vm0, %v17_v33  }
  0x7f   :  { %398 = vst.msk [vmem:[%s1102_s1 + $0x3] sm:$0x1] %vm7_vm0, %v41_v34   ;;  %399 = vst.msk [vmem:[%s1102_s1 + $0x22] sm:$0x2] %vm7_vm0, %v41_v34  }
  0x80   :  { %400 = vst.msk [vmem:[%s1102_s1 + $0x41] sm:$0x4] %vm7_vm0, %v41_v34   ;;  %401 = vst.msk [vmem:[%s1102_s1 + $0x60] sm:$0x8] %vm7_vm0, %v41_v34   ;;  %v29_v35 = vpop.permute.xlu0 %28  }
  0x81   :  { %v53_v36 = vpop.permute.xlu1 %52   ;;  %394 = vst.msk [vmem:[%s1102_s1 + $0x2] sm:$0x1] %vm7_vm0, %v29_v35   ;;  %395 = vst.msk [vmem:[%s1102_s1 + $0x21] sm:$0x2] %vm7_vm0, %v29_v35  }
  0x82   :  { %396 = vst.msk [vmem:[%s1102_s1 + $0x40] sm:$0x4] %vm7_vm0, %v29_v35   ;;  %397 = vst.msk [vmem:[%s1102_s1 + $0x5f] sm:$0x8] %vm7_vm0, %v29_v35  }
  0x83   :  { %402 = vst.msk [vmem:[%s1102_s1 + $0x4] sm:$0x1] %vm7_vm0, %v53_v36   ;;  %403 = vst.msk [vmem:[%s1102_s1 + $0x23] sm:$0x2] %vm7_vm0, %v53_v36  }
  0x84   :  { %404 = vst.msk [vmem:[%s1102_s1 + $0x42] sm:$0x4] %vm7_vm0, %v53_v36   ;;  %405 = vst.msk [vmem:[%s1102_s1 + $0x61] sm:$0x8] %vm7_vm0, %v53_v36   ;;  %v65_v37 = vpop.permute.xlu0 %64  }
  0x85   :  { %v77_v38 = vpop.permute.xlu1 %76   ;;  %406 = vst.msk [vmem:[%s1102_s1 + $0x5] sm:$0x1] %vm7_vm0, %v65_v37   ;;  %407 = vst.msk [vmem:[%s1102_s1 + $0x24] sm:$0x2] %vm7_vm0, %v65_v37  }
  0x86   :  { %408 = vst.msk [vmem:[%s1102_s1 + $0x43] sm:$0x4] %vm7_vm0, %v65_v37   ;;  %409 = vst.msk [vmem:[%s1102_s1 + $0x62] sm:$0x8] %vm7_vm0, %v65_v37  }
  0x87   :  { %410 = vst.msk [vmem:[%s1102_s1 + $0x6] sm:$0x1] %vm7_vm0, %v77_v38   ;;  %411 = vst.msk [vmem:[%s1102_s1 + $0x25] sm:$0x2] %vm7_vm0, %v77_v38  }
  0x88   :  { %412 = vst.msk [vmem:[%s1102_s1 + $0x44] sm:$0x4] %vm7_vm0, %v77_v38   ;;  %413 = vst.msk [vmem:[%s1102_s1 + $0x63] sm:$0x8] %vm7_vm0, %v77_v38   ;;  %v89_v39 = vpop.permute.xlu0 %88  }
  0x89   :  { %v101_v40 = vpop.permute.xlu1 %100   ;;  %414 = vst.msk [vmem:[%s1102_s1 + $0x7] sm:$0x1] %vm7_vm0, %v89_v39   ;;  %415 = vst.msk [vmem:[%s1102_s1 + $0x26] sm:$0x2] %vm7_vm0, %v89_v39  }
  0x8a   :  { %416 = vst.msk [vmem:[%s1102_s1 + $0x45] sm:$0x4] %vm7_vm0, %v89_v39   ;;  %417 = vst.msk [vmem:[%s1102_s1 + $0x64] sm:$0x8] %vm7_vm0, %v89_v39  }
  0x8b   :  { %418 = vst.msk [vmem:[%s1102_s1 + $0x8] sm:$0x1] %vm7_vm0, %v101_v40   ;;  %419 = vst.msk [vmem:[%s1102_s1 + $0x27] sm:$0x2] %vm7_vm0, %v101_v40  }
  0x8c   :  { %420 = vst.msk [vmem:[%s1102_s1 + $0x46] sm:$0x4] %vm7_vm0, %v101_v40   ;;  %421 = vst.msk [vmem:[%s1102_s1 + $0x65] sm:$0x8] %vm7_vm0, %v101_v40   ;;  %v113_v41 = vpop.permute.xlu0 %112  }
  0x8d   :  { %v125_v42 = vpop.permute.xlu1 %124   ;;  %422 = vst.msk [vmem:[%s1102_s1 + $0x9] sm:$0x1] %vm7_vm0, %v113_v41   ;;  %423 = vst.msk [vmem:[%s1102_s1 + $0x28] sm:$0x2] %vm7_vm0, %v113_v41  }
  0x8e   :  { %424 = vst.msk [vmem:[%s1102_s1 + $0x47] sm:$0x4] %vm7_vm0, %v113_v41   ;;  %425 = vst.msk [vmem:[%s1102_s1 + $0x66] sm:$0x8] %vm7_vm0, %v113_v41  }
  0x8f   :  { %426 = vst.msk [vmem:[%s1102_s1 + $0xa] sm:$0x1] %vm7_vm0, %v125_v42   ;;  %427 = vst.msk [vmem:[%s1102_s1 + $0x29] sm:$0x2] %vm7_vm0, %v125_v42  }
  0x90   :  { %428 = vst.msk [vmem:[%s1102_s1 + $0x48] sm:$0x4] %vm7_vm0, %v125_v42   ;;  %429 = vst.msk [vmem:[%s1102_s1 + $0x67] sm:$0x8] %vm7_vm0, %v125_v42   ;;  %v137_v43 = vpop.permute.xlu0 %136  }
  0x91   :  { %v149_v44 = vpop.permute.xlu1 %148   ;;  %430 = vst.msk [vmem:[%s1102_s1 + $0xb] sm:$0x1] %vm7_vm0, %v137_v43   ;;  %431 = vst.msk [vmem:[%s1102_s1 + $0x2a] sm:$0x2] %vm7_vm0, %v137_v43  }
  0x92   :  { %432 = vst.msk [vmem:[%s1102_s1 + $0x49] sm:$0x4] %vm7_vm0, %v137_v43   ;;  %433 = vst.msk [vmem:[%s1102_s1 + $0x68] sm:$0x8] %vm7_vm0, %v137_v43  }
  0x93   :  { %434 = vst.msk [vmem:[%s1102_s1 + $0xc] sm:$0x1] %vm7_vm0, %v149_v44   ;;  %435 = vst.msk [vmem:[%s1102_s1 + $0x2b] sm:$0x2] %vm7_vm0, %v149_v44  }
  0x94   :  { %436 = vst.msk [vmem:[%s1102_s1 + $0x4a] sm:$0x4] %vm7_vm0, %v149_v44   ;;  %437 = vst.msk [vmem:[%s1102_s1 + $0x69] sm:$0x8] %vm7_vm0, %v149_v44   ;;  %v161_v45 = vpop.permute.xlu0 %160  }
  0x95   :  { %v173_v46 = vpop.permute.xlu1 %172   ;;  %438 = vst.msk [vmem:[%s1102_s1 + $0xd] sm:$0x1] %vm7_vm0, %v161_v45   ;;  %439 = vst.msk [vmem:[%s1102_s1 + $0x2c] sm:$0x2] %vm7_vm0, %v161_v45  }
  0x96   :  { %440 = vst.msk [vmem:[%s1102_s1 + $0x4b] sm:$0x4] %vm7_vm0, %v161_v45   ;;  %441 = vst.msk [vmem:[%s1102_s1 + $0x6a] sm:$0x8] %vm7_vm0, %v161_v45  }
  0x97   :  { %442 = vst.msk [vmem:[%s1102_s1 + $0xe] sm:$0x1] %vm7_vm0, %v173_v46   ;;  %443 = vst.msk [vmem:[%s1102_s1 + $0x2d] sm:$0x2] %vm7_vm0, %v173_v46  }
  0x98   :  { %444 = vst.msk [vmem:[%s1102_s1 + $0x4c] sm:$0x4] %vm7_vm0, %v173_v46   ;;  %445 = vst.msk [vmem:[%s1102_s1 + $0x6b] sm:$0x8] %vm7_vm0, %v173_v46   ;;  %v185_v47 = vpop.permute.xlu0 %184  }
  0x99   :  { %v197_v48 = vpop.permute.xlu1 %196   ;;  %446 = vst.msk [vmem:[%s1102_s1 + $0xf] sm:$0x1] %vm7_vm0, %v185_v47   ;;  %447 = vst.msk [vmem:[%s1102_s1 + $0x2e] sm:$0x2] %vm7_vm0, %v185_v47  }
  0x9a   :  { %448 = vst.msk [vmem:[%s1102_s1 + $0x4d] sm:$0x4] %vm7_vm0, %v185_v47   ;;  %449 = vst.msk [vmem:[%s1102_s1 + $0x6c] sm:$0x8] %vm7_vm0, %v185_v47  }
  0x9b   :  { %450 = vst.msk [vmem:[%s1102_s1 + $0x10] sm:$0x1] %vm7_vm0, %v197_v48   ;;  %451 = vst.msk [vmem:[%s1102_s1 + $0x2f] sm:$0x2] %vm7_vm0, %v197_v48  }
  0x9c   :  { %452 = vst.msk [vmem:[%s1102_s1 + $0x4e] sm:$0x4] %vm7_vm0, %v197_v48   ;;  %453 = vst.msk [vmem:[%s1102_s1 + $0x6d] sm:$0x8] %vm7_vm0, %v197_v48   ;;  %v209_v49 = vpop.permute.xlu0 %208  }
  0x9d   :  { %v221_v50 = vpop.permute.xlu1 %220   ;;  %454 = vst.msk [vmem:[%s1102_s1 + $0x11] sm:$0x1] %vm7_vm0, %v209_v49   ;;  %455 = vst.msk [vmem:[%s1102_s1 + $0x30] sm:$0x2] %vm7_vm0, %v209_v49  }
  0x9e   :  { %456 = vst.msk [vmem:[%s1102_s1 + $0x4f] sm:$0x4] %vm7_vm0, %v209_v49   ;;  %457 = vst.msk [vmem:[%s1102_s1 + $0x6e] sm:$0x8] %vm7_vm0, %v209_v49  }
  0x9f   :  { %458 = vst.msk [vmem:[%s1102_s1 + $0x12] sm:$0x1] %vm7_vm0, %v221_v50   ;;  %459 = vst.msk [vmem:[%s1102_s1 + $0x31] sm:$0x2] %vm7_vm0, %v221_v50  }
  0xa0   :  { %460 = vst.msk [vmem:[%s1102_s1 + $0x50] sm:$0x4] %vm7_vm0, %v221_v50   ;;  %461 = vst.msk [vmem:[%s1102_s1 + $0x6f] sm:$0x8] %vm7_vm0, %v221_v50   ;;  %v233_v51 = vpop.permute.xlu0 %232  }
  0xa1   :  { %v245_v52 = vpop.permute.xlu1 %244   ;;  %462 = vst.msk [vmem:[%s1102_s1 + $0x13] sm:$0x1] %vm7_vm0, %v233_v51   ;;  %463 = vst.msk [vmem:[%s1102_s1 + $0x32] sm:$0x2] %vm7_vm0, %v233_v51  }
  0xa2   :  { %464 = vst.msk [vmem:[%s1102_s1 + $0x51] sm:$0x4] %vm7_vm0, %v233_v51   ;;  %465 = vst.msk [vmem:[%s1102_s1 + $0x70] sm:$0x8] %vm7_vm0, %v233_v51  }
  0xa3   :  { %466 = vst.msk [vmem:[%s1102_s1 + $0x14] sm:$0x1] %vm7_vm0, %v245_v52   ;;  %467 = vst.msk [vmem:[%s1102_s1 + $0x33] sm:$0x2] %vm7_vm0, %v245_v52  }
  0xa4   :  { %468 = vst.msk [vmem:[%s1102_s1 + $0x52] sm:$0x4] %vm7_vm0, %v245_v52   ;;  %469 = vst.msk [vmem:[%s1102_s1 + $0x71] sm:$0x8] %vm7_vm0, %v245_v52   ;;  %v257_v53 = vpop.permute.xlu0 %256  }
  0xa5   :  { %v269_v54 = vpop.permute.xlu1 %268   ;;  %470 = vst.msk [vmem:[%s1102_s1 + $0x15] sm:$0x1] %vm7_vm0, %v257_v53   ;;  %471 = vst.msk [vmem:[%s1102_s1 + $0x34] sm:$0x2] %vm7_vm0, %v257_v53  }
  0xa6   :  { %472 = vst.msk [vmem:[%s1102_s1 + $0x53] sm:$0x4] %vm7_vm0, %v257_v53   ;;  %473 = vst.msk [vmem:[%s1102_s1 + $0x72] sm:$0x8] %vm7_vm0, %v257_v53  }
  0xa7   :  { %474 = vst.msk [vmem:[%s1102_s1 + $0x16] sm:$0x1] %vm7_vm0, %v269_v54   ;;  %475 = vst.msk [vmem:[%s1102_s1 + $0x35] sm:$0x2] %vm7_vm0, %v269_v54  }
  0xa8   :  { %476 = vst.msk [vmem:[%s1102_s1 + $0x54] sm:$0x4] %vm7_vm0, %v269_v54   ;;  %477 = vst.msk [vmem:[%s1102_s1 + $0x73] sm:$0x8] %vm7_vm0, %v269_v54   ;;  %v281_v55 = vpop.permute.xlu0 %280  }
  0xa9   :  { %v293_v56 = vpop.permute.xlu1 %292   ;;  %478 = vst.msk [vmem:[%s1102_s1 + $0x17] sm:$0x1] %vm7_vm0, %v281_v55   ;;  %479 = vst.msk [vmem:[%s1102_s1 + $0x36] sm:$0x2] %vm7_vm0, %v281_v55  }
  0xaa   :  { %480 = vst.msk [vmem:[%s1102_s1 + $0x55] sm:$0x4] %vm7_vm0, %v281_v55   ;;  %481 = vst.msk [vmem:[%s1102_s1 + $0x74] sm:$0x8] %vm7_vm0, %v281_v55  }
  0xab   :  { %482 = vst.msk [vmem:[%s1102_s1 + $0x18] sm:$0x1] %vm7_vm0, %v293_v56   ;;  %483 = vst.msk [vmem:[%s1102_s1 + $0x37] sm:$0x2] %vm7_vm0, %v293_v56  }
  0xac   :  { %484 = vst.msk [vmem:[%s1102_s1 + $0x56] sm:$0x4] %vm7_vm0, %v293_v56   ;;  %485 = vst.msk [vmem:[%s1102_s1 + $0x75] sm:$0x8] %vm7_vm0, %v293_v56   ;;  %v305_v57 = vpop.permute.xlu0 %304  }
  0xad   :  { %v317_v58 = vpop.permute.xlu1 %316   ;;  %486 = vst.msk [vmem:[%s1102_s1 + $0x19] sm:$0x1] %vm7_vm0, %v305_v57   ;;  %487 = vst.msk [vmem:[%s1102_s1 + $0x38] sm:$0x2] %vm7_vm0, %v305_v57  }
  0xae   :  { %488 = vst.msk [vmem:[%s1102_s1 + $0x57] sm:$0x4] %vm7_vm0, %v305_v57   ;;  %489 = vst.msk [vmem:[%s1102_s1 + $0x76] sm:$0x8] %vm7_vm0, %v305_v57  }
  0xaf   :  { %490 = vst.msk [vmem:[%s1102_s1 + $0x1a] sm:$0x1] %vm7_vm0, %v317_v58   ;;  %491 = vst.msk [vmem:[%s1102_s1 + $0x39] sm:$0x2] %vm7_vm0, %v317_v58  }
  0xb0   :  { %492 = vst.msk [vmem:[%s1102_s1 + $0x58] sm:$0x4] %vm7_vm0, %v317_v58   ;;  %493 = vst.msk [vmem:[%s1102_s1 + $0x77] sm:$0x8] %vm7_vm0, %v317_v58   ;;  %v329_v59 = vpop.permute.xlu0 %328  }
  0xb1   :  { %v341_v60 = vpop.permute.xlu1 %340   ;;  %494 = vst.msk [vmem:[%s1102_s1 + $0x1b] sm:$0x1] %vm7_vm0, %v329_v59   ;;  %495 = vst.msk [vmem:[%s1102_s1 + $0x3a] sm:$0x2] %vm7_vm0, %v329_v59  }
  0xb2   :  { %496 = vst.msk [vmem:[%s1102_s1 + $0x59] sm:$0x4] %vm7_vm0, %v329_v59   ;;  %497 = vst.msk [vmem:[%s1102_s1 + $0x78] sm:$0x8] %vm7_vm0, %v329_v59  }
  0xb3   :  { %498 = vst.msk [vmem:[%s1102_s1 + $0x1c] sm:$0x1] %vm7_vm0, %v341_v60   ;;  %499 = vst.msk [vmem:[%s1102_s1 + $0x3b] sm:$0x2] %vm7_vm0, %v341_v60  }
  0xb4   :  { %500 = vst.msk [vmem:[%s1102_s1 + $0x5a] sm:$0x4] %vm7_vm0, %v341_v60   ;;  %501 = vst.msk [vmem:[%s1102_s1 + $0x79] sm:$0x8] %vm7_vm0, %v341_v60   ;;  %v353_v61 = vpop.permute.xlu0 %352  }
  0xb5   :  { %v365_v62 = vpop.permute.xlu1 %364   ;;  %502 = vst.msk [vmem:[%s1102_s1 + $0x1d] sm:$0x1] %vm7_vm0, %v353_v61   ;;  %503 = vst.msk [vmem:[%s1102_s1 + $0x3c] sm:$0x2] %vm7_vm0, %v353_v61  }
  0xb6   :  { %504 = vst.msk [vmem:[%s1102_s1 + $0x5b] sm:$0x4] %vm7_vm0, %v353_v61   ;;  %505 = vst.msk [vmem:[%s1102_s1 + $0x7a] sm:$0x8] %vm7_vm0, %v353_v61  }
  0xb7   :  { %506 = vst.msk [vmem:[%s1102_s1 + $0x1e] sm:$0x1] %vm7_vm0, %v365_v62   ;;  %507 = vst.msk [vmem:[%s1102_s1 + $0x3d] sm:$0x2] %vm7_vm0, %v365_v62  }
  0xb8   :  { %508 = vst.msk [vmem:[%s1102_s1 + $0x5c] sm:$0x4] %vm7_vm0, %v365_v62   ;;  %509 = vst.msk [vmem:[%s1102_s1 + $0x7b] sm:$0x8] %vm7_vm0, %v365_v62   ;;  %v377_v63 = vpop.permute.xlu0 %376  }
  0xb9   :  { %510 = vst.msk [vmem:[%s1102_s1 + $0x1f] sm:$0x1] %vm7_vm0, %v377_v63   ;;  %511 = vst.msk [vmem:[%s1102_s1 + $0x3e] sm:$0x2] %vm7_vm0, %v377_v63  }
  0xba   :  { %512 = vst.msk [vmem:[%s1102_s1 + $0x5d] sm:$0x4] %vm7_vm0, %v377_v63   ;;  %513 = vst.msk [vmem:[%s1102_s1 + $0x7c] sm:$0x8] %vm7_vm0, %v377_v63  }

// kernel: model_forward.13
= control target key start
LH: loop header
LB: loop body
LE: loop exit
PB: predicated region body
PF: predicated region fallthrough
CT: control target
= control target key end

     0   :  { %s697_s12 = smov 0   ;;  %s805_s0 = inlined_call_operand.vmem [shape: bf16[2,16,16], index: 0, kind: input, shape index: {}]   ;;  %s806_s1 = inlined_call_operand.vmem [shape: bf16[64,16], index: 1, kind: input, shape index: {}]   ;;  %s807_s2 = inlined_call_operand.vmem [shape: f32[64,1], index: 2, kind: input, shape index: {}]   ;;  %s808_s3 = inlined_call_operand.vmem [shape: bf16[2,16,64], index: 3, kind: output, shape index: {}]  }
   0x1 LB: > { %s587_s13 = sadd.s32 4294967295, %s671_s12   ;;  %p591_p0 = scmp.ge.s32.totalorder %s671_s12, 1  ;;  %s671_s12 = sphi %s697_s12, %s13_s12  }
   0x2   : > { %p137_p1 = scmp.lt.s32.totalorder %s671_s12, 3 }
   0x4   : > { %p138_p2 = pnand %p591_p0, %p137_p1 }
   0x5   : > { %p161_p3 = scmp.lt.s32.totalorder (!%p138_p2), %s587_s13, 1  ;;  %v657_v0 = vld [vmem:[%s806_s1] sm:$0xff] (!%p138_p2)   ;;  %vm256_vm0 = vcmask (!%p138_p2), 130048   ;;  %v658_v1 = vld [vmem:[%s806_s1 + $0x10] sm:$0xff] (!%p138_p2)   ;;  %v673_v2 = vmov (!%p138_p2), 0   ;;  %v183_v6 = vld [vmem:[%s807_s2 + $0x8] sm:$0xff] (!%p138_p2) }
   0x6   : > { %141 = sbr.rel (%p138_p2) target bundleno = 709 (0x2c5), region = 32  ;;  %632 = vmatprep.mubr.msk.bf16.mxu0 (!%p138_p2), %vm256_vm0, %v657_v0  ;;  %636 = vmatprep.mubr.msk.bf16.mxu1 (!%p138_p2), %vm256_vm0, %v658_v1  ;;  %v182_v3 = vld [vmem:[%s807_s2] sm:$0xff] (!%p138_p2)  ;;  %v184_v4 = vld [vmem:[%s807_s2 + $0x10] sm:$0xff] (!%p138_p2)  ;;  %v185_v7 = vld [vmem:[%s807_s2 + $0x18] sm:$0xff] (!%p138_p2)  ;;  %vm466_vm1 = vcmask (!%p138_p2), 125952   ;;  %s674_s21 = smov (!%p138_p2), 16  }
   0x7   : > { %654 = vset.pattern.permute.xlu0 (!%p138_p2), %v673_v2  ;;  %655 = vset.pattern.permute.xlu1 (!%p138_p2), %v673_v2  ;;  %v659_v8 = vld [vmem:[%s806_s1 + $0x8] sm:$0xff] (!%p138_p2)   ;;  %v660_v9 = vld [vmem:[%s806_s1 + $0x18] sm:$0xff] (!%p138_p2)   ;;  %v186_v10 = vld [vmem:[%s807_s2 + $0x20] sm:$0xff] (!%p138_p2)  ;;  %vm487_vm2 = vcmask (!%p138_p2), 257152   ;;  %vm508_vm3 = vcmask (!%p138_p2), 388352   ;;  %vm529_vm4 = vcmask (!%p138_p2), 519552  }
   0x8   : > { %192 = vperm.xlu0 (!%p138_p2), %654, %v182_v3   ;;  %202 = vperm.xlu1 (!%p138_p2), %655, %v184_v4   ;;  %v187_v11 = vld [vmem:[%s807_s2 + $0x28] sm:$0xff] (!%p138_p2)  ;;  %v188_v12 = vld [vmem:[%s807_s2 + $0x30] sm:$0xff] (!%p138_p2)  ;;  %v189_v13 = vld [vmem:[%s807_s2 + $0x38] sm:$0xff] (!%p138_p2) }
   0xc   : > { %197 = vperm.xlu0 (!%p138_p2), %654, %v183_v6   ;;  %207 = vperm.xlu1 (!%p138_p2), %655, %v185_v7  }
   0xd   : > { %s810_s13 = smov (!%p161_p3, %s587_s13), 1 }
   0xe   : > { %s615_s18 = sshll.u32 %s810_s13, 3  ;;  %s675_s13 = smov 32  }
   0xf   : > { %s165_s25 = scalar_lea.vmem %s805_s0, %s615_s18  ;;  %s790_s20 = scalar_lea.vmem %s808_s3, %s615_s18 }
  0x10   : > { %v656_v5 = vld [vmem:[%s165_s25] sm:$0xff]   ;;  %212 = vperm.xlu0 %654, %v186_v10   ;;  %217 = vperm.xlu1 %655, %v187_v11   ;;  %s676_s18 = smov 48  }
  0x11   : > { %630 = vmatprep.subr.bf16.mxu0 %v656_v5  ;;  %640 = vmatprep.subr.bf16.mxu1 %v656_v5 }
  0x12   : > { %631 = vmatpush3.bf16.msra.mxu0 %v656_v5  ;;  %641 = vmatpush3.bf16.msra.mxu1 %v656_v5 }
  0x14   : > { %222 = vperm.xlu0 %654, %v188_v12   ;;  %227 = vperm.xlu1 %655, %v189_v13  }
  0x15   : > { %633 = vmatmul.mubr.msk.bf16.vlgmr.msra.gmra.mrb[0].mxu0 %vm256_vm0, %v659_v8  ;;  %637 = vmatmul.mubr.msk.bf16.vlgmr.msra.gmra.mrb[0].mxu1 %vm256_vm0, %v660_v9 }
  0x87   : > { %v193_v14 = vpop.permute.xlu0 %192  ;;  %v203_v15 = vpop.permute.xlu1 %202 }
  0x8b   : > { %v198_v16 = vpop.permute.xlu0 %197  ;;  %v208_v17 = vpop.permute.xlu1 %207 }
  0x8f   : > { %v213_v18 = vpop.permute.xlu0 %212  ;;  %v218_v19 = vpop.permute.xlu1 %217 }
  0x93   : > { %v223_v20 = vpop.permute.xlu0 %222  ;;  %v228_v21 = vpop.permute.xlu1 %227 }
  0xe8   : > { %v634_v22 = vpop.f32.mrb[0].mxu0  ;;  %v638_v23 = vpop.f32.mrb[0].mxu1 }
  0xe9   : > { %v312_v24 = vadd.f32 %v634_v22, %v203_v15  ;;  %v328_v25 = vadd.f32 %v638_v23, %v223_v20  ;;  %v303_v26 = vpop.f32.mrb[1].mxu0  ;;  %v319_v27 = vpop.f32.mrb[1].mxu1 }
  0xea   : > { %v304_v28 = vadd.f32 %v303_v26, %v193_v14  ;;  %v320_v29 = vadd.f32 %v319_v27, %v213_v18  ;;  %v635_v30 = vpop.f32.mrb[2].mxu0  ;;  %v639_v31 = vpop.f32.mrb[2].mxu1 }
  0xeb   : > { %336 = vst.msk [vmem:[#allocation2 + $0x10] sm:$0xff] %vm256_vm0, %v312_v24  ;;  %340 = vst.msk [vmem:[#allocation2 + $0x30] sm:$0xff] %vm256_vm0, %v328_v25  ;;  %v315_v32 = vadd.f32 %v635_v30, %v208_v17  ;;  %v331_v33 = vadd.f32 %v639_v31, %v228_v21  ;;  %v306_v34 = vpop.f32.mrb[3].mxu0  ;;  %v322_v35 = vpop.f32.mrb[3].mxu1 }
  0xec   : > { %334 = vst.msk [vmem:[#allocation2] sm:$0xff] %vm256_vm0, %v304_v28  ;;  %338 = vst.msk [vmem:[#allocation2 + $0x20] sm:$0xff] %vm256_vm0, %v320_v29  ;;  %v307_v36 = vadd.f32 %v306_v34, %v198_v16  ;;  %v323_v37 = vadd.f32 %v322_v35, %v218_v19 }
  0xed   : > { %337 = vst.msk [vmem:[#allocation2 + $0x18] sm:$0xff] %vm256_vm0, %v315_v32  ;;  %341 = vst.msk [vmem:[#allocation2 + $0x38] sm:$0xff] %vm256_vm0, %v331_v33 }
  0xee   : > { %335 = vst.msk [vmem:[#allocation2 + $0x8] sm:$0xff] %vm256_vm0, %v307_v36  ;;  %339 = vst.msk [vmem:[#allocation2 + $0x28] sm:$0xff] %vm256_vm0, %v323_v37 }
  0xf2   : > { %v352_v38 = vld [vmem:[#allocation2 + $0x10] sm:$0xff] }
  0xf3   : > { %v354_v39 = vsel %vm256_vm0, %v352_v38, 0.0  ;;  %v362_v40 = vld [vmem:[#allocation2 + $0x20] sm:$0xff]  ;;  %v372_v47 = vld [vmem:[#allocation2 + $0x30] sm:$0xff] }
  0xf4   : > { %355 = vadd.xlane.f32.xlu0 %v354_v39  ;;  %v364_v41 = vsel %vm256_vm0, %v362_v40, 0.0  ;;  %v342_v42 = vld [vmem:[#allocation2] sm:$0xff]  ;;  %v353_v46 = vld [vmem:[#allocation2 + $0x18] sm:$0xff]  ;;  %v374_v49 = vsel %vm256_vm0, %v372_v47, 0.0 }
  0xf5   : > { %365 = vadd.xlane.f32.xlu1 %v364_v41  ;;  %v343_v43 = vld [vmem:[#allocation2 + $0x8] sm:$0xff]  ;;  %v344_v44 = vsel %vm256_vm0, %v342_v42, 0.0  ;;  %v357_v48 = vsel %vm256_vm0, %v353_v46, 0.0  ;;  %v373_v52 = vld [vmem:[#allocation2 + $0x38] sm:$0xff] }
  0xf6   : > { %v347_v45 = vsel %vm256_vm0, %v343_v43, 0.0  ;;  %v363_v50 = vld [vmem:[#allocation2 + $0x28] sm:$0xff]  ;;  %v377_v53 = vsel %vm256_vm0, %v373_v52, 0.0 }
  0xf7   : > { %v367_v51 = vsel %vm256_vm0, %v363_v50, 0.0 }
  0xf8   : > { %345 = vadd.xlane.f32.xlu0 %v344_v44 }
  0xf9   : > { %348 = vadd.xlane.f32.xlu1 %v347_v45 }
  0xfc   : > { %358 = vadd.xlane.f32.xlu0 %v357_v48 }
  0xfd   : > { %375 = vadd.xlane.f32.xlu1 %v374_v49 }
 0x100   : > { %368 = vadd.xlane.f32.xlu0 %v367_v51 }
 0x104   : > { %378 = vadd.xlane.f32.xlu0 %v377_v53 }
 0x181   : > { %v356_v54 = vpop.xlane.xlu0 %355 }
 0x182   : > { %v366_v55 = vpop.xlane.xlu1 %365 }
 0x185   : > { %v346_v56 = vpop.xlane.xlu0 %345 }
 0x186   : > { %v360_v57 = vadd.f32 %v356_v54, %v346_v56  ;;  %v349_v58 = vpop.xlane.xlu1 %348 }
 0x188   : > { %v370_v59 = vadd.f32 %v366_v55, %v360_v57 }
 0x189   : > { %v359_v60 = vpop.xlane.xlu0 %358 }
 0x18a   : > { %v376_v61 = vpop.xlane.xlu1 %375  ;;  %v361_v1 = vadd.f32 %v359_v60, %v349_v58 }
 0x18b   : > { %v380_v62 = vadd.f32 %v376_v61, %v370_v59 }
 0x18d   : > { %v382_v63 = vmul.f32 0.015625, %v380_v62  ;;  %v369_v0 = vpop.xlane.xlu0 %368 }
 0x18e   : > { %v371_v6 = vadd.f32 %v369_v0, %v361_v1 }
 0x18f   : > { %v384_v2 = vsub.f32 %v342_v42, %v382_v63  ;;  %v400_v3 = vsub.f32 %v352_v38, %v382_v63  ;;  %v416_v4 = vsub.f32 %v362_v40, %v382_v63  ;;  %v432_v5 = vsub.f32 %v372_v47, %v382_v63 }
 0x191   : > { %v379_v7 = vpop.xlane.xlu0 %378  ;;  %v388_v8 = vmul.f32 %v384_v2, %v384_v2  ;;  %386 = vst.msk [vmem:[#allocation2] sm:$0xff] %vm256_vm0, %v384_v2  ;;  %402 = vst.msk [vmem:[#allocation2 + $0x10] sm:$0xff] %vm256_vm0, %v400_v3  ;;  %v404_v11 = vmul.f32 %v400_v3, %v400_v3  ;;  %v420_v18 = vmul.f32 %v416_v4, %v416_v4 }
 0x192   : > { %418 = vst.msk [vmem:[#allocation2 + $0x20] sm:$0xff] %vm256_vm0, %v416_v4  ;;  %434 = vst.msk [vmem:[#allocation2 + $0x30] sm:$0xff] %vm256_vm0, %v432_v5  ;;  %v381_v9 = vadd.f32 %v379_v7, %v371_v6  ;;  %v436_v23 = vmul.f32 %v432_v5, %v432_v5 }
 0x193   : > { %v390_v10 = vsel %vm256_vm0, %v388_v8, 0.0  ;;  %v406_v17 = vsel %vm256_vm0, %v404_v11, 0.0  ;;  %v422_v22 = vsel %vm256_vm0, %v420_v18, 0.0 }
 0x194   : > { %v383_v12 = vmul.f32 0.015625, %v381_v9  ;;  %391 = vadd.xlane.f32.xlu1 %v390_v10  ;;  %v438_v26 = vsel %vm256_vm0, %v436_v23, 0.0 }
 0x196   : > { %v385_v13 = vsub.f32 %v343_v43, %v383_v12  ;;  %v401_v14 = vsub.f32 %v353_v46, %v383_v12  ;;  %v417_v15 = vsub.f32 %v363_v50, %v383_v12  ;;  %v433_v16 = vsub.f32 %v373_v52, %v383_v12 }
 0x198   : > { %407 = vadd.xlane.f32.xlu1 %v406_v17  ;;  %v389_v19 = vmul.f32 %v385_v13, %v385_v13  ;;  %387 = vst.msk [vmem:[#allocation2 + $0x8] sm:$0xff] %vm256_vm0, %v385_v13  ;;  %403 = vst.msk [vmem:[#allocation2 + $0x18] sm:$0xff] %vm256_vm0, %v401_v14  ;;  %v405_v21 = vmul.f32 %v401_v14, %v401_v14  ;;  %v421_v25 = vmul.f32 %v417_v15, %v417_v15  ;;  %v469_v49 = vld [vmem:[#allocation2 + $0x10] sm:$0xff]  ;;  %v452_v51 = vld [vmem:[#allocation2] sm:$0xff] }
 0x199   : > { %419 = vst.msk [vmem:[#allocation2 + $0x28] sm:$0xff] %vm256_vm0, %v417_v15  ;;  %435 = vst.msk [vmem:[#allocation2 + $0x38] sm:$0xff] %vm256_vm0, %v433_v16  ;;  %v437_v28 = vmul.f32 %v433_v16, %v433_v16  ;;  %v490_v50 = vld [vmem:[#allocation2 + $0x20] sm:$0xff]  ;;  %v511_v60 = vld [vmem:[#allocation2 + $0x30] sm:$0xff] }
 0x19a   : > { %v393_v20 = vsel %vm256_vm0, %v389_v19, 0.0  ;;  %v409_v24 = vsel %vm256_vm0, %v405_v21, 0.0  ;;  %v425_v27 = vsel %vm256_vm0, %v421_v25, 0.0 }
 0x19b   : > { %394 = vadd.xlane.f32.xlu0 %v393_v20  ;;  %v441_v29 = vsel %vm256_vm0, %v437_v28, 0.0 }
 0x19c   : > { %423 = vadd.xlane.f32.xlu1 %v422_v22 }
 0x19f   : > { %410 = vadd.xlane.f32.xlu0 %v409_v24  ;;  %v470_v62 = vld [vmem:[#allocation2 + $0x18] sm:$0xff]  ;;  %v453_v0 = vld [vmem:[#allocation2 + $0x8] sm:$0xff] }
 0x1a0   : > { %439 = vadd.xlane.f32.xlu1 %v438_v26  ;;  %v491_v63 = vld [vmem:[#allocation2 + $0x28] sm:$0xff]  ;;  %v512_v4 = vld [vmem:[#allocation2 + $0x38] sm:$0xff] }
 0x1a3   : > { %426 = vadd.xlane.f32.xlu0 %v425_v27 }
 0x1a7   : > { %442 = vadd.xlane.f32.xlu0 %v441_v29 }
 0x221   : > { %v392_v30 = vpop.xlane.xlu1 %391 }
 0x225   : > { %v408_v31 = vpop.xlane.xlu1 %407 }
 0x226   : > { %v412_v34 = vadd.f32 %v408_v31, %v392_v30 }
 0x228   : > { %v395_v32 = vpop.xlane.xlu0 %394 }
 0x229   : > { %v424_v33 = vpop.xlane.xlu1 %423 }
 0x22a   : > { %v428_v35 = vadd.f32 %v424_v33, %v412_v34 }
 0x22c   : > { %v411_v36 = vpop.xlane.xlu0 %410 }
 0x22d   : > { %v440_v37 = vpop.xlane.xlu1 %439  ;;  %v413_v41 = vadd.f32 %v411_v36, %v395_v32 }
 0x22e   : > { %v444_v38 = vadd.f32 %v440_v37, %v428_v35 }
 0x230   : > { %v446_v39 = vmul.f32 0.015625, %v444_v38  ;;  %v427_v40 = vpop.xlane.xlu0 %426 }
 0x231   : > { %v429_v43 = vadd.f32 %v427_v40, %v413_v41 }
 0x232   : > { %v448_v42 = vadd.f32 1e-05, %v446_v39 }
 0x234   : > { %661 = vrsqrt.f32 %v448_v42  ;;  %v443_v44 = vpop.xlane.xlu0 %442 }
 0x235   : > { %v445_v45 = vadd.f32 %v443_v44, %v429_v43 }
 0x237   : > { %v447_v46 = vmul.f32 0.015625, %v445_v45 }
 0x239   : > { %v449_v47 = vadd.f32 1e-05, %v447_v46 }
 0x23b   : > { %663 = vrsqrt.f32 %v449_v47 }
 0x23e   : > { %v662_v48 = vpop.eup %661 }
 0x23f   : > { %v471_v52 = vmul.f32 %v662_v48, %v469_v49  ;;  %v492_v53 = vmul.f32 %v662_v48, %v490_v50  ;;  %v454_v54 = vmul.f32 %v662_v48, %v452_v51  ;;  %v513_v3 = vmul.f32 %v662_v48, %v511_v60 }
 0x241   : > { %v473_v55 = vmax.f32 %v471_v52, 0.0  ;;  %v456_v56 = vmax.f32 %v454_v54, 0.0  ;;  %v494_v58 = vmax.f32 %v492_v53, 0.0  ;;  %v515_v13 = vmax.f32 %v513_v3, 0.0 }
 0x243   : > { %v619_v57 = vpack.c.bf16 %v473_v55, %v473_v55  ;;  %v617_v59 = vpack.c.bf16 %v456_v56, %v456_v56  ;;  %v621_v6 = vpack.c.bf16 %v494_v58, %v494_v58  ;;  %v623_v16 = vpack.c.bf16 %v515_v13, %v515_v13 }
 0x245   : > { %v664_v61 = vpop.eup %663  ;;  %481 = vrot.lane.b32.xlu1 %v619_v57, %s674_s21  ;;  %467 = vst.msk [vmem:[%s790_s20] sm:$0xf] %vm466_vm1, %v617_v59 }
 0x246   : > { %v472_v1 = vmul.f32 %v664_v61, %v470_v62  ;;  %v493_v2 = vmul.f32 %v664_v61, %v491_v63  ;;  %v455_v5 = vmul.f32 %v664_v61, %v453_v0  ;;  %v514_v7 = vmul.f32 %v664_v61, %v512_v4 }
 0x248   : > { %v474_v8 = vmax.f32 %v472_v1, 0.0  ;;  %v495_v9 = vmax.f32 %v493_v2, 0.0  ;;  %v457_v10 = vmax.f32 %v455_v5, 0.0  ;;  %v516_v15 = vmax.f32 %v514_v7, 0.0 }
 0x249   : > { %502 = vrot.lane.b32.xlu1 %v621_v6, %s675_s13 }
 0x24a   : > { %v620_v11 = vpack.c.bf16 %v474_v8, %v474_v8  ;;  %v622_v12 = vpack.c.bf16 %v495_v9, %v495_v9  ;;  %v618_v14 = vpack.c.bf16 %v457_v10, %v457_v10  ;;  %v624_v17 = vpack.c.bf16 %v516_v15, %v516_v15 }
 0x24c   : > { %483 = vrot.lane.b32.xlu0 %v620_v11, %s674_s21  ;;  %468 = vst.msk [vmem:[%s790_s20 + $0x4] sm:$0xf] %vm466_vm1, %v618_v14 }
 0x24d   : > { %504 = vrot.lane.b32.xlu1 %v622_v12, %s675_s13 }
 0x250   : > { %523 = vrot.lane.b32.xlu0 %v623_v16, %s676_s18 }
 0x251   : > { %525 = vrot.lane.b32.xlu1 %v624_v17, %s676_s18 }
 0x2b7   : > { %v482_v18 = vpop.permute.xlu1 %481 }
 0x2b8   : > { %488 = vst.msk [vmem:[%s790_s20] sm:$0xf] %vm487_vm2, %v482_v18 }
 0x2bb   : > { %v503_v19 = vpop.permute.xlu1 %502 }
 0x2bc   : > { %509 = vst.msk [vmem:[%s790_s20] sm:$0xf] %vm508_vm3, %v503_v19 }
 0x2be   : > { %v484_v20 = vpop.permute.xlu0 %483 }
 0x2bf   : > { %489 = vst.msk [vmem:[%s790_s20 + $0x4] sm:$0xf] %vm487_vm2, %v484_v20  ;;  %v505_v21 = vpop.permute.xlu1 %504 }
 0x2c0   : > { %510 = vst.msk [vmem:[%s790_s20 + $0x4] sm:$0xf] %vm508_vm3, %v505_v21 }
 0x2c2   : > { %v524_v22 = vpop.permute.xlu0 %523 }
 0x2c3   : > { %530 = vst.msk [vmem:[%s790_s20] sm:$0xf] %vm529_vm4, %v524_v22  ;;  %v526_v23 = vpop.permute.xlu1 %525 }
 0x2c4   : > { %531 = vst.msk [vmem:[%s790_s20 + $0x4] sm:$0xf] %vm529_vm4, %v526_v23 }
 0x2c5 PF: > { %s13_s12 = sadd.s32 1, %s671_s12  }
 0x2c6   : > { %p10_p4 = scmp.ge.s32.totalorder %s13_s12, 4  }
 0x2c8   :  { %12 = sbr.rel (!%p10_p4) target bundleno = 1 (0x1), region = 62 }

// kernel: model_forward.14
= control target key start
LH: loop header
LB: loop body
LE: loop exit
PB: predicated region body
PF: predicated region fallthrough
CT: control target
= control target key end

     0   :  { %s884_s12 = smov 0   ;;  %s1055_s0 = inlined_call_operand.vmem [shape: bf16[2,24,64], index: 0, kind: input, shape index: {}]   ;;  %s1056_s1 = inlined_call_operand.vmem [shape: bf16[96,24], index: 1, kind: input, shape index: {}]   ;;  %s1057_s2 = inlined_call_operand.vmem [shape: f32[96,1], index: 2, kind: input, shape index: {}]   ;;  %s1058_s3 = inlined_call_operand.vmem [shape: bf16[2,24,256], index: 3, kind: output, shape index: {}]  }
   0x1 LB: > { %s749_s13 = sadd.s32 4294967295, %s860_s12   ;;  %p753_p0 = scmp.ge.s32.totalorder %s860_s12, 1  ;;  %s860_s12 = sphi %s884_s12, %s13_s12  }
   0x2   : > { %p137_p1 = scmp.lt.s32.totalorder %s860_s12, 3 }
   0x4   : > { %p138_p2 = pnand %p753_p0, %p137_p1 }
   0x5   : > { %p161_p3 = scmp.lt.s32.totalorder (!%p138_p2), %s749_s13, 1  ;;  %v842_v0 = vld [vmem:[%s1056_s1] sm:$0xff] (!%p138_p2)   ;;  %vm298_vm0 = vcmask (!%p138_p2), 195584   ;;  %v843_v1 = vld [vmem:[%s1056_s1 + $0x10] sm:$0xff] (!%p138_p2)   ;;  %v862_v2 = vmov (!%p138_p2), 0   ;;  %vm317_vm1 = vcmask (!%p138_p2), 1043456  }
   0x6   : > { %141 = sbr.rel (%p138_p2) target bundleno = 725 (0x2d5), region = 32  ;;  %808 = vmatprep.mubr.msk.bf16.mxu0 (!%p138_p2), %vm298_vm0, %v842_v0  ;;  %812 = vmatprep.mubr.msk.bf16.mxu1 (!%p138_p2), %vm298_vm0, %v843_v1  ;;  %v187_v3 = vld [vmem:[%s1057_s2] sm:$0xff] (!%p138_p2)  ;;  %v188_v6 = vld [vmem:[%s1057_s2 + $0x8] sm:$0xff] (!%p138_p2)  ;;  %v189_v7 = vld [vmem:[%s1057_s2 + $0x10] sm:$0xff] (!%p138_p2)  ;;  %vm402_vm2 = vcmask (!%p138_p2), 523264   ;;  %vm602_vm3 = vcmask (!%p138_p2), 519168  }
   0x7   : > { %838 = vset.pattern.permute.xlu0 (!%p138_p2), %v862_v2  ;;  %839 = vset.pattern.permute.xlu1 (!%p138_p2), %v862_v2  ;;  %v844_v9 = vld [vmem:[%s1056_s1 + $0x8] sm:$0xff] (!%p138_p2)   ;;  %v845_v10 = vld [vmem:[%s1056_s1 + $0x18] sm:$0xff] (!%p138_p2)   ;;  %v191_v11 = vld [vmem:[%s1057_s2 + $0x20] sm:$0xff] (!%p138_p2)  ;;  %vm634_vm4 = vcmask (!%p138_p2), 1043968  }
   0x8   : > { %201 = vperm.xlu0 (!%p138_p2), %838, %v187_v3   ;;  %211 = vperm.xlu1 (!%p138_p2), %839, %v189_v7   ;;  %v190_v12 = vld [vmem:[%s1057_s2 + $0x18] sm:$0xff] (!%p138_p2)  ;;  %v846_v13 = vld [vmem:[%s1056_s1 + $0x20] sm:$0xff] (!%p138_p2)   ;;  %v193_v14 = vld [vmem:[%s1057_s2 + $0x30] sm:$0xff] (!%p138_p2) }
   0x9   : > { %v192_v15 = vld [vmem:[%s1057_s2 + $0x28] sm:$0xff] (!%p138_p2)  ;;  %v195_v17 = vld [vmem:[%s1057_s2 + $0x40] sm:$0xff] (!%p138_p2)  ;;  %v194_v18 = vld [vmem:[%s1057_s2 + $0x38] sm:$0xff] (!%p138_p2) }
   0xa   : > { %v847_v16 = vld [vmem:[%s1056_s1 + $0x28] sm:$0xff] (!%p138_p2)   ;;  %v197_v19 = vld [vmem:[%s1057_s2 + $0x50] sm:$0xff] (!%p138_p2)  ;;  %v198_v21 = vld [vmem:[%s1057_s2 + $0x58] sm:$0xff] (!%p138_p2) }
   0xb   : > { %v196_v20 = vld [vmem:[%s1057_s2 + $0x48] sm:$0xff] (!%p138_p2) }
   0xc   : > { %206 = vperm.xlu0 (!%p138_p2), %838, %v188_v6   ;;  %216 = vperm.xlu1 (!%p138_p2), %839, %v190_v12  }
   0xd   : > { %s1060_s13 = smov (!%p161_p3, %s749_s13), 1 }
   0xe   : > { %s826_s18 = smul.u32 12, %s1060_s13 }
   0xf   : > { %s827_s29 = smul.u32 24, %s1060_s13  ;;  %s863_s13 = smov 64  }
  0x10   : > { %s165_s21 = scalar_lea.vmem %s1055_s0, %s826_s18  ;;  %221 = vperm.xlu0 %838, %v191_v11   ;;  %226 = vperm.xlu1 %839, %v192_v15  }
  0x11   : > { %v840_v4 = vld [vmem:[%s165_s21] sm:$0xff]   ;;  %v841_v5 = vld [vmem:[%s165_s21 + $0x8] ss:$0 sps:$4 sm:$0xff]   ;;  %s1026_s5 = scalar_lea.vmem %s1058_s3, %s827_s29 }
  0x12   : > { %804 = vmatprep.subr.bf16.mxu0 %v840_v4  ;;  %820 = vmatprep.subr.bf16.mxu1 %v840_v4  ;;  %v319_v8 = vsel %vm317_vm1, %v841_v5, 0 }
  0x13   : > { %805 = vmatpush3.bf16.msra.mxu0 %v840_v4  ;;  %822 = vmatpush3.bf16.msra.mxu1 %v840_v4 }
  0x14   : > { %824 = vmatprep.subr.msk.bf16.mxu0 %vm317_vm1, %v841_v5  ;;  %825 = vmatprep.subr.msk.bf16.mxu1 %vm317_vm1, %v841_v5 }
  0x15   : > { %231 = vperm.xlu0 %838, %v193_v14   ;;  %236 = vperm.xlu1 %839, %v194_v18  }
  0x17   : > { %807 = vmatpush3.bf16.msra.mxu0 %v319_v8  ;;  %823 = vmatpush3.bf16.msra.mxu1 %v319_v8 }
  0x19   : > { %241 = vperm.xlu0 %838, %v195_v17   ;;  %246 = vperm.xlu1 %839, %v196_v20  }
  0x1a   : > { %809 = vmatmul.mubr.msk.bf16.vlgmr.msra.gmra.mrb[0].mxu0 %vm298_vm0, %v844_v9  ;;  %813 = vmatmul.mubr.msk.bf16.vlgmr.msra.gmra.mrb[0].mxu1 %vm298_vm0, %v845_v10 }
  0x1b   : > { %816 = vmatprep.mubr.msk.bf16.mxu1 %vm298_vm0, %v846_v13 }
  0x1d   : > { %251 = vperm.xlu0 %838, %v197_v19   ;;  %256 = vperm.xlu1 %839, %v198_v21  }
  0x22   : > { %817 = vmatmul.mubr.msk.bf16.gmra.mrb[4].mxu1 %vm298_vm0, %v847_v16 }
  0x87   : > { %v202_v22 = vpop.permute.xlu0 %201  ;;  %v212_v23 = vpop.permute.xlu1 %211 }
  0x8b   : > { %v207_v24 = vpop.permute.xlu0 %206  ;;  %v217_v25 = vpop.permute.xlu1 %216 }
  0x8f   : > { %v222_v26 = vpop.permute.xlu0 %221  ;;  %v227_v27 = vpop.permute.xlu1 %226 }
  0x94   : > { %v232_v28 = vpop.permute.xlu0 %231  ;;  %v237_v29 = vpop.permute.xlu1 %236 }
  0x98   : > { %v242_v30 = vpop.permute.xlu0 %241  ;;  %v247_v45 = vpop.permute.xlu1 %246 }
  0x9c   : > { %v252_v48 = vpop.permute.xlu0 %251  ;;  %v257_v52 = vpop.permute.xlu1 %256 }
  0xed   : > { %v810_v31 = vpop.f32.mrb[0].mxu0  ;;  %v814_v32 = vpop.f32.mrb[0].mxu1 }
  0xee   : > { %v364_v33 = vadd.f32 %v810_v31, %v212_v23  ;;  %v380_v34 = vadd.f32 %v814_v32, %v232_v28  ;;  %v355_v35 = vpop.f32.mrb[1].mxu0  ;;  %v371_v36 = vpop.f32.mrb[1].mxu1 }
  0xef   : > { %v356_v37 = vadd.f32 %v355_v35, %v202_v22  ;;  %v372_v38 = vadd.f32 %v371_v36, %v222_v26  ;;  %v811_v39 = vpop.f32.mrb[2].mxu0  ;;  %v815_v40 = vpop.f32.mrb[2].mxu1 }
  0xf0   : > { %405 = vst.msk [vmem:[#allocation2 + $0x10] sm:$0xff] %vm402_vm2, %v364_v33  ;;  %409 = vst.msk [vmem:[#allocation2 + $0x30] sm:$0xff] %vm402_vm2, %v380_v34  ;;  %v367_v41 = vadd.f32 %v811_v39, %v217_v25  ;;  %v383_v42 = vadd.f32 %v815_v40, %v237_v29  ;;  %v358_v43 = vpop.f32.mrb[3].mxu0  ;;  %v374_v44 = vpop.f32.mrb[3].mxu1 }
  0xf1   : > { %403 = vst.msk [vmem:[#allocation2] sm:$0xff] %vm402_vm2, %v356_v37  ;;  %407 = vst.msk [vmem:[#allocation2 + $0x20] sm:$0xff] %vm402_vm2, %v372_v38  ;;  %v359_v46 = vadd.f32 %v358_v43, %v207_v24  ;;  %v375_v47 = vadd.f32 %v374_v44, %v227_v27 }
  0xf2   : > { %406 = vst.msk [vmem:[#allocation2 + $0x18] sm:$0xff] %vm402_vm2, %v367_v41  ;;  %410 = vst.msk [vmem:[#allocation2 + $0x38] sm:$0xff] %vm402_vm2, %v383_v42 }
  0xf3   : > { %404 = vst.msk [vmem:[#allocation2 + $0x8] sm:$0xff] %vm402_vm2, %v359_v46  ;;  %408 = vst.msk [vmem:[#allocation2 + $0x28] sm:$0xff] %vm402_vm2, %v375_v47 }
  0xf5   : > { %v818_v49 = vpop.f32.mrb[4].mxu1 }
  0xf6   : > { %v396_v50 = vadd.f32 %v818_v49, %v252_v48  ;;  %v387_v51 = vpop.f32.mrb[5].mxu1 }
  0xf7   : > { %v388_v53 = vadd.f32 %v387_v51, %v242_v30  ;;  %v819_v54 = vpop.f32.mrb[6].mxu1  ;;  %v966_v55 = vld [vmem:[#allocation2 + $0x30] sm:$0xff] }
  0xf8   : > { %v968_v56 = vld [vmem:[#allocation2 + $0x10] sm:$0xff]  ;;  %413 = vst.msk [vmem:[#allocation2 + $0x50] sm:$0xff] %vm402_vm2, %v396_v50  ;;  %v399_v57 = vadd.f32 %v819_v54, %v257_v52  ;;  %v390_v58 = vpop.f32.mrb[7].mxu1  ;;  %v448_v59 = vsel %vm402_vm2, %v966_v55, 0.0  ;;  %v431_v62 = vld [vmem:[#allocation2 + $0x20] sm:$0xff] }
  0xf9   : > { %v424_v60 = vsel %vm402_vm2, %v968_v56, 0.0  ;;  %411 = vst.msk [vmem:[#allocation2 + $0x40] sm:$0xff] %vm402_vm2, %v388_v53  ;;  %v391_v61 = vadd.f32 %v390_v58, %v247_v45  ;;  %449 = vadd.xlane.f32.xlu1 %v448_v59  ;;  %v976_v63 = vld [vmem:[#allocation2] sm:$0xff]  ;;  %v436_v0 = vsel %vm402_vm2, %v431_v62, 0.0  ;;  %v430_v3 = vld [vmem:[#allocation2 + $0x18] sm:$0xff] }
  0xfa   : > { %425 = vadd.xlane.f32.xlu0 %v424_v60  ;;  %414 = vst.msk [vmem:[#allocation2 + $0x58] sm:$0xff] %vm402_vm2, %v399_v57  ;;  %v418_v1 = vsel %vm402_vm2, %v976_v63, 0.0  ;;  %v416_v2 = vld [vmem:[#allocation2 + $0x8] sm:$0xff]  ;;  %v433_v5 = vsel %vm402_vm2, %v430_v3, 0.0  ;;  %v446_v7 = vld [vmem:[#allocation2 + $0x38] sm:$0xff] }
  0xfb   : > { %412 = vst.msk [vmem:[#allocation2 + $0x48] sm:$0xff] %vm402_vm2, %v391_v61  ;;  %v421_v4 = vsel %vm402_vm2, %v416_v2, 0.0  ;;  %v451_v9 = vsel %vm402_vm2, %v446_v7, 0.0  ;;  %v432_v11 = vld [vmem:[#allocation2 + $0x28] sm:$0xff] }
  0xfc   : > { %v439_v13 = vsel %vm402_vm2, %v432_v11, 0.0 }
  0xfd   : > { %437 = vadd.xlane.f32.xlu1 %v436_v0 }
  0xfe   : > { %419 = vadd.xlane.f32.xlu0 %v418_v1 }
  0xff   : > { %v461_v10 = vld [vmem:[#allocation2 + $0x50] sm:$0xff] }
 0x100   : > { %v985_v6 = vld [vmem:[#allocation2 + $0x40] sm:$0xff]  ;;  %v466_v12 = vsel %vm402_vm2, %v461_v10, 0.0 }
 0x101   : > { %422 = vadd.xlane.f32.xlu1 %v421_v4  ;;  %v454_v8 = vsel %vm402_vm2, %v985_v6, 0.0  ;;  %v462_v16 = vld [vmem:[#allocation2 + $0x58] sm:$0xff] }
 0x102   : > { %434 = vadd.xlane.f32.xlu0 %v433_v5  ;;  %v460_v14 = vld [vmem:[#allocation2 + $0x48] sm:$0xff]  ;;  %v469_v17 = vsel %vm402_vm2, %v462_v16, 0.0 }
 0x103   : > { %v463_v15 = vsel %vm402_vm2, %v460_v14, 0.0 }
 0x105   : > { %455 = vadd.xlane.f32.xlu1 %v454_v8 }
 0x106   : > { %452 = vadd.xlane.f32.xlu0 %v451_v9 }
 0x109   : > { %467 = vadd.xlane.f32.xlu1 %v466_v12 }
 0x10a   : > { %440 = vadd.xlane.f32.xlu0 %v439_v13 }
 0x10e   : > { %464 = vadd.xlane.f32.xlu0 %v463_v15 }
 0x112   : > { %470 = vadd.xlane.f32.xlu0 %v469_v17 }
 0x186   : > { %v450_v18 = vpop.xlane.xlu1 %449 }
 0x187   : > { %v426_v19 = vpop.xlane.xlu0 %425 }
 0x18a   : > { %v438_v20 = vpop.xlane.xlu1 %437 }
 0x18b   : > { %v420_v21 = vpop.xlane.xlu0 %419 }
 0x18e   : > { %v423_v22 = vpop.xlane.xlu1 %422 }
 0x18f   : > { %v435_v23 = vpop.xlane.xlu0 %434  ;;  %v443_v26 = vadd.f32 %v438_v20, %v423_v22 }
 0x190   : > { %v442_v27 = vadd.f32 %v435_v23, %v420_v21 }
 0x192   : > { %v456_v24 = vpop.xlane.xlu1 %455  ;;  %v457_v34 = vadd.f32 %v450_v18, %v442_v27 }
 0x193   : > { %v453_v25 = vpop.xlane.xlu0 %452 }
 0x194   : > { %v458_v28 = vadd.f32 %v453_v25, %v443_v26 }
 0x196   : > { %v468_v29 = vpop.xlane.xlu1 %467 }
 0x197   : > { %v441_v30 = vpop.xlane.xlu0 %440  ;;  %v473_v31 = vadd.f32 %v468_v29, %v458_v28 }
 0x198   : > { %v444_v33 = vadd.f32 %v441_v30, %v426_v19 }
 0x199   : > { %v476_v32 = vmul.f32 0.00390625, %v473_v31 }
 0x19a   : > { %v459_v42 = vadd.f32 %v456_v24, %v444_v33 }
 0x19b   : > { %v465_v35 = vpop.xlane.xlu0 %464  ;;  %v503_v37 = vsub.f32 %v431_v62, %v476_v32  ;;  %v479_v38 = vsub.f32 %v416_v2, %v476_v32  ;;  %v527_v39 = vsub.f32 %v446_v7, %v476_v32  ;;  %v551_v40 = vsub.f32 %v461_v10, %v476_v32 }
 0x19c   : > { %v472_v36 = vadd.f32 %v465_v35, %v457_v34 }
 0x19d   : > { %v509_v43 = vmul.f32 %v503_v37, %v503_v37  ;;  %506 = vst.msk [vmem:[#allocation2 + $0x20] sm:$0xff] %vm402_vm2, %v503_v37  ;;  %v485_v44 = vmul.f32 %v479_v38, %v479_v38  ;;  %482 = vst.msk [vmem:[#allocation2 + $0x8] sm:$0xff] %vm402_vm2, %v479_v38  ;;  %v533_v46 = vmul.f32 %v527_v39, %v527_v39 }
 0x19e   : > { %v475_v41 = vmul.f32 0.00390625, %v472_v36  ;;  %530 = vst.msk [vmem:[#allocation2 + $0x38] sm:$0xff] %vm402_vm2, %v527_v39  ;;  %554 = vst.msk [vmem:[#allocation2 + $0x50] sm:$0xff] %vm402_vm2, %v551_v40 }
 0x19f   : > { %v471_v45 = vpop.xlane.xlu0 %470  ;;  %v514_v48 = vsel %vm402_vm2, %v509_v43, 0.0  ;;  %v490_v49 = vsel %vm402_vm2, %v485_v44, 0.0  ;;  %v538_v57 = vsel %vm402_vm2, %v533_v46, 0.0 }
 0x1a0   : > { %v474_v47 = vadd.f32 %v471_v45, %v459_v42  ;;  %515 = vadd.xlane.f32.xlu1 %v514_v48  ;;  %491 = vadd.xlane.f32.xlu0 %v490_v49  ;;  %v478_v50 = vsub.f32 %v976_v63, %v475_v41  ;;  %v502_v51 = vsub.f32 %v430_v3, %v475_v41 }
 0x1a1   : > { %v526_v52 = vsub.f32 %v966_v55, %v475_v41  ;;  %v550_v54 = vsub.f32 %v460_v14, %v475_v41 }
 0x1a2   : > { %v477_v53 = vmul.f32 0.00390625, %v474_v47  ;;  %v484_v58 = vmul.f32 %v478_v50, %v478_v50  ;;  %481 = vst.msk [vmem:[#allocation2] sm:$0xff] %vm402_vm2, %v478_v50  ;;  %505 = vst.msk [vmem:[#allocation2 + $0x18] sm:$0xff] %vm402_vm2, %v502_v51  ;;  %v508_v59 = vmul.f32 %v502_v51, %v502_v51 }
 0x1a3   : > { %529 = vst.msk [vmem:[#allocation2 + $0x30] sm:$0xff] %vm402_vm2, %v526_v52  ;;  %553 = vst.msk [vmem:[#allocation2 + $0x48] sm:$0xff] %vm402_vm2, %v550_v54  ;;  %v532_v3 = vmul.f32 %v526_v52, %v526_v52  ;;  %v556_v5 = vmul.f32 %v550_v54, %v550_v54 }
 0x1a4   : > { %v480_v60 = vsub.f32 %v968_v56, %v477_v53  ;;  %v504_v61 = vsub.f32 %v432_v11, %v477_v53  ;;  %v528_v62 = vsub.f32 %v985_v6, %v477_v53  ;;  %539 = vadd.xlane.f32.xlu0 %v538_v57  ;;  %v487_v55 = vsel %vm402_vm2, %v484_v58, 0.0 }
 0x1a5   : > { %v552_v63 = vsub.f32 %v462_v16, %v477_v53  ;;  %488 = vadd.xlane.f32.xlu1 %v487_v55  ;;  %v511_v56 = vsel %vm402_vm2, %v508_v59, 0.0  ;;  %v535_v6 = vsel %vm402_vm2, %v532_v3, 0.0  ;;  %v559_v8 = vsel %vm402_vm2, %v556_v5, 0.0  ;;  %v607_v59 = vld [vmem:[#allocation2 + $0x20] sm:$0xff]  ;;  %v639_v5 = vld [vmem:[#allocation2 + $0x38] sm:$0xff] }
 0x1a6   : > { %v486_v0 = vmul.f32 %v480_v60, %v480_v60  ;;  %483 = vst.msk [vmem:[#allocation2 + $0x10] sm:$0xff] %vm402_vm2, %v480_v60  ;;  %507 = vst.msk [vmem:[#allocation2 + $0x28] sm:$0xff] %vm402_vm2, %v504_v61  ;;  %v510_v2 = vmul.f32 %v504_v61, %v504_v61  ;;  %v534_v7 = vmul.f32 %v528_v62, %v528_v62  ;;  %v664_v61 = vld [vmem:[#allocation2 + $0x50] sm:$0xff] }
 0x1a7   : > { %531 = vst.msk [vmem:[#allocation2 + $0x40] sm:$0xff] %vm402_vm2, %v528_v62  ;;  %555 = vst.msk [vmem:[#allocation2 + $0x58] sm:$0xff] %vm402_vm2, %v552_v63  ;;  %v558_v9 = vmul.f32 %v552_v63, %v552_v63  ;;  %v557_v11 = vmul.f32 %v551_v40, %v551_v40 }
 0x1a8   : > { %v493_v1 = vsel %vm402_vm2, %v486_v0, 0.0  ;;  %512 = vadd.xlane.f32.xlu0 %v511_v56  ;;  %v517_v4 = vsel %vm402_vm2, %v510_v2, 0.0  ;;  %v541_v10 = vsel %vm402_vm2, %v534_v7, 0.0 }
 0x1a9   : > { %494 = vadd.xlane.f32.xlu1 %v493_v1  ;;  %v565_v12 = vsel %vm402_vm2, %v558_v9, 0.0  ;;  %v562_v13 = vsel %vm402_vm2, %v557_v11, 0.0  ;;  %v606_v42 = vld [vmem:[#allocation2 + $0x18] sm:$0xff]  ;;  %v580_v43 = vld [vmem:[#allocation2] sm:$0xff]  ;;  %v581_v1 = vld [vmem:[#allocation2 + $0x8] sm:$0xff] }
 0x1aa   : > { %v638_v44 = vld [vmem:[#allocation2 + $0x30] sm:$0xff]  ;;  %v663_v49 = vld [vmem:[#allocation2 + $0x48] sm:$0xff] }
 0x1ac   : > { %518 = vadd.xlane.f32.xlu0 %v517_v4 }
 0x1ad   : > { %536 = vadd.xlane.f32.xlu1 %v535_v6  ;;  %v608_v53 = vld [vmem:[#allocation2 + $0x28] sm:$0xff]  ;;  %v582_v62 = vld [vmem:[#allocation2 + $0x10] sm:$0xff] }
 0x1ae   : > { %v640_v11 = vld [vmem:[#allocation2 + $0x40] sm:$0xff] }
 0x1b0   : > { %560 = vadd.xlane.f32.xlu0 %v559_v8  ;;  %v665_v8 = vld [vmem:[#allocation2 + $0x58] sm:$0xff] }
 0x1b1   : > { %542 = vadd.xlane.f32.xlu1 %v541_v10 }
 0x1b4   : > { %566 = vadd.xlane.f32.xlu0 %v565_v12 }
 0x1b5   : > { %563 = vadd.xlane.f32.xlu1 %v562_v13 }
 0x22d   : > { %v516_v14 = vpop.xlane.xlu1 %515  ;;  %v492_v15 = vpop.xlane.xlu0 %491 }
 0x22e   : > { %v521_v28 = vadd.f32 %v516_v14, %v492_v15 }
 0x231   : > { %v540_v16 = vpop.xlane.xlu0 %539 }
 0x232   : > { %v489_v17 = vpop.xlane.xlu1 %488  ;;  %v545_v31 = vadd.f32 %v540_v16, %v521_v28 }
 0x235   : > { %v513_v18 = vpop.xlane.xlu0 %512 }
 0x236   : > { %v495_v19 = vpop.xlane.xlu1 %494  ;;  %v520_v21 = vadd.f32 %v513_v18, %v489_v17 }
 0x239   : > { %v519_v20 = vpop.xlane.xlu0 %518 }
 0x23a   : > { %v537_v22 = vpop.xlane.xlu1 %536  ;;  %v522_v25 = vadd.f32 %v519_v20, %v495_v19 }
 0x23b   : > { %v544_v23 = vadd.f32 %v537_v22, %v520_v21 }
 0x23d   : > { %v561_v24 = vpop.xlane.xlu0 %560 }
 0x23e   : > { %v543_v26 = vpop.xlane.xlu1 %542  ;;  %v568_v27 = vadd.f32 %v561_v24, %v544_v23 }
 0x23f   : > { %v546_v29 = vadd.f32 %v543_v26, %v522_v25 }
 0x240   : > { %v571_v30 = vmul.f32 0.00390625, %v568_v27 }
 0x241   : > { %v567_v32 = vpop.xlane.xlu0 %566 }
 0x242   : > { %v574_v33 = vadd.f32 1e-05, %v571_v30  ;;  %v564_v34 = vpop.xlane.xlu1 %563  ;;  %v570_v35 = vadd.f32 %v567_v32, %v546_v29 }
 0x243   : > { %v569_v36 = vadd.f32 %v564_v34, %v545_v31 }
 0x244   : > { %848 = vrsqrt.f32 %v574_v33  ;;  %v573_v37 = vmul.f32 0.00390625, %v570_v35 }
 0x245   : > { %v572_v38 = vmul.f32 0.00390625, %v569_v36 }
 0x246   : > { %v576_v39 = vadd.f32 1e-05, %v573_v37 }
 0x247   : > { %v575_v40 = vadd.f32 1e-05, %v572_v38 }
 0x248   : > { %850 = vrsqrt.f32 %v576_v39 }
 0x249   : > { %852 = vrsqrt.f32 %v575_v40 }
 0x24e   : > { %v849_v41 = vpop.eup %848 }
 0x24f   : > { %v609_v45 = vmul.f32 %v849_v41, %v606_v42  ;;  %v583_v46 = vmul.f32 %v849_v41, %v580_v43  ;;  %v641_v47 = vmul.f32 %v849_v41, %v638_v44  ;;  %v666_v54 = vmul.f32 %v849_v41, %v663_v49 }
 0x251   : > { %v612_v48 = vmax.f32 %v609_v45, 0.0  ;;  %v586_v50 = vmax.f32 %v583_v46, 0.0  ;;  %v644_v51 = vmax.f32 %v641_v47, 0.0  ;;  %v669_v7 = vmax.f32 %v666_v54, 0.0 }
 0x252   : > { %v851_v52 = vpop.eup %850 }
 0x253   : > { %v853_v57 = vpop.eup %852  ;;  %v787_v58 = vpack.c.bf16 %v612_v48, %v612_v48  ;;  %v611_v60 = vmul.f32 %v851_v52, %v608_v53  ;;  %v784_v0 = vpack.c.bf16 %v586_v50, %v586_v50  ;;  %v585_v56 = vmul.f32 %v851_v52, %v582_v62 }
 0x254   : > { %v610_v55 = vmul.f32 %v853_v57, %v607_v59  ;;  %v667_v63 = vmul.f32 %v853_v57, %v664_v61  ;;  %v584_v3 = vmul.f32 %v853_v57, %v581_v1  ;;  %v790_v4 = vpack.c.bf16 %v644_v51, %v644_v51 }
 0x255   : > { %625 = vrot.lane.b32.xlu1 %v787_v58, %s863_s13  ;;  %v614_v2 = vmax.f32 %v611_v60, 0.0  ;;  %603 = vst.msk [vmem:[%s1026_s5] sm:$0xf] %vm602_vm3, %v784_v0  ;;  %v588_v9 = vmax.f32 %v585_v56, 0.0  ;;  %v642_v10 = vmul.f32 %v853_v57, %v639_v5  ;;  %v668_v13 = vmul.f32 %v851_v52, %v665_v8 }
 0x256   : > { %v613_v6 = vmax.f32 %v610_v55, 0.0  ;;  %v587_v14 = vmax.f32 %v584_v3, 0.0  ;;  %660 = vst.msk [vmem:[%s1026_s5 + $0x4] sm:$0xf] %vm602_vm3, %v790_v4  ;;  %v643_v15 = vmul.f32 %v851_v52, %v640_v11  ;;  %v670_v17 = vmax.f32 %v667_v63, 0.0 }
 0x257   : > { %v789_v12 = vpack.c.bf16 %v614_v2, %v614_v2  ;;  %v786_v18 = vpack.c.bf16 %v588_v9, %v588_v9  ;;  %v645_v19 = vmax.f32 %v642_v10, 0.0  ;;  %v793_v23 = vpack.c.bf16 %v669_v7, %v669_v7 }
 0x258   : > { %v788_v16 = vpack.c.bf16 %v613_v6, %v613_v6  ;;  %v785_v20 = vpack.c.bf16 %v587_v14, %v587_v14  ;;  %v646_v21 = vmax.f32 %v643_v15, 0.0  ;;  %v671_v24 = vmax.f32 %v668_v13, 0.0 }
 0x259   : > { %629 = vrot.lane.b32.xlu1 %v789_v12, %s863_s13  ;;  %605 = vst.msk [vmem:[%s1026_s5 + $0x10] sm:$0xf] %vm602_vm3, %v786_v18  ;;  %v791_v22 = vpack.c.bf16 %v645_v19, %v645_v19  ;;  %v794_v26 = vpack.c.bf16 %v670_v17, %v670_v17 }
 0x25a   : > { %627 = vrot.lane.b32.xlu0 %v788_v16, %s863_s13  ;;  %604 = vst.msk [vmem:[%s1026_s5 + $0x8] sm:$0xf] %vm602_vm3, %v785_v20  ;;  %v792_v25 = vpack.c.bf16 %v646_v21, %v646_v21  ;;  %v795_v27 = vpack.c.bf16 %v671_v24, %v671_v24 }
 0x25b   : > { %661 = vst.msk [vmem:[%s1026_s5 + $0xc] sm:$0xf] %vm602_vm3, %v791_v22 }
 0x25c   : > { %662 = vst.msk [vmem:[%s1026_s5 + $0x14] sm:$0xf] %vm602_vm3, %v792_v25 }
 0x25d   : > { %682 = vrot.lane.b32.xlu1 %v793_v23, %s863_s13 }
 0x25e   : > { %684 = vrot.lane.b32.xlu0 %v794_v26, %s863_s13 }
 0x261   : > { %686 = vrot.lane.b32.xlu1 %v795_v27, %s863_s13 }
 0x2c7   : > { %v626_v28 = vpop.permute.xlu1 %625 }
 0x2c8   : > { %635 = vst.msk [vmem:[%s1026_s5] sm:$0xf] %vm634_vm4, %v626_v28 }
 0x2cb   : > { %v630_v29 = vpop.permute.xlu1 %629 }
 0x2cc   : > { %637 = vst.msk [vmem:[%s1026_s5 + $0x10] sm:$0xf] %vm634_vm4, %v630_v29  ;;  %v628_v30 = vpop.permute.xlu0 %627 }
 0x2cd   : > { %636 = vst.msk [vmem:[%s1026_s5 + $0x8] sm:$0xf] %vm634_vm4, %v628_v30 }
 0x2cf   : > { %v683_v31 = vpop.permute.xlu1 %682 }
 0x2d0   : > { %691 = vst.msk [vmem:[%s1026_s5 + $0x4] sm:$0xf] %vm634_vm4, %v683_v31  ;;  %v685_v32 = vpop.permute.xlu0 %684 }
 0x2d1   : > { %692 = vst.msk [vmem:[%s1026_s5 + $0xc] sm:$0xf] %vm634_vm4, %v685_v32 }
 0x2d3   : > { %v687_v33 = vpop.permute.xlu1 %686 }
 0x2d4   : > { %693 = vst.msk [vmem:[%s1026_s5 + $0x14] sm:$0xf] %vm634_vm4, %v687_v33 }
 0x2d5 PF: > { %s13_s12 = sadd.s32 1, %s860_s12  }
 0x2d6   : > { %p10_p4 = scmp.ge.s32.totalorder %s13_s12, 4  }
 0x2d8   :  { %12 = sbr.rel (!%p10_p4) target bundleno = 1 (0x1), region = 62 }

// kernel: model_forward.15
= control target key start
LH: loop header
LB: loop body
LE: loop exit
PB: predicated region body
PF: predicated region fallthrough
CT: control target
= control target key end

     0   :  { %s1208_s12 = smov 0   ;;  %s1627_s0 = inlined_call_operand.vmem [shape: bf16[2,32,256], index: 0, kind: input, shape index: {}]   ;;  %s1628_s1 = inlined_call_operand.vmem [shape: bf16[128,32], index: 1, kind: input, shape index: {}]   ;;  %s1629_s2 = inlined_call_operand.vmem [shape: f32[128,1], index: 2, kind: input, shape index: {}]   ;;  %s1630_s3 = inlined_call_operand.vmem [shape: bf16[2,32,1024], index: 3, kind: output, shape index: {}]  }
   0x1 LB: > { %s1077_s13 = sadd.s32 4294967295, %s1185_s12   ;;  %p1081_p0 = scmp.ge.s32.totalorder %s1185_s12, 1  ;;  %s1185_s12 = sphi %s1208_s12, %s13_s12  }
   0x2   : > { %p137_p1 = scmp.lt.s32.totalorder %s1185_s12, 3 }
   0x4   : > { %p138_p2 = pnand %p1081_p0, %p137_p1 }
   0x5   : > { %p161_p3 = scmp.lt.s32.totalorder (!%p138_p2), %s1077_s13, 1  ;;  %v1187_v0 = vmov (!%p138_p2), 0   ;;  %v194_v5 = vld [vmem:[%s1629_s2 + $0x10] sm:$0xff] (!%p138_p2)  ;;  %v192_v6 = vld [vmem:[%s1629_s2] sm:$0xff] (!%p138_p2)  ;;  %vm348_vm0 = vcmask (!%p138_p2), 261120   ;;  %v195_v9 = vld [vmem:[%s1629_s2 + $0x18] sm:$0xff] (!%p138_p2) }
   0x6   : > { %141 = sbr.rel (%p138_p2) target bundleno = 621 (0x26d), region = 32  ;;  %405 = vmatprep.mubr.bf16.mxu0 (!%p138_p2), %v1187_v0  ;;  %445 = vmatprep.mubr.bf16.mxu1 (!%p138_p2), %v1187_v0  ;;  %v1163_v7 = vld [vmem:[%s1628_s1] sm:$0xff] (!%p138_p2)   ;;  %v193_v10 = vld [vmem:[%s1629_s2 + $0x8] sm:$0xff] (!%p138_p2)  ;;  %v199_v15 = vld [vmem:[%s1629_s2 + $0x38] sm:$0xff] (!%p138_p2) }
   0x7   : > { %1156 = vset.pattern.permute.xlu1 (!%p138_p2), %v1187_v0  ;;  %1155 = vset.pattern.permute.xlu0 (!%p138_p2), %v1187_v0  ;;  %v1164_v8 = vld [vmem:[%s1628_s1 + $0x20] sm:$0xff] (!%p138_p2)   ;;  %v197_v11 = vld [vmem:[%s1629_s2 + $0x28] sm:$0xff] (!%p138_p2)  ;;  %v198_v16 = vld [vmem:[%s1629_s2 + $0x30] sm:$0xff] (!%p138_p2) }
   0x8   : > { %220 = vperm.xlu1 (!%p138_p2), %1156, %v194_v5   ;;  %210 = vperm.xlu0 (!%p138_p2), %1155, %v192_v6   ;;  %v196_v12 = vld [vmem:[%s1629_s2 + $0x20] sm:$0xff] (!%p138_p2)  ;;  %v1165_v13 = vld [vmem:[%s1628_s1 + $0x8] sm:$0xff] (!%p138_p2)   ;;  %v1167_v19 = vld [vmem:[%s1628_s1 + $0x10] sm:$0xff] (!%p138_p2)  }
   0x9   : > { %v1166_v14 = vld [vmem:[%s1628_s1 + $0x28] sm:$0xff] (!%p138_p2)   ;;  %v200_v18 = vld [vmem:[%s1629_s2 + $0x40] sm:$0xff] (!%p138_p2)  ;;  %v1168_v20 = vld [vmem:[%s1628_s1 + $0x30] sm:$0xff] (!%p138_p2)  }
   0xa   : > { %v201_v17 = vld [vmem:[%s1629_s2 + $0x48] sm:$0xff] (!%p138_p2)  ;;  %v203_v21 = vld [vmem:[%s1629_s2 + $0x58] sm:$0xff] (!%p138_p2)  ;;  %v202_v22 = vld [vmem:[%s1629_s2 + $0x50] sm:$0xff] (!%p138_p2) }
   0xb   : > { %v205_v23 = vld [vmem:[%s1629_s2 + $0x68] sm:$0xff] (!%p138_p2)  ;;  %v204_v24 = vld [vmem:[%s1629_s2 + $0x60] sm:$0xff] (!%p138_p2)  ;;  %v1169_v25 = vld [vmem:[%s1628_s1 + $0x18] sm:$0xff] (!%p138_p2)  }
   0xc   : > { %225 = vperm.xlu1 (!%p138_p2), %1156, %v195_v9   ;;  %215 = vperm.xlu0 (!%p138_p2), %1155, %v193_v10   ;;  %v1170_v26 = vld [vmem:[%s1628_s1 + $0x38] sm:$0xff] (!%p138_p2)   ;;  %v206_v28 = vld [vmem:[%s1629_s2 + $0x70] sm:$0xff] (!%p138_p2) }
   0xd   : > { %s1632_s13 = smov (!%p161_p3, %s1077_s13), 1  ;;  %v207_v27 = vld [vmem:[%s1629_s2 + $0x78] sm:$0xff] }
   0xe   : > { %s1124_s14 = sshll.u32 %s1632_s13, 5  ;;  %s1125_s16 = sshll.u32 %s1632_s13, 7 }
   0xf   : > { %s165_s17 = scalar_lea.vmem %s1627_s0, %s1124_s14  ;;  %s1582_s18 = scalar_lea.vmem %s1630_s3, %s1125_s16 }
  0x10   : > { %v1157_v1 = vld [vmem:[%s165_s17 + $0x4] ss:$8 sps:$4 sm:$0xff]   ;;  %v1159_v2 = vld [vmem:[%s165_s17] ss:$8 sps:$4 sm:$0xff]   ;;  %v1160_v3 = vld [vmem:[%s165_s17 + $0x14] ss:$8 sps:$4 sm:$0xff]   ;;  %235 = vperm.xlu1 %1156, %v197_v11   ;;  %230 = vperm.xlu0 %1155, %v196_v12  }
  0x11   : > { %373 = vmatprep.subr.bf16.mxu0 %v1157_v1  ;;  %1142 = vmatprep.subr.bf16.mxu1 %v1157_v1  ;;  %v1162_v4 = vld [vmem:[%s165_s17 + $0x10] ss:$8 sps:$4 sm:$0xff]  }
  0x12   : > { %374 = vmatpush1.bf16.msra.mxu0 %v1159_v2  ;;  %1144 = vmatpush1.bf16.msra.mxu1 %v1159_v2 }
  0x13   : > { %375 = vmatprep.subr.bf16.mxu0 %v1160_v3  ;;  %1143 = vmatprep.subr.bf16.mxu1 %v1160_v3 }
  0x14   : > { %245 = vperm.xlu1 %1156, %v199_v15   ;;  %240 = vperm.xlu0 %1155, %v198_v16  }
  0x16   : > { %376 = vmatpush1.bf16.msra.mxu0 %v1162_v4  ;;  %1145 = vmatpush1.bf16.msra.mxu1 %v1162_v4 }
  0x18   : > { %255 = vperm.xlu1 %1156, %v201_v17   ;;  %250 = vperm.xlu0 %1155, %v200_v18  }
  0x19   : > { %1098 = vmatmul.mubr.msk.bf16.vlgmr.msra.gmra.mrb[0].mxu0 %vm348_vm0, %v1163_v7  ;;  %1102 = vmatmul.mubr.msk.bf16.vlgmr.msra.gmra.mrb[0].mxu1 %vm348_vm0, %v1164_v8 }
  0x1a   : > { %415 = vmatprep.mubr.bf16.mxu0 %v1187_v0  ;;  %455 = vmatprep.mubr.bf16.mxu1 %v1187_v0 }
  0x1c   : > { %265 = vperm.xlu1 %1156, %v203_v21   ;;  %260 = vperm.xlu0 %1155, %v202_v22  }
  0x20   : > { %275 = vperm.xlu1 %1156, %v205_v23   ;;  %270 = vperm.xlu0 %1155, %v204_v24  }
  0x21   : > { %1099 = vmatmul.mubr.msk.bf16.gmra.mrb[4].mxu0 %vm348_vm0, %v1165_v13  ;;  %1103 = vmatmul.mubr.msk.bf16.gmra.mrb[4].mxu1 %vm348_vm0, %v1166_v14 }
  0x22   : > { %425 = vmatprep.mubr.bf16.mxu0 %v1187_v0  ;;  %465 = vmatprep.mubr.bf16.mxu1 %v1187_v0 }
  0x24   : > { %285 = vperm.xlu1 %1156, %v207_v27   ;;  %280 = vperm.xlu0 %1155, %v206_v28  }
  0x29   : > { %1100 = vmatmul.mubr.msk.bf16.gmra.mrb[8].mxu0 %vm348_vm0, %v1167_v19  ;;  %1104 = vmatmul.mubr.msk.bf16.gmra.mrb[8].mxu1 %vm348_vm0, %v1168_v20 }
  0x2a   : > { %435 = vmatprep.mubr.bf16.mxu0 %v1187_v0  ;;  %475 = vmatprep.mubr.bf16.mxu1 %v1187_v0 }
  0x31   : > { %1101 = vmatmul.mubr.msk.bf16.gmra.mrb[12].mxu0 %vm348_vm0, %v1169_v25  ;;  %1105 = vmatmul.mubr.msk.bf16.gmra.mrb[12].mxu1 %vm348_vm0, %v1170_v26 }
  0x87   : > { %v221_v29 = vpop.permute.xlu1 %220  ;;  %v211_v30 = vpop.permute.xlu0 %210 }
  0x8b   : > { %v226_v31 = vpop.permute.xlu1 %225  ;;  %v216_v32 = vpop.permute.xlu0 %215 }
  0x8f   : > { %v1302_v33 = vpop.permute.xlu1 %235  ;;  %v231_v34 = vpop.permute.xlu0 %230 }
  0x93   : > { %v1304_v35 = vpop.permute.xlu1 %245  ;;  %v1306_v36 = vpop.permute.xlu0 %240 }
  0x97   : > { %v256_v37 = vpop.permute.xlu1 %255  ;;  %v251_v38 = vpop.permute.xlu0 %250 }
  0x9b   : > { %v261_v57 = vpop.permute.xlu0 %260  ;;  %v266_v12 = vpop.permute.xlu1 %265 }
  0x9f   : > { %v271_v13 = vpop.permute.xlu0 %270 }
  0xec   : > { %v407_v39 = vpop.f32.mrb[0].mxu0  ;;  %v447_v40 = vpop.f32.mrb[0].mxu1 }
  0xed   : > { %v1308_v41 = vadd.f32 %v407_v39, %v211_v30  ;;  %v1310_v42 = vadd.f32 %v447_v40, %v251_v38  ;;  %v409_v43 = vpop.f32.mrb[1].mxu0  ;;  %v449_v44 = vpop.f32.mrb[1].mxu1 }
  0xee   : > { %v1312_v45 = vadd.f32 %v409_v43, %v211_v30  ;;  %v1314_v46 = vadd.f32 %v449_v44, %v251_v38  ;;  %v411_v47 = vpop.f32.mrb[2].mxu0  ;;  %v451_v48 = vpop.f32.mrb[2].mxu1 }
  0xef   : > { %v1316_v49 = vadd.f32 %v411_v47, %v216_v32  ;;  %v1318_v50 = vadd.f32 %v451_v48, %v256_v37  ;;  %v413_v51 = vpop.f32.mrb[3].mxu0  ;;  %v453_v52 = vpop.f32.mrb[3].mxu1 }
  0xf0   : > { %v1320_v53 = vadd.f32 %v413_v51, %v216_v32  ;;  %v1322_v54 = vadd.f32 %v453_v52, %v256_v37  ;;  %v574_v55 = vadd.f32 %v1314_v46, %v1310_v42  ;;  %v526_v56 = vadd.f32 %v1312_v45, %v1308_v41  ;;  %v281_v37 = vpop.permute.xlu0 %280 }
  0xf2   : > { %575 = vadd.xlane.f32.xlu1 %v574_v55  ;;  %527 = vadd.xlane.f32.xlu0 %v526_v56  ;;  %v529_v60 = vadd.f32 %v1320_v53, %v1316_v49  ;;  %v577_v61 = vadd.f32 %v1322_v54, %v1318_v50 }
  0xf4   : > { %v417_v58 = vpop.f32.mrb[4].mxu0  ;;  %v457_v59 = vpop.f32.mrb[4].mxu1 }
  0xf5   : > { %v1332_v62 = vadd.f32 %v417_v58, %v221_v29  ;;  %v1334_v63 = vadd.f32 %v457_v59, %v261_v57  ;;  %v419_v0 = vpop.f32.mrb[5].mxu0  ;;  %v459_v1 = vpop.f32.mrb[5].mxu1 }
  0xf6   : > { %v1336_v2 = vadd.f32 %v419_v0, %v221_v29  ;;  %v1338_v3 = vadd.f32 %v459_v1, %v261_v57  ;;  %v421_v4 = vpop.f32.mrb[6].mxu0  ;;  %v461_v5 = vpop.f32.mrb[6].mxu1  ;;  %530 = vadd.xlane.f32.xlu1 %v529_v60  ;;  %578 = vadd.xlane.f32.xlu0 %v577_v61 }
  0xf7   : > { %v423_v6 = vpop.f32.mrb[7].mxu0  ;;  %v463_v7 = vpop.f32.mrb[7].mxu1  ;;  %v1340_v8 = vadd.f32 %v421_v4, %v226_v31  ;;  %v1348_v14 = vadd.f32 %v461_v5, %v266_v12 }
  0xf8   : > { %v1342_v9 = vadd.f32 %v423_v6, %v226_v31  ;;  %v580_v10 = vadd.f32 %v1338_v3, %v1334_v63  ;;  %v532_v11 = vadd.f32 %v1336_v2, %v1332_v62  ;;  %v1350_v15 = vadd.f32 %v463_v7, %v266_v12 }
  0xfa   : > { %581 = vadd.xlane.f32.xlu1 %v580_v10  ;;  %533 = vadd.xlane.f32.xlu0 %v532_v11  ;;  %v535_v18 = vadd.f32 %v1342_v9, %v1340_v8  ;;  %v583_v28 = vadd.f32 %v1350_v15, %v1348_v14 }
  0xfc   : > { %v427_v16 = vpop.f32.mrb[8].mxu0  ;;  %v467_v17 = vpop.f32.mrb[8].mxu1 }
  0xfd   : > { %v1354_v19 = vadd.f32 %v427_v16, %v231_v34  ;;  %v429_v20 = vpop.f32.mrb[9].mxu0  ;;  %v469_v21 = vpop.f32.mrb[9].mxu1  ;;  %v1358_v25 = vadd.f32 %v467_v17, %v271_v13 }
  0xfe   : > { %v1356_v22 = vadd.f32 %v429_v20, %v231_v34  ;;  %v431_v23 = vpop.f32.mrb[10].mxu0  ;;  %v471_v24 = vpop.f32.mrb[10].mxu1  ;;  %536 = vadd.xlane.f32.xlu0 %v535_v18  ;;  %v1362_v29 = vadd.f32 %v469_v21, %v271_v13 }
  0xff   : > { %v433_v26 = vpop.f32.mrb[11].mxu0  ;;  %v473_v27 = vpop.f32.mrb[11].mxu1  ;;  %v1365_v30 = vadd.f32 %v431_v23, %v1302_v33 }
 0x100   : > { %v1368_v31 = vadd.f32 %v433_v26, %v1302_v33  ;;  %v550_v32 = vadd.f32 %v1356_v22, %v1354_v19  ;;  %v276_v34 = vpop.permute.xlu1 %275  ;;  %v598_v44 = vadd.f32 %v1362_v29, %v1358_v25 }
 0x101   : > { %v1372_v38 = vadd.f32 %v471_v24, %v276_v34  ;;  %v1374_v39 = vadd.f32 %v473_v27, %v276_v34 }
 0x102   : > { %551 = vadd.xlane.f32.xlu1 %v550_v32  ;;  %584 = vadd.xlane.f32.xlu0 %v583_v28  ;;  %v553_v33 = vadd.f32 %v1368_v31, %v1365_v30 }
 0x103   : > { %v601_v60 = vadd.f32 %v1374_v39, %v1372_v38 }
 0x104   : > { %v437_v40 = vpop.f32.mrb[12].mxu0  ;;  %v477_v43 = vpop.f32.mrb[12].mxu1 }
 0x105   : > { %v1381_v47 = vadd.f32 %v437_v40, %v1306_v36  ;;  %v439_v48 = vpop.f32.mrb[13].mxu0  ;;  %v479_v51 = vpop.f32.mrb[13].mxu1  ;;  %v1386_v57 = vadd.f32 %v477_v43, %v281_v37 }
 0x106   : > { %v1384_v52 = vadd.f32 %v439_v48, %v1306_v36  ;;  %v441_v55 = vpop.f32.mrb[14].mxu0  ;;  %v481_v56 = vpop.f32.mrb[14].mxu1  ;;  %599 = vadd.xlane.f32.xlu1 %v598_v44  ;;  %554 = vadd.xlane.f32.xlu0 %v553_v33  ;;  %v1390_v61 = vadd.f32 %v479_v51, %v281_v37 }
 0x107   : > { %v443_v58 = vpop.f32.mrb[15].mxu0  ;;  %v483_v59 = vpop.f32.mrb[15].mxu1  ;;  %v1393_v0 = vadd.f32 %v441_v55, %v1304_v35 }
 0x108   : > { %v1396_v1 = vadd.f32 %v443_v58, %v1304_v35  ;;  %v556_v36 = vadd.f32 %v1384_v52, %v1381_v47  ;;  %v286_v4 = vpop.permute.xlu1 %285  ;;  %v604_v7 = vadd.f32 %v1390_v61, %v1386_v57 }
 0x109   : > { %v1400_v5 = vadd.f32 %v481_v56, %v286_v4  ;;  %v1402_v6 = vadd.f32 %v483_v59, %v286_v4 }
 0x10a   : > { %557 = vadd.xlane.f32.xlu1 %v556_v36  ;;  %602 = vadd.xlane.f32.xlu0 %v601_v60  ;;  %v559_v10 = vadd.f32 %v1396_v1, %v1393_v0 }
 0x10b   : > { %v607_v35 = vadd.f32 %v1402_v6, %v1400_v5 }
 0x10e   : > { %605 = vadd.xlane.f32.xlu1 %v604_v7  ;;  %560 = vadd.xlane.f32.xlu0 %v559_v10 }
 0x112   : > { %608 = vadd.xlane.f32.xlu0 %v607_v35 }
 0x17f   : > { %v576_v11 = vpop.xlane.xlu1 %575  ;;  %v528_v12 = vpop.xlane.xlu0 %527 }
 0x183   : > { %v579_v13 = vpop.xlane.xlu0 %578  ;;  %v531_v16 = vpop.xlane.xlu1 %530 }
 0x187   : > { %v534_v17 = vpop.xlane.xlu0 %533  ;;  %v582_v18 = vpop.xlane.xlu1 %581 }
 0x18b   : > { %v537_v20 = vpop.xlane.xlu0 %536 }
 0x18f   : > { %v552_v21 = vpop.xlane.xlu1 %551  ;;  %v585_v23 = vpop.xlane.xlu0 %584 }
 0x190   : > { %v562_v24 = vadd.f32 %v552_v21, %v528_v12 }
 0x192   : > { %v586_v26 = vadd.f32 %v576_v11, %v562_v24 }
 0x193   : > { %v600_v27 = vpop.xlane.xlu1 %599  ;;  %v555_v28 = vpop.xlane.xlu0 %554 }
 0x194   : > { %v610_v32 = vadd.f32 %v600_v27, %v586_v26  ;;  %v563_v34 = vadd.f32 %v555_v28, %v531_v16 }
 0x196   : > { %v614_v37 = vmul.f32 0.0009765625, %v610_v32  ;;  %v587_v40 = vadd.f32 %v579_v13, %v563_v34 }
 0x197   : > { %v558_v43 = vpop.xlane.xlu1 %557  ;;  %v603_v44 = vpop.xlane.xlu0 %602 }
 0x198   : > { %v564_v33 = vadd.f32 %v558_v43, %v534_v17  ;;  %v611_v48 = vadd.f32 %v603_v44, %v587_v40  ;;  %v1411_v51 = vsub.f32 %v1308_v41, %v614_v37  ;;  %v1414_v55 = vsub.f32 %v1312_v45, %v614_v37 }
 0x199   : > { %v1417_v56 = vsub.f32 %v1354_v19, %v614_v37  ;;  %v1420_v58 = vsub.f32 %v1356_v22, %v614_v37  ;;  %v1423_v59 = vsub.f32 %v1310_v42, %v614_v37  ;;  %v1426_v60 = vsub.f32 %v1314_v46, %v614_v37 }
 0x19a   : > { %v615_v36 = vmul.f32 0.0009765625, %v611_v48  ;;  %v588_v4 = vadd.f32 %v582_v18, %v564_v33  ;;  %v634_v41 = vmul.f32 %v1411_v51, %v1411_v51  ;;  %v635_v45 = vmul.f32 %v1414_v55, %v1414_v55 }
 0x19b   : > { %v606_v7 = vpop.xlane.xlu1 %605  ;;  %v561_v19 = vpop.xlane.xlu0 %560  ;;  %v682_v22 = vmul.f32 %v1417_v56, %v1417_v56  ;;  %v683_v42 = vmul.f32 %v1420_v58, %v1420_v58  ;;  %v730_v13 = vmul.f32 %v1423_v59, %v1423_v59  ;;  %v1457_v26 = vsub.f32 %v1358_v25, %v614_v37 }
 0x19c   : > { %v612_v10 = vadd.f32 %v606_v7, %v588_v4  ;;  %v565_v35 = vadd.f32 %v561_v19, %v537_v20  ;;  %v642_v46 = vadd.f32 %v635_v45, %v634_v41  ;;  %v1437_v11 = vsub.f32 %v1316_v49, %v615_v36 }
 0x19d   : > { %v1440_v12 = vsub.f32 %v1320_v53, %v615_v36  ;;  %v1445_v16 = vsub.f32 %v1365_v30, %v615_v36  ;;  %v731_v20 = vmul.f32 %v1426_v60, %v1426_v60  ;;  %v1452_v49 = vsub.f32 %v1368_v31, %v615_v36 }
 0x19e   : > { %643 = vadd.xlane.f32.xlu1 %v642_v46  ;;  %v589_v17 = vadd.f32 %v585_v23, %v565_v35  ;;  %v636_v18 = vmul.f32 %v1437_v11, %v1437_v11  ;;  %v690_v53 = vadd.f32 %v683_v42, %v682_v22  ;;  %v1460_v30 = vsub.f32 %v1362_v29, %v614_v37 }
 0x19f   : > { %v609_v21 = vpop.xlane.xlu0 %608  ;;  %v637_v24 = vmul.f32 %v1440_v12, %v1440_v12  ;;  %v616_v23 = vmul.f32 0.0009765625, %v612_v10  ;;  %v684_v28 = vmul.f32 %v1445_v16, %v1445_v16  ;;  %v685_v31 = vmul.f32 %v1452_v49, %v1452_v49 }
 0x1a0   : > { %v613_v27 = vadd.f32 %v609_v21, %v589_v17  ;;  %v1467_v34 = vsub.f32 %v1318_v50, %v615_v36  ;;  %v1470_v40 = vsub.f32 %v1322_v54, %v615_v36  ;;  %v738_v25 = vadd.f32 %v731_v20, %v730_v13 }
 0x1a1   : > { %v645_v32 = vadd.f32 %v637_v24, %v636_v18  ;;  %v778_v29 = vmul.f32 %v1457_v26, %v1457_v26  ;;  %v779_v37 = vmul.f32 %v1460_v30, %v1460_v30  ;;  %v693_v44 = vadd.f32 %v685_v31, %v684_v28 }
 0x1a2   : > { %691 = vadd.xlane.f32.xlu1 %v690_v53  ;;  %v617_v43 = vmul.f32 0.0009765625, %v613_v27  ;;  %v1477_v33 = vsub.f32 %v1332_v62, %v616_v23  ;;  %v1480_v50 = vsub.f32 %v1336_v2, %v616_v23  ;;  %v732_v54 = vmul.f32 %v1467_v34, %v1467_v34 }
 0x1a3   : > { %646 = vadd.xlane.f32.xlu0 %v645_v32  ;;  %v733_v48 = vmul.f32 %v1470_v40, %v1470_v40  ;;  %v1487_v4 = vsub.f32 %v1372_v38, %v615_v36  ;;  %v1490_v41 = vsub.f32 %v1374_v39, %v615_v36  ;;  %v786_v45 = vadd.f32 %v779_v37, %v778_v29 }
 0x1a4   : > { %v1493_v62 = vsub.f32 %v1381_v47, %v616_v23  ;;  %v1496_v2 = vsub.f32 %v1384_v52, %v616_v23  ;;  %v638_v7 = vmul.f32 %v1477_v33, %v1477_v33  ;;  %v639_v19 = vmul.f32 %v1480_v50, %v1480_v50 }
 0x1a5   : > { %v1503_v38 = vsub.f32 %v1340_v8, %v617_v43  ;;  %v1506_v39 = vsub.f32 %v1342_v9, %v617_v43  ;;  %v741_v36 = vadd.f32 %v733_v48, %v732_v54  ;;  %v780_v47 = vmul.f32 %v1487_v4, %v1487_v4 }
 0x1a6   : > { %739 = vadd.xlane.f32.xlu1 %v738_v25  ;;  %v781_v52 = vmul.f32 %v1490_v41, %v1490_v41  ;;  %v686_v22 = vmul.f32 %v1493_v62, %v1493_v62  ;;  %v687_v42 = vmul.f32 %v1496_v2, %v1496_v2  ;;  %v1517_v8 = vsub.f32 %v1334_v63, %v616_v23 }
 0x1a7   : > { %694 = vadd.xlane.f32.xlu0 %v693_v44  ;;  %v648_v9 = vadd.f32 %v639_v19, %v638_v7  ;;  %v640_v10 = vmul.f32 %v1503_v38, %v1503_v38  ;;  %v641_v35 = vmul.f32 %v1506_v39, %v1506_v39  ;;  %v1524_v46 = vsub.f32 %v1338_v3, %v616_v23 }
 0x1a8   : > { %v789_v13 = vadd.f32 %v781_v52, %v780_v47  ;;  %v1527_v17 = vsub.f32 %v1393_v0, %v617_v43  ;;  %v1530_v18 = vsub.f32 %v1396_v1, %v617_v43  ;;  %v696_v63 = vadd.f32 %v687_v42, %v686_v22 }
 0x1a9   : > { %v734_v20 = vmul.f32 %v1517_v8, %v1517_v8  ;;  %v651_v21 = vadd.f32 %v641_v35, %v640_v10  ;;  %v735_v53 = vmul.f32 %v1524_v46, %v1524_v46  ;;  %v1537_v3 = vsub.f32 %v1386_v57, %v616_v23 }
 0x1aa   : > { %787 = vadd.xlane.f32.xlu1 %v786_v45  ;;  %v1540_v24 = vsub.f32 %v1390_v61, %v616_v23  ;;  %v688_v0 = vmul.f32 %v1527_v17, %v1527_v17  ;;  %v689_v1 = vmul.f32 %v1530_v18, %v1530_v18  ;;  %v1547_v27 = vsub.f32 %v1348_v14, %v617_v43 }
 0x1ab   : > { %742 = vadd.xlane.f32.xlu0 %v741_v36  ;;  %v1550_v28 = vsub.f32 %v1350_v15, %v617_v43  ;;  %v744_v31 = vadd.f32 %v735_v53, %v734_v20  ;;  %v782_v57 = vmul.f32 %v1537_v3, %v1537_v3  ;;  %v1557_v23 = vsub.f32 %v1400_v5, %v617_v43 }
 0x1ac   : > { %v783_v61 = vmul.f32 %v1540_v24, %v1540_v24  ;;  %v699_v32 = vadd.f32 %v689_v1, %v688_v0  ;;  %v736_v14 = vmul.f32 %v1547_v27, %v1547_v27  ;;  %v1564_v25 = vsub.f32 %v1402_v6, %v617_v43 }
 0x1ad   : > { %v737_v15 = vmul.f32 %v1550_v28, %v1550_v28  ;;  %v784_v44 = vmul.f32 %v1557_v23, %v1557_v23 }
 0x1ae   : > { %649 = vadd.xlane.f32.xlu1 %v648_v9  ;;  %v792_v29 = vadd.f32 %v783_v61, %v782_v57  ;;  %v785_v5 = vmul.f32 %v1564_v25, %v1564_v25 }
 0x1af   : > { %790 = vadd.xlane.f32.xlu0 %v789_v13  ;;  %v747_v37 = vadd.f32 %v737_v15, %v736_v14 }
 0x1b0   : > { %v795_v54 = vadd.f32 %v785_v5, %v784_v44 }
 0x1b2   : > { %697 = vadd.xlane.f32.xlu1 %v696_v63 }
 0x1b3   : > { %652 = vadd.xlane.f32.xlu0 %v651_v21 }
 0x1b6   : > { %745 = vadd.xlane.f32.xlu1 %v744_v31 }
 0x1b7   : > { %700 = vadd.xlane.f32.xlu0 %v699_v32 }
 0x1ba   : > { %793 = vadd.xlane.f32.xlu1 %v792_v29 }
 0x1bb   : > { %748 = vadd.xlane.f32.xlu0 %v747_v37 }
 0x1bf   : > { %796 = vadd.xlane.f32.xlu0 %v795_v54 }
 0x22b   : > { %v644_v48 = vpop.xlane.xlu1 %643 }
 0x22f   : > { %v692_v45 = vpop.xlane.xlu1 %691 }
 0x230   : > { %v647_v7 = vpop.xlane.xlu0 %646  ;;  %v702_v6 = vadd.f32 %v692_v45, %v644_v48 }
 0x233   : > { %v740_v19 = vpop.xlane.xlu1 %739 }
 0x234   : > { %v695_v43 = vpop.xlane.xlu0 %694  ;;  %v750_v36 = vadd.f32 %v740_v19, %v702_v6 }
 0x235   : > { %v703_v42 = vadd.f32 %v695_v43, %v647_v7 }
 0x237   : > { %v788_v47 = vpop.xlane.xlu1 %787 }
 0x238   : > { %v798_v52 = vadd.f32 %v788_v47, %v750_v36  ;;  %v743_v22 = vpop.xlane.xlu0 %742 }
 0x239   : > { %v751_v10 = vadd.f32 %v743_v22, %v703_v42 }
 0x23a   : > { %v802_v9 = vmul.f32 0.0009765625, %v798_v52 }
 0x23b   : > { %v650_v35 = vpop.xlane.xlu1 %649 }
 0x23c   : > { %v806_v13 = vadd.f32 1e-05, %v802_v9  ;;  %v791_v63 = vpop.xlane.xlu0 %790 }
 0x23d   : > { %v799_v20 = vadd.f32 %v791_v63, %v751_v10 }
 0x23e   : > { %1171 = vrsqrt.f32 %v806_v13 }
 0x23f   : > { %v803_v21 = vmul.f32 0.0009765625, %v799_v20  ;;  %v698_v53 = vpop.xlane.xlu1 %697 }
 0x240   : > { %v653_v0 = vpop.xlane.xlu0 %652  ;;  %v704_v57 = vadd.f32 %v698_v53, %v650_v35 }
 0x241   : > { %v807_v1 = vadd.f32 1e-05, %v803_v21 }
 0x243   : > { %1173 = vrsqrt.f32 %v807_v1  ;;  %v746_v31 = vpop.xlane.xlu1 %745 }
 0x244   : > { %v701_v61 = vpop.xlane.xlu0 %700  ;;  %v752_v32 = vadd.f32 %v746_v31, %v704_v57 }
 0x245   : > { %v705_v29 = vadd.f32 %v701_v61, %v653_v0 }
 0x247   : > { %v794_v14 = vpop.xlane.xlu1 %793 }
 0x248   : > { %v1172_v15 = vpop.eup %1171  ;;  %v800_v37 = vadd.f32 %v794_v14, %v752_v32  ;;  %v749_v43 = vpop.xlane.xlu0 %748 }
 0x249   : > { %v822_v44 = vmul.f32 %v1172_v15, %v1411_v51  ;;  %v823_v5 = vmul.f32 %v1172_v15, %v1414_v55  ;;  %v874_v54 = vmul.f32 %v1172_v15, %v1417_v56  ;;  %v875_v48 = vmul.f32 %v1172_v15, %v1420_v58 }
 0x24a   : > { %v926_v45 = vmul.f32 %v1172_v15, %v1423_v59  ;;  %v927_v7 = vmul.f32 %v1172_v15, %v1426_v60  ;;  %v978_v19 = vmul.f32 %v1172_v15, %v1457_v26  ;;  %v979_v6 = vmul.f32 %v1172_v15, %v1460_v30 }
 0x24b   : > { %v830_v36 = vmax.f32 %v822_v44, 0.0  ;;  %v831_v47 = vmax.f32 %v823_v5, 0.0  ;;  %v882_v52 = vmax.f32 %v874_v54, 0.0  ;;  %v883_v22 = vmax.f32 %v875_v48, 0.0 }
 0x24c   : > { %v934_v51 = vmax.f32 %v926_v45, 0.0  ;;  %v935_v55 = vmax.f32 %v927_v7, 0.0  ;;  %v986_v56 = vmax.f32 %v978_v19, 0.0  ;;  %v987_v58 = vmax.f32 %v979_v6, 0.0 }
 0x24d   : > { %v1174_v59 = vpop.eup %1173  ;;  %v1126_v60 = vpack.c.bf16 %v831_v47, %v830_v36  ;;  %v1130_v26 = vpack.c.bf16 %v883_v22, %v882_v52  ;;  %v804_v30 = vmul.f32 0.0009765625, %v800_v37  ;;  %v753_v42 = vadd.f32 %v749_v43, %v705_v29 }
 0x24e   : > { %v1134_v9 = vpack.c.bf16 %v935_v55, %v934_v51  ;;  %v1138_v10 = vpack.c.bf16 %v987_v58, %v986_v56  ;;  %v824_v35 = vmul.f32 %v1174_v59, %v1437_v11  ;;  %v825_v13 = vmul.f32 %v1174_v59, %v1440_v12  ;;  %v797_v12 = vpop.xlane.xlu0 %796 }
 0x24f   : > { %862 = vst [vmem:[%s1582_s18] sm:$0xff] %v1126_v60  ;;  %914 = vst [vmem:[%s1582_s18 + $0x8] sm:$0xff] %v1130_v26  ;;  %v876_v63 = vmul.f32 %v1174_v59, %v1445_v16  ;;  %v877_v20 = vmul.f32 %v1174_v59, %v1452_v49  ;;  %v928_v21 = vmul.f32 %v1174_v59, %v1467_v34  ;;  %v808_v14 = vadd.f32 1e-05, %v804_v30 }
 0x250   : > { %v929_v53 = vmul.f32 %v1174_v59, %v1470_v40  ;;  %966 = vst [vmem:[%s1582_s18 + $0x10] sm:$0xff] %v1134_v9  ;;  %1018 = vst [vmem:[%s1582_s18 + $0x18] sm:$0xff] %v1138_v10  ;;  %v832_v0 = vmax.f32 %v824_v35, 0.0  ;;  %v833_v1 = vmax.f32 %v825_v13, 0.0  ;;  %v980_v31 = vmul.f32 %v1174_v59, %v1487_v4 }
 0x251   : > { %v981_v11 = vmul.f32 %v1174_v59, %v1490_v41  ;;  %v884_v57 = vmax.f32 %v876_v63, 0.0  ;;  %v885_v16 = vmax.f32 %v877_v20, 0.0  ;;  %v936_v49 = vmax.f32 %v928_v21, 0.0 }
 0x252   : > { %v937_v61 = vmax.f32 %v929_v53, 0.0  ;;  %v1127_v34 = vpack.c.bf16 %v833_v1, %v832_v0  ;;  %v988_v32 = vmax.f32 %v980_v31, 0.0  ;;  %v801_v37 = vadd.f32 %v797_v12, %v753_v42 }
 0x253   : > { %v989_v40 = vmax.f32 %v981_v11, 0.0  ;;  %v1131_v15 = vpack.c.bf16 %v885_v16, %v884_v57  ;;  %1175 = vrsqrt.f32 %v808_v14 }
 0x254   : > { %v1135_v29 = vpack.c.bf16 %v937_v61, %v936_v49  ;;  %863 = vst [vmem:[%s1582_s18 + $0x20] sm:$0xff] %v1127_v34  ;;  %v805_v4 = vmul.f32 0.0009765625, %v801_v37 }
 0x255   : > { %v1139_v44 = vpack.c.bf16 %v989_v40, %v988_v32  ;;  %915 = vst [vmem:[%s1582_s18 + $0x28] sm:$0xff] %v1131_v15 }
 0x256   : > { %967 = vst [vmem:[%s1582_s18 + $0x30] sm:$0xff] %v1135_v29  ;;  %v809_v41 = vadd.f32 1e-05, %v805_v4 }
 0x257   : > { %1019 = vst [vmem:[%s1582_s18 + $0x38] sm:$0xff] %v1139_v44 }
 0x258   : > { %1177 = vrsqrt.f32 %v809_v41 }
 0x25d   : > { %v1176_v5 = vpop.eup %1175 }
 0x25e   : > { %v826_v54 = vmul.f32 %v1176_v5, %v1477_v33  ;;  %v827_v48 = vmul.f32 %v1176_v5, %v1480_v50  ;;  %v878_v45 = vmul.f32 %v1176_v5, %v1493_v62  ;;  %v879_v7 = vmul.f32 %v1176_v5, %v1496_v2 }
 0x25f   : > { %v930_v19 = vmul.f32 %v1176_v5, %v1517_v8  ;;  %v931_v6 = vmul.f32 %v1176_v5, %v1524_v46  ;;  %v982_v43 = vmul.f32 %v1176_v5, %v1537_v3  ;;  %v983_v36 = vmul.f32 %v1176_v5, %v1540_v24 }
 0x260   : > { %v834_v47 = vmax.f32 %v826_v54, 0.0  ;;  %v835_v52 = vmax.f32 %v827_v48, 0.0  ;;  %v886_v22 = vmax.f32 %v878_v45, 0.0  ;;  %v887_v33 = vmax.f32 %v879_v7, 0.0 }
 0x261   : > { %v938_v51 = vmax.f32 %v930_v19, 0.0  ;;  %v939_v50 = vmax.f32 %v931_v6, 0.0  ;;  %v990_v62 = vmax.f32 %v982_v43, 0.0  ;;  %v991_v2 = vmax.f32 %v983_v36, 0.0 }
 0x262   : > { %v1178_v55 = vpop.eup %1177  ;;  %v1128_v8 = vpack.c.bf16 %v835_v52, %v834_v47  ;;  %v1132_v56 = vpack.c.bf16 %v887_v33, %v886_v22 }
 0x263   : > { %v1136_v46 = vpack.c.bf16 %v939_v50, %v938_v51  ;;  %v1140_v58 = vpack.c.bf16 %v991_v2, %v990_v62  ;;  %v828_v3 = vmul.f32 %v1178_v55, %v1503_v38  ;;  %v829_v24 = vmul.f32 %v1178_v55, %v1506_v39 }
 0x264   : > { %864 = vst [vmem:[%s1582_s18 + $0x40] sm:$0xff] %v1128_v8  ;;  %916 = vst [vmem:[%s1582_s18 + $0x48] sm:$0xff] %v1132_v56  ;;  %v880_v59 = vmul.f32 %v1178_v55, %v1527_v17  ;;  %v881_v60 = vmul.f32 %v1178_v55, %v1530_v18  ;;  %v932_v26 = vmul.f32 %v1178_v55, %v1547_v27 }
 0x265   : > { %v933_v30 = vmul.f32 %v1178_v55, %v1550_v28  ;;  %968 = vst [vmem:[%s1582_s18 + $0x50] sm:$0xff] %v1136_v46  ;;  %1020 = vst [vmem:[%s1582_s18 + $0x58] sm:$0xff] %v1140_v58  ;;  %v836_v42 = vmax.f32 %v828_v3, 0.0  ;;  %v837_v9 = vmax.f32 %v829_v24, 0.0  ;;  %v984_v38 = vmul.f32 %v1178_v55, %v1557_v23 }
 0x266   : > { %v985_v39 = vmul.f32 %v1178_v55, %v1564_v25  ;;  %v888_v10 = vmax.f32 %v880_v59, 0.0  ;;  %v889_v17 = vmax.f32 %v881_v60, 0.0  ;;  %v940_v35 = vmax.f32 %v932_v26, 0.0 }
 0x267   : > { %v941_v18 = vmax.f32 %v933_v30, 0.0  ;;  %v1129_v13 = vpack.c.bf16 %v837_v9, %v836_v42  ;;  %v992_v27 = vmax.f32 %v984_v38, 0.0 }
 0x268   : > { %v993_v63 = vmax.f32 %v985_v39, 0.0  ;;  %v1133_v28 = vpack.c.bf16 %v889_v17, %v888_v10 }
 0x269   : > { %v1137_v20 = vpack.c.bf16 %v941_v18, %v940_v35  ;;  %865 = vst [vmem:[%s1582_s18 + $0x60] sm:$0xff] %v1129_v13 }
 0x26a   : > { %v1141_v21 = vpack.c.bf16 %v993_v63, %v992_v27  ;;  %917 = vst [vmem:[%s1582_s18 + $0x68] sm:$0xff] %v1133_v28 }
 0x26b   : > { %969 = vst [vmem:[%s1582_s18 + $0x70] sm:$0xff] %v1137_v20 }
 0x26c   : > { %1021 = vst [vmem:[%s1582_s18 + $0x78] sm:$0xff] %v1141_v21 }
 0x26d PF: > { %s13_s12 = sadd.s32 1, %s1185_s12  }
 0x26e   : > { %p10_p4 = scmp.ge.s32.totalorder %s13_s12, 4  }
 0x270   :  { %12 = sbr.rel (!%p10_p4) target bundleno = 1 (0x1), region = 62 }

</bundles_post_ra>
